<compile_context>
chip_gen: v7x
topology: tpu7x:2x2x1
jax: 0.10.0
libtpu: 0.0.40
codegen_flags: <defaults>
</compile_context>

<pallas_src>
import jax
import jax.numpy as jnp
from jax.experimental import pallas as pl
from jax.experimental.pallas import tpu as pltpu


def _netdenoise_kernel(x_ref, w1_ref, b1_ref, w2_ref, b2_ref, o_ref, h_ref):
    """Fused NetDenoise MLP on one (TM, D) batch tile.

    x_ref : (TM, D) f32     flattened board tile
    w1    : (D, H) bf16     b1 : (1, H) f32
    w2    : (H, D) bf16     b2 : (1, D) f32
    o_ref : (TM, D) f32
    h_ref : (TM, H) f32 VMEM scratch for the hidden activation
    """
    # layer 1: bf16 MXU matmul with f32 accumulation; bias + GELU on VPU/EUP.
    x = x_ref[...].astype(jnp.bfloat16)
    h = jnp.dot(x, w1_ref[...], preferred_element_type=jnp.float32)
    # TODO(synk): PyTorch nn.GELU() defaults to the exact erf form; the tanh
    # approximation is used here (NetDenoise internals were not provided).
    h_ref[...] = jax.nn.gelu(h + b1_ref[...], approximate=True)

    # layer 2: bf16 MXU matmul with f32 accumulation + bias.
    y = jnp.dot(h_ref[...].astype(jnp.bfloat16), w2_ref[...],
                preferred_element_type=jnp.float32)
    o_ref[...] = (y + b2_ref[...]).astype(o_ref.dtype)


def _pick_tm(B: int, H: int) -> int:
    """Batch tile: multiple of 8 (f32 sublane) that divides B and keeps the
    (TM, H) f32 hidden scratch at or below ~128 KiB."""
    cap = max(8, (128 * 1024) // (H * 4))
    for tm in (512, 256, 128, 64, 32, 16, 8):
        if tm <= cap and B % tm == 0:
            return tm
    return B    # tiny batch: one full-extent block (allowed by Pallas)


def _build_netdenoise_call(B, D, H, TM, out_dtype, single_buffer_weights):
    def const_spec(shape):
        idx_map = lambda i: (0,) * len(shape)
        if single_buffer_weights:
            # Weights/biases keep a constant block index across the batch
            # grid: a second pipeline buffer is useless, so single-buffer
            # them (halves weight VMEM, matters on v7x's 64 MiB).
            return pl.BlockSpec(shape, idx_map, pipeline_mode=pl.Buffered(1))
        return pl.BlockSpec(shape, idx_map)

    return pl.pallas_call(
        _netdenoise_kernel,
        out_shape=jax.ShapeDtypeStruct((B, D), out_dtype),
        grid=(B // TM,),
        in_specs=[
            pl.BlockSpec((TM, D), lambda i: (i, 0)),   # x: batch-tiled, pipelined
            const_spec((D, H)),                        # w1 (bf16)
            const_spec((1, H)),                        # b1
            const_spec((H, D)),                        # w2 (bf16)
            const_spec((1, D)),                        # b2
        ],
        out_specs=pl.BlockSpec((TM, D), lambda i: (i, 0)),
        scratch_shapes=[pltpu.VMEM((TM, H), jnp.float32)],
        # Batch tiles are independent -> "parallel" lets v7x shard the grid
        # across both TensorCores (no effect on single-TC v5e / v6e).
        compiler_params=pltpu.CompilerParams(
            dimension_semantics=("parallel",)),
    )
    # TODO(synk): for very large hidden widths (w1+w2 approaching VMEM), add
    # an H grid axis (layer-1 N / layer-2 K reduction with a pl.when-guarded
    # accumulator) and set vmem_limit_bytes explicitly in CompilerParams.


def netdenoise_pallas(x_flat, params):
    B, D = x_flat.shape
    H = params["w1"].shape[1]
    TM = _pick_tm(B, H)
    args = (x_flat, params["w1"], params["b1"], params["w2"], params["b2"])
    try:
        y = _build_netdenoise_call(B, D, H, TM, x_flat.dtype, True)(*args)
        return jax.block_until_ready(y)   # surface deferred errors here
    except Exception:
        # pl.Buffered(1) pipeline_mode not supported on this jax/libtpu
        # build: fall back to default (double-buffered) weight specs.
        return _build_netdenoise_call(B, D, H, TM, x_flat.dtype, False)(*args)


def init_params(key, siz, hidden):
    """Deterministic synthetic NetDenoise(token_cnt * world_dim) parameters."""
    k1, k2 = jax.random.split(key)
    scale1 = 1.0 / jnp.sqrt(jnp.float32(siz))
    scale2 = 1.0 / jnp.sqrt(jnp.float32(hidden))
    return {
        # bf16 weights: MXU-native operand format, half the DMA/VMEM bytes;
        # both matmuls still accumulate in f32 (preferred_element_type).
        "w1": (jax.random.normal(k1, (siz, hidden), jnp.float32)
               * scale1).astype(jnp.bfloat16),
        "b1": jnp.zeros((1, hidden), jnp.float32),
        "w2": (jax.random.normal(k2, (hidden, siz), jnp.float32)
               * scale2).astype(jnp.bfloat16),
        "b2": jnp.zeros((1, siz), jnp.float32),
    }


def gracoonizer_forward(benc, params):
    """Gracoonizer.forward, mode == 2.

    benc: (bs, ntok, w) float32 board encoding.
    Returns a board of identical shape.
    """
    bs, ntok, w = benc.shape
    x_flat = jnp.reshape(benc, (bs, ntok * w))
    # Gracoonizer.forward (mode==2) always calls NetDenoise with
    # t = torch.zeros(bs): the time-embedding term t*wt is identically zero
    # and is elided from the kernel.  If nonzero t is ever needed, fold the
    # rank-1 update t @ wt into the layer-1 bias here instead of adding
    # kernel inputs.
    y = netdenoise_pallas(x_flat, params)
    return jnp.reshape(y, (bs, ntok, w))


def _reference_forward(benc, params):
    """Plain-JAX reference with matching bf16-operand / f32-accum numerics."""
    bs, ntok, w = benc.shape
    x = jnp.reshape(benc, (bs, ntok * w)).astype(jnp.bfloat16)
    h = jnp.dot(x, params["w1"], preferred_element_type=jnp.float32)
    h = jax.nn.gelu(h + params["b1"], approximate=True)
    y = jnp.dot(h.astype(jnp.bfloat16), params["w2"],
                preferred_element_type=jnp.float32) + params["b2"]
    return jnp.reshape(y, (bs, ntok, w))


if __name__ == "__main__":
    # (batch, token_cnt, world_dim).  Batch is kept at a few MXU-tiles of
    # rows: below ~64 boards per call the kernel is pure per-step overhead
    # and plain XLA would be faster, so boards should be batched per call.
    bs, token_cnt, world_dim = 256, 8, 32
    siz = token_cnt * world_dim            # NetDenoise(token_cnt * world_dim)
    hidden = 2 * siz

    key = jax.random.PRNGKey(0)
    k_in, k_par = jax.random.split(key)
    benc = jax.random.normal(k_in, (bs, token_cnt, world_dim), jnp.float32)
    params = init_params(k_par, siz, hidden)

    y = gracoonizer_forward(benc, params)
    y = jax.block_until_ready(y)

    y_ref = _reference_forward(benc, params)
    assert y.shape == benc.shape
    assert jnp.allclose(y, y_ref, atol=2e-2, rtol=2e-2), "mismatch vs JAX ref"

    print("KERNEL_OK")
</pallas_src>

<mosaic_0001>
module attributes {stable_mosaic.version = 11 : i64} {
  func.func @_netdenoise_kernel(%arg0: i32, %arg1: memref<64x256xf32, #tpu.memory_space<vmem>>, %arg2: memref<256x512xbf16, #tpu.memory_space<vmem>>, %arg3: memref<1x512xf32, #tpu.memory_space<vmem>>, %arg4: memref<512x256xbf16, #tpu.memory_space<vmem>>, %arg5: memref<1x256xf32, #tpu.memory_space<vmem>>, %arg6: memref<64x256xf32, #tpu.memory_space<vmem>>, %arg7: memref<64x512xf32, #tpu.memory_space<vmem>>) attributes {dimension_semantics = [#tpu.dimension_semantics<parallel>], iteration_bounds = array<i64: 4>, scalar_prefetch = 0 : i64, scratch_operands = 1 : i64, tpu.core_type = #tpu.core_type<tc>, window_params = [{transform_indices = @transform_0, window_bounds = array<i64: 64, 256>}, {pipeline_mode = #tpu.pipeline_mode<synchronous>, transform_indices = @transform_1, window_bounds = array<i64: 256, 512>}, {pipeline_mode = #tpu.pipeline_mode<synchronous>, transform_indices = @transform_2, window_bounds = array<i64: 1, 512>}, {pipeline_mode = #tpu.pipeline_mode<synchronous>, transform_indices = @transform_3, window_bounds = array<i64: 512, 256>}, {pipeline_mode = #tpu.pipeline_mode<synchronous>, transform_indices = @transform_4, window_bounds = array<i64: 1, 256>}, {transform_indices = @transform_5, window_bounds = array<i64: 64, 256>}]} {
    %c0 = arith.constant 0 : index
    %c0_0 = arith.constant 0 : index
    %0 = vector.load %arg1[%c0, %c0_0] : memref<64x256xf32, #tpu.memory_space<vmem>>, vector<64x256xf32>
    %1 = arith.truncf %0 : vector<64x256xf32> to vector<64x256xbf16>
    %c0_1 = arith.constant 0 : index
    %c0_2 = arith.constant 0 : index
    %2 = vector.load %arg2[%c0_1, %c0_2] : memref<256x512xbf16, #tpu.memory_space<vmem>>, vector<256x512xbf16>
    %cst = arith.constant dense<0.000000e+00> : vector<64x512xf32>
    %3 = tpu.matmul %1, %2, %cst {dimension_numbers = #tpu.dot_dimension_numbers<[1], [0], [0], [1], [0, 0, 1, 1], [], []>} : vector<64x256xbf16>, vector<256x512xbf16>, vector<64x512xf32> -> vector<64x512xf32>
    %c0_3 = arith.constant 0 : index
    %c0_4 = arith.constant 0 : index
    %4 = vector.load %arg3[%c0_3, %c0_4] : memref<1x512xf32, #tpu.memory_space<vmem>>, vector<1x512xf32>
    %5 = vector.broadcast %4 : vector<1x512xf32> to vector<64x512xf32>
    %6 = arith.addf %3, %5 : vector<64x512xf32>
    %7 = arith.mulf %6, %6 : vector<64x512xf32>
    %8 = arith.mulf %6, %7 : vector<64x512xf32>
    %cst_5 = arith.constant 4.471500e-02 : f32
    %9 = vector.broadcast %cst_5 : f32 to vector<64x512xf32>
    %10 = arith.mulf %9, %8 : vector<64x512xf32>
    %11 = arith.addf %6, %10 : vector<64x512xf32>
    %cst_6 = arith.constant 0.797884583 : f32
    %12 = vector.broadcast %cst_6 : f32 to vector<64x512xf32>
    %13 = arith.mulf %12, %11 : vector<64x512xf32>
    %14 = math.tanh %13 : vector<64x512xf32>
    %cst_7 = arith.constant 1.000000e+00 : f32
    %15 = vector.broadcast %cst_7 : f32 to vector<64x512xf32>
    %16 = arith.addf %15, %14 : vector<64x512xf32>
    %cst_8 = arith.constant 5.000000e-01 : f32
    %17 = vector.broadcast %cst_8 : f32 to vector<64x512xf32>
    %18 = arith.mulf %17, %16 : vector<64x512xf32>
    %19 = arith.mulf %6, %18 : vector<64x512xf32>
    %c0_9 = arith.constant 0 : index
    %c0_10 = arith.constant 0 : index
    %20 = vector.load %arg7[%c0_9, %c0_10] : memref<64x512xf32, #tpu.memory_space<vmem>>, vector<64x512xf32>
    tpu.vector_store %arg7[%c0_9, %c0_10], %19 {strides = array<i32>} : memref<64x512xf32, #tpu.memory_space<vmem>>, vector<64x512xf32>,
    %c0_11 = arith.constant 0 : index
    %c0_12 = arith.constant 0 : index
    %21 = vector.load %arg7[%c0_11, %c0_12] : memref<64x512xf32, #tpu.memory_space<vmem>>, vector<64x512xf32>
    %22 = arith.truncf %21 : vector<64x512xf32> to vector<64x512xbf16>
    %c0_13 = arith.constant 0 : index
    %c0_14 = arith.constant 0 : index
    %23 = vector.load %arg4[%c0_13, %c0_14] : memref<512x256xbf16, #tpu.memory_space<vmem>>, vector<512x256xbf16>
    %cst_15 = arith.constant dense<0.000000e+00> : vector<64x256xf32>
    %24 = tpu.matmul %22, %23, %cst_15 {dimension_numbers = #tpu.dot_dimension_numbers<[1], [0], [0], [1], [0, 0, 1, 1], [], []>} : vector<64x512xbf16>, vector<512x256xbf16>, vector<64x256xf32> -> vector<64x256xf32>
    %c0_16 = arith.constant 0 : index
    %c0_17 = arith.constant 0 : index
    %25 = vector.load %arg5[%c0_16, %c0_17] : memref<1x256xf32, #tpu.memory_space<vmem>>, vector<1x256xf32>
    %26 = vector.broadcast %25 : vector<1x256xf32> to vector<64x256xf32>
    %27 = arith.addf %24, %26 : vector<64x256xf32>
    %c0_18 = arith.constant 0 : index
    %c0_19 = arith.constant 0 : index
    %28 = vector.load %arg6[%c0_18, %c0_19] : memref<64x256xf32, #tpu.memory_space<vmem>>, vector<64x256xf32>
    tpu.vector_store %arg6[%c0_18, %c0_19], %27 {strides = array<i32>} : memref<64x256xf32, #tpu.memory_space<vmem>>, vector<64x256xf32>,
    return
  }
  func.func @transform_0(%arg0: i32) -> (i32, i32) {
    %c0_i32 = arith.constant 0 : i32
    %c0_i32_0 = arith.constant 0 : i32
    return %arg0, %c0_i32 : i32, i32
  }
  func.func @transform_1(%arg0: i32) -> (i32, i32) {
    %c0_i32 = arith.constant 0 : i32
    %c0_i32_0 = arith.constant 0 : i32
    %c0_i32_1 = arith.constant 0 : i32
    return %c0_i32, %c0_i32_0 : i32, i32
  }
  func.func @transform_2(%arg0: i32) -> (i32, i32) {
    %c0_i32 = arith.constant 0 : i32
    %c0_i32_0 = arith.constant 0 : i32
    %c0_i32_1 = arith.constant 0 : i32
    return %c0_i32, %c0_i32_0 : i32, i32
  }
  func.func @transform_3(%arg0: i32) -> (i32, i32) {
    %c0_i32 = arith.constant 0 : i32
    %c0_i32_0 = arith.constant 0 : i32
    %c0_i32_1 = arith.constant 0 : i32
    return %c0_i32, %c0_i32_0 : i32, i32
  }
  func.func @transform_4(%arg0: i32) -> (i32, i32) {
    %c0_i32 = arith.constant 0 : i32
    %c0_i32_0 = arith.constant 0 : i32
    %c0_i32_1 = arith.constant 0 : i32
    return %c0_i32, %c0_i32_0 : i32, i32
  }
  func.func @transform_5(%arg0: i32) -> (i32, i32) {
    %c0_i32 = arith.constant 0 : i32
    %c0_i32_0 = arith.constant 0 : i32
    return %arg0, %c0_i32 : i32, i32
  }
}

module attributes {stable_mosaic.version = 11 : i64} {
  func.func @_netdenoise_kernel(%arg0: i32, %arg1: memref<64x256xf32, #tpu.memory_space<vmem>>, %arg2: memref<256x512xbf16, #tpu.memory_space<vmem>>, %arg3: memref<1x512xf32, #tpu.memory_space<vmem>>, %arg4: memref<512x256xbf16, #tpu.memory_space<vmem>>, %arg5: memref<1x256xf32, #tpu.memory_space<vmem>>, %arg6: memref<64x256xf32, #tpu.memory_space<vmem>>, %arg7: memref<64x512xf32, #tpu.memory_space<vmem>>) attributes {dimension_semantics = [#tpu.dimension_semantics<parallel>], iteration_bounds = array<i64: 4>, scalar_prefetch = 0 : i64, scratch_operands = 1 : i64, tpu.core_type = #tpu.core_type<tc>, window_params = [{transform_indices = @transform_0, window_bounds = array<i64: 64, 256>}, {pipeline_mode = #tpu.pipeline_mode<synchronous>, transform_indices = @transform_1, window_bounds = array<i64: 256, 512>}, {pipeline_mode = #tpu.pipeline_mode<synchronous>, transform_indices = @transform_2, window_bounds = array<i64: 1, 512>}, {pipeline_mode = #tpu.pipeline_mode<synchronous>, transform_indices = @transform_3, window_bounds = array<i64: 512, 256>}, {pipeline_mode = #tpu.pipeline_mode<synchronous>, transform_indices = @transform_4, window_bounds = array<i64: 1, 256>}, {transform_indices = @transform_5, window_bounds = array<i64: 64, 256>}]} {
    %c0 = arith.constant 0 : index
    %c0_0 = arith.constant 0 : index
    %0 = vector.load %arg1[%c0, %c0_0] : memref<64x256xf32, #tpu.memory_space<vmem>>, vector<64x256xf32>
    %1 = arith.truncf %0 : vector<64x256xf32> to vector<64x256xbf16>
    %c0_1 = arith.constant 0 : index
    %c0_2 = arith.constant 0 : index
    %2 = vector.load %arg2[%c0_1, %c0_2] : memref<256x512xbf16, #tpu.memory_space<vmem>>, vector<256x512xbf16>
    %cst = arith.constant dense<0.000000e+00> : vector<64x512xf32>
    %3 = tpu.matmul %1, %2, %cst {dimension_numbers = #tpu.dot_dimension_numbers<[1], [0], [0], [1], [0, 0, 1, 1], [], []>} : vector<64x256xbf16>, vector<256x512xbf16>, vector<64x512xf32> -> vector<64x512xf32>
    %c0_3 = arith.constant 0 : index
    %c0_4 = arith.constant 0 : index
    %4 = vector.load %arg3[%c0_3, %c0_4] : memref<1x512xf32, #tpu.memory_space<vmem>>, vector<1x512xf32>
    %5 = vector.broadcast %4 : vector<1x512xf32> to vector<64x512xf32>
    %6 = arith.addf %3, %5 : vector<64x512xf32>
    %7 = arith.mulf %6, %6 : vector<64x512xf32>
    %8 = arith.mulf %6, %7 : vector<64x512xf32>
    %cst_5 = arith.constant 4.471500e-02 : f32
    %9 = vector.broadcast %cst_5 : f32 to vector<64x512xf32>
    %10 = arith.mulf %9, %8 : vector<64x512xf32>
    %11 = arith.addf %6, %10 : vector<64x512xf32>
    %cst_6 = arith.constant 0.797884583 : f32
    %12 = vector.broadcast %cst_6 : f32 to vector<64x512xf32>
    %13 = arith.mulf %12, %11 : vector<64x512xf32>
    %14 = math.tanh %13 : vector<64x512xf32>
    %cst_7 = arith.constant 1.000000e+00 : f32
    %15 = vector.broadcast %cst_7 : f32 to vector<64x512xf32>
    %16 = arith.addf %15, %14 : vector<64x512xf32>
    %cst_8 = arith.constant 5.000000e-01 : f32
    %17 = vector.broadcast %cst_8 : f32 to vector<64x512xf32>
    %18 = arith.mulf %17, %16 : vector<64x512xf32>
    %19 = arith.mulf %6, %18 : vector<64x512xf32>
    %c0_9 = arith.constant 0 : index
    %c0_10 = arith.constant 0 : index
    %20 = vector.load %arg7[%c0_9, %c0_10] : memref<64x512xf32, #tpu.memory_space<vmem>>, vector<64x512xf32>
    tpu.vector_store %arg7[%c0_9, %c0_10], %19 {strides = array<i32>} : memref<64x512xf32, #tpu.memory_space<vmem>>, vector<64x512xf32>,
    %c0_11 = arith.constant 0 : index
    %c0_12 = arith.constant 0 : index
    %21 = vector.load %arg7[%c0_11, %c0_12] : memref<64x512xf32, #tpu.memory_space<vmem>>, vector<64x512xf32>
    %22 = arith.truncf %21 : vector<64x512xf32> to vector<64x512xbf16>
    %c0_13 = arith.constant 0 : index
    %c0_14 = arith.constant 0 : index
    %23 = vector.load %arg4[%c0_13, %c0_14] : memref<512x256xbf16, #tpu.memory_space<vmem>>, vector<512x256xbf16>
    %cst_15 = arith.constant dense<0.000000e+00> : vector<64x256xf32>
    %24 = tpu.matmul %22, %23, %cst_15 {dimension_numbers = #tpu.dot_dimension_numbers<[1], [0], [0], [1], [0, 0, 1, 1], [], []>} : vector<64x512xbf16>, vector<512x256xbf16>, vector<64x256xf32> -> vector<64x256xf32>
    %c0_16 = arith.constant 0 : index
    %c0_17 = arith.constant 0 : index
    %25 = vector.load %arg5[%c0_16, %c0_17] : memref<1x256xf32, #tpu.memory_space<vmem>>, vector<1x256xf32>
    %26 = vector.broadcast %25 : vector<1x256xf32> to vector<64x256xf32>
    %27 = arith.addf %24, %26 : vector<64x256xf32>
    %c0_18 = arith.constant 0 : index
    %c0_19 = arith.constant 0 : index
    %28 = vector.load %arg6[%c0_18, %c0_19] : memref<64x256xf32, #tpu.memory_space<vmem>>, vector<64x256xf32>
    tpu.vector_store %arg6[%c0_18, %c0_19], %27 {strides = array<i32>} : memref<64x256xf32, #tpu.memory_space<vmem>>, vector<64x256xf32>,
    return
  }
  func.func @transform_0(%arg0: i32) -> (i32, i32) {
    %c0_i32 = arith.constant 0 : i32
    %c0_i32_0 = arith.constant 0 : i32
    return %arg0, %c0_i32 : i32, i32
  }
  func.func @transform_1(%arg0: i32) -> (i32, i32) {
    %c0_i32 = arith.constant 0 : i32
    %c0_i32_0 = arith.constant 0 : i32
    %c0_i32_1 = arith.constant 0 : i32
    return %c0_i32, %c0_i32_0 : i32, i32
  }
  func.func @transform_2(%arg0: i32) -> (i32, i32) {
    %c0_i32 = arith.constant 0 : i32
    %c0_i32_0 = arith.constant 0 : i32
    %c0_i32_1 = arith.constant 0 : i32
    return %c0_i32, %c0_i32_0 : i32, i32
  }
  func.func @transform_3(%arg0: i32) -> (i32, i32) {
    %c0_i32 = arith.constant 0 : i32
    %c0_i32_0 = arith.constant 0 : i32
    %c0_i32_1 = arith.constant 0 : i32
    return %c0_i32, %c0_i32_0 : i32, i32
  }
  func.func @transform_4(%arg0: i32) -> (i32, i32) {
    %c0_i32 = arith.constant 0 : i32
    %c0_i32_0 = arith.constant 0 : i32
    %c0_i32_1 = arith.constant 0 : i32
    return %c0_i32, %c0_i32_0 : i32, i32
  }
  func.func @transform_5(%arg0: i32) -> (i32, i32) {
    %c0_i32 = arith.constant 0 : i32
    %c0_i32_0 = arith.constant 0 : i32
    return %arg0, %c0_i32 : i32, i32
  }
}

</mosaic_0001>

<bundles_post_ra>
// kernel: tpu_custom_call.1
= control target key start
LH: loop header
LB: loop body
LE: loop exit
PB: predicated region body
PF: predicated region fallthrough
CT: control target
= control target key end

     0   :  { %10 = vsyncpa [#allocation4], 0  ;;  %s3180_s0 = inlined_call_operand.hbm [shape: f32[256,256], index: 0, kind: input, shape index: {}]   ;;  %s3181_s1 = inlined_call_operand.hbm [shape: bf16[256,512], index: 1, kind: input, shape index: {}]   ;;  %s3182_s2 = inlined_call_operand.vmem [shape: f32[1,512], index: 2, kind: input, shape index: {}]   ;;  %s3183_s3 = inlined_call_operand.hbm [shape: bf16[512,256], index: 3, kind: input, shape index: {}]   ;;  %s3184_s4 = inlined_call_operand.vmem [shape: f32[1,256], index: 4, kind: input, shape index: {}]   ;;  %s3185_s5 = inlined_call_operand.hbm [shape: f32[256,256], index: 5, kind: output, shape index: {}]  }
   0x1   :  { %12 = vsyncpa [#allocation4 + $0x1], 0 }
   0x2   :  { %13 = vsyncpa [#allocation7], 0 }
   0x3   :  { %14 = vsyncpa [#allocation5], 0 }
   0x4   :  { %16 = vsyncpa [#allocation5 + $0x1], 0  ;;  %s2595_s18 = smov 0   ;;  %s2597_s19 = smov 0  }
   0x5   :  { %s2599_s20 = smov 0   ;;  %s2601_s21 = smov 0  }
   0x6 LB: > { %s2616_s22 = sadd.s32 4294967295, %s2553_s21   ;;  %s1884_s23 = sadd.s32 4294967294, %s2553_s21   ;;  %s2553_s21 = sphi %s2601_s21, %s3204_s21   ;;  %s2549_s20 = sphi %s2599_s20, %s3203_s20   ;;  %s2545_s19 = sphi %s2597_s19, %s3202_s19   ;;  %s2541_s18 = sphi %s2595_s18, %s3201_s18  }
   0x7   : > { %p42_p0 = scmp.ne.s32.totalorder %s2545_s19, %s2541_s18  ;;  %p3186_p1 = scmp.eq.s32.totalorder %s2616_s22, 0 }
   0x8   : > { %p156_p3 = scmp.eq.s32.totalorder %s1884_s23, 3  ;;  %p1885_p5 = scmp.ge.s32.totalorder %s2553_s21, 1 }
   0x9   : > { %p2625_p4 = por %p3186_p1, %p42_p0  ;;  %p163_p7 = scmp.lt.s32.totalorder %s2553_s21, 5 }
   0xa   : > { %p2630_p6 = por %p156_p3, %p42_p0  ;;  %s2555_s27 = smov [#allocation6]  }
   0xb   : > { %s3189_s24 = scalar_select %p2625_p4, 1, 0 }
   0xc   : > { %s3190_s25 = scalar_select %p2630_p6, 1, 0 }
   0xd   : > { %p2635_p8 = pnand %p1885_p5, %p163_p7  ;;  %s175_s28 = sshll.u32 %s2555_s27, 4  ;;  %s176_s28 = int_to_ptr.vmem [resolvable:$true] %s175_s28 }
   0xe   : > { %s2556_s30 = smov [#allocation8]   ;;  %s2397_s9 = scalar_lea.hbm %s3181_s1, 8192 }
   0xf   : > { %s3191_s26 = scalar_select %p2635_p8, 1, 0 }
  0x10   : > { %p2080_p9 = pneg %p2635_p8  ;;  %s191_s6 = sshll.u32 %s2556_s30, 4  ;;  %s2647_s6 = int_to_ptr.vmem [resolvable:$true] %s191_s6 }
  0x11   : > { %p2398_p11 = scmp.ne.s32.totalorder %s3181_s1, %s2397_s9  ;;  %p2404_p3 = scmp.lt.u32.totalorder %s2397_s9, %s3181_s1 }
  0x12   : > { %p2643_p10 = pnand %p2080_p9, %p3186_p1 }
  0x14   : > { %p2399_p12 = pneg %p2643_p10 }
  0x16   : > { %p2400_p13 = pnand %p2399_p12, %p2398_p11 }
  0x18   : > { %p2401_p0 = pneg %p2400_p13 }
  0x1a   : > { %p2406_p5 = pnand %p2404_p3, %p2401_p0 }
  0x1c   : > { %2409 = shalt.err (!%p2406_p5)
}
  0x1d   : > { %s2410_s14 = scalar_lea.vmem %s176_s28, 8192  ;;  %p2418_p2 = scmp.lt.s32.totalorder %s176_s28, %s176_s28 }
  0x1e   : > { %p2411_p7 = scmp.ne.s32.totalorder %s176_s28, %s2410_s14  ;;  %p2419_p6 = scmp.lt.s32.totalorder %s2410_s14, %s2410_s14 }
  0x20   : > { %p2413_p9 = pnand %p2411_p7, %p2399_p12  ;;  %p2420_p4 = por %p2419_p6, %p2418_p2 }
  0x22   : > { %p2414_p1 = pneg %p2413_p9 }
  0x24   : > { %p2421_p8 = pnand %p2420_p4, %p2414_p1 }
  0x26   : > { %2424 = shalt.err (!%p2421_p8)
}
  0x27   : > { %s2557_s15 = smov 256   ;;  %s2558_s16 = smov 16  }
  0x28   : > { %2083 = dma.hbm_to_vmem [thread:$0]  (!%p2643_p10), %s3181_s1, 8192, %s176_s28, [#allocation7], %s2557_s15, %s2557_s15, %s2558_s16  }
  0x29   : > { %s2425_s7 = scalar_lea.hbm %s3183_s3, 8192 }
  0x2a   : > { %p2426_p1 = scmp.ne.s32.totalorder %s3183_s3, %s2425_s7  ;;  %p2432_p6 = scmp.lt.u32.totalorder %s2425_s7, %s3183_s3 }
  0x2c   : > { %p2428_p2 = pnand %p2426_p1, %p2399_p12 }
  0x2e   : > { %p2429_p4 = pneg %p2428_p2 }
  0x30   : > { %p2434_p8 = pnand %p2432_p6, %p2429_p4 }
  0x32   : > { %2437 = shalt.err (!%p2434_p8)
}
  0x33   : > { %s2438_s28 = scalar_lea.vmem %s2647_s6, 8192  ;;  %p2446_p3 = scmp.lt.s32.totalorder %s2647_s6, %s2647_s6 }
  0x34   : > { %p2439_p11 = scmp.ne.s32.totalorder %s2647_s6, %s2438_s28  ;;  %p2447_p5 = scmp.lt.s32.totalorder %s2438_s28, %s2438_s28 }
  0x36   : > { %p2441_p13 = pnand %p2439_p11, %p2399_p12  ;;  %p2448_p7 = por %p2447_p5, %p2446_p3 }
  0x38   : > { %p2442_p0 = pneg %p2441_p13 }
  0x3a   : > { %p2449_p9 = pnand %p2448_p7, %p2442_p0 }
  0x3c   : > { %2452 = shalt.err (!%p2449_p9)
}
  0x3d   : > { %s2559_s12 = smov 128   ;;  %s2560_s13 = smov 8  }
  0x3e   : > { %2086 = dma.hbm_to_vmem [thread:$0]  (!%p2643_p10), %s3183_s3, 8192, %s2647_s6, [#allocation7], %s2559_s12, %s2559_s12, %s2560_s13  }
  0x3f   : > { %s2700_s23 = sadd.s32 1, %s2553_s21   ;;  %s29_s30 = sadd.s32 1, %s2549_s20 }
  0x40   : > { %s26_s27 = ssub.s32 %s2553_s21, %s2700_s23  ;;  %p36_p1 = scmp.ne.s32.totalorder %s2549_s20, %s2545_s19 }
  0x41   : > { %p27_p12 = scmp.eq.s32.totalorder %s26_s27, 0  ;;  %p37_p2 = scmp.eq.s32.totalorder %s2553_s21, 0 }
  0x42   : > { %p3193_p6 = scmp.eq.s32.totalorder %s2616_s22, 3  ;;  %p2097_p11 = scmp.lt.s32.totalorder %s2553_s21, 4 }
  0x43   : > { %s2709_s7 = scalar_select %p27_p12, %s2549_s20, %s29_s30  }
  0x44   : > { %p38_p4 = por %p37_p2, %p36_p1  ;;  %p2713_p8 = por %p3193_p6, %p36_p1 }
  0x45   : > { %s208_s29 = sand.u32 1, %s2549_s20   ;;  %s2033_s6 = sshll.u32 %s2553_s21, 11 }
  0x46   : > { %s1889_s9 = sshll.u32 %s208_s29, 7  ;;  %s2723_s28 = scalar_lea.hbm %s3180_s0, %s2033_s6 }
  0x47   : > { %s212_s12 = scalar_lea.vmem [#allocation3], %s1889_s9  ;;  %p2727_p10 = pnand %p2097_p11, %p38_p4 }
  0x48   : > { %s220_s13 = sshll.u32 %s212_s12, 4  ;;  %s2731_s17 = scalar_lea.sflag [#allocation4], %s208_s29  ;;  %s2725_s13 = int_to_ptr.vmem [resolvable:$true] %s220_s13 }
  0x49   : > { %s2453_s27 = scalar_lea.hbm %s2723_s28, 2048  ;;  %p2455_p0 = pneg %p2727_p10 }
  0x4a   : > { %p2454_p13 = scmp.ne.s32.totalorder %s2723_s28, %s2453_s27  ;;  %s2458_s6 = scalar_lea.hbm %s3180_s0, 8192 }
  0x4b   : > { %p2459_p7 = scmp.lt.u32.totalorder %s2723_s28, %s3180_s0  ;;  %p2460_p9 = scmp.lt.u32.totalorder %s2458_s6, %s2453_s27 }
  0x4c   : > { %p2456_p3 = pnand %p2455_p0, %p2454_p13  ;;  %p2462_p1 = scmp.lt.u32.totalorder %s2453_s27, %s2723_s28 }
  0x4d   : > { %p2461_p12 = por %p2460_p9, %p2459_p7 }
  0x4e   : > { %p2457_p5 = pneg %p2456_p3 }
  0x4f   : > { %p2463_p2 = por %p2462_p1, %p2461_p12 }
  0x51   : > { %p2464_p4 = pnand %p2463_p2, %p2457_p5 }
  0x53   : > { %2467 = shalt.err (!%p2464_p4)
}
  0x54   : > { %s2468_s29 = scalar_lea.vmem %s2725_s13, 2048  ;;  %s2561_s12 = smov [#allocation3]  }
  0x55   : > { %p2469_p6 = scmp.ne.s32.totalorder %s2725_s13, %s2468_s29  ;;  %s2473_s30 = sshll.u32 %s2561_s12, 4  ;;  %s2474_s30 = int_to_ptr.vmem [resolvable:$false] %s2473_s30 }
  0x56   : > { %s2475_s9 = scalar_lea.vmem %s2474_s30, 4096  ;;  %p2476_p3 = scmp.lt.s32.totalorder %s2725_s13, %s2474_s30 }
  0x57   : > { %p2471_p11 = pnand %p2469_p6, %p2455_p0  ;;  %p2477_p7 = scmp.lt.s32.totalorder %s2475_s9, %s2468_s29 }
  0x59   : > { %p2472_p13 = pneg %p2471_p11  ;;  %p2478_p9 = por %p2477_p7, %p2476_p3 }
  0x5b   : > { %p2479_p12 = pnand %p2478_p9, %p2472_p13 }
  0x5d   : > { %2482 = shalt.err (!%p2479_p12)
}
  0x5e   : > { %2090 = dma.hbm_to_vmem [thread:$0]  (!%p2727_p10), %s2723_s28, 2048, %s2725_s13, %s2731_s17, %s2557_s15, %s2557_s15, %s2558_s16  }
  0x5f   : > { %p3196_p0 = scmp.ne.s32.totalorder %s3191_s26, 0 }
  0x60   : > { %s2765_s27 = sand.u32 (!%p3196_p0), 1, %s2545_s19   ;;  %p3197_p5 = scmp.ne.s32.totalorder (!%p3196_p0), %s3189_s24, 0 }
  0x61   : > { %232 = sbr.rel (%p3196_p0) target bundleno = 745 (0x2e9), region = 40  ;;  %s1894_s6 = sshll.u32 (!%p3196_p0), %s2765_s27, 7 }
  0x62   : > { %s235_s10 = scalar_lea.sflag (!%p3196_p0), [#allocation4], %s2765_s27  ;;  %s2771_s14 = scalar_lea.vmem (!%p3196_p0), [#allocation3], %s1894_s6 }
  0x68   : > { %2528 = dma.done.wait (%p3197_p5), %s235_s10, 2048  }
  0x69   : > { %2530 = vsyncadd (%p3197_p5), %s235_s10, 4294965248  ;;  %p3198_p10 = scmp.eq.s32.totalorder %s2616_s22, 0 }
  0x6b   : > { %2532 = dma.done.wait (%p3198_p10), [#allocation7], 16384   ;;  %p3199_p1 = pmov %p3198_p10 }
  0x6c   : > { %v2141_v0 = vld [vmem:[#allocation6 + $0x4] ss:$16 sps:$4 sm:$0xff]   ;;  %v2143_v1 = vld [vmem:[#allocation6] ss:$16 sps:$4 sm:$0xff]   ;;  %v276_v13 = vld [vmem:[%s2771_s14 + $0x8] sm:$0xff]  ;;  %s3112_s28 = scalar_lea.vmem [#allocation9], %s1894_s6 }
  0x6d   : > { %2534 = vsyncadd (%p3199_p1), [#allocation7], 4294950912  ;;  %705 = vmatprep.subr.bf16.mxu1 %v2141_v0  ;;  %v2144_v2 = vld [vmem:[#allocation6 + $0x24] ss:$16 sps:$4 sm:$0xff]   ;;  %v2146_v3 = vld [vmem:[#allocation6 + $0x20] ss:$16 sps:$4 sm:$0xff]  }
  0x6e   : > { %706 = vmatpush1.bf16.msra.mxu1 %v2143_v1  ;;  %v2147_v4 = vld [vmem:[#allocation6 + $0x44] ss:$16 sps:$4 sm:$0xff]   ;;  %v2149_v5 = vld [vmem:[#allocation6 + $0x40] ss:$16 sps:$4 sm:$0xff]   ;;  %v278_v14 = vld [vmem:[%s2771_s14 + $0x18] sm:$0xff]  ;;  %s2035_s13 = sshll.u32 %s2616_s22, 11 }
  0x6f   : > { %707 = vmatprep.subr.bf16.mxu1 %v2144_v2  ;;  %v2150_v6 = vld [vmem:[#allocation6 + $0x64] ss:$16 sps:$4 sm:$0xff]   ;;  %v2152_v7 = vld [vmem:[#allocation6 + $0x60] ss:$16 sps:$4 sm:$0xff]   ;;  %v2783_v15 = vpack.c.bf16 %v278_v14, %v276_v13  ;;  %v2191_v45 = vld [vmem:[#allocation6 + $0xc] ss:$16 sps:$4 sm:$0xff]   ;;  %s3132_s12 = scalar_lea.hbm %s3185_s5, %s2035_s13 }
  0x70   : > { %v2153_v8 = vld [vmem:[#allocation6 + $0x84] ss:$16 sps:$4 sm:$0xff]   ;;  %v2155_v9 = vld [vmem:[#allocation6 + $0x80] ss:$16 sps:$4 sm:$0xff]   ;;  %v280_v46 = vld [vmem:[%s2771_s14 + $0x28] sm:$0xff]  ;;  %s1792_s17 = sshll.u32 %s3112_s28, 4  ;;  %s3134_s17 = int_to_ptr.vmem [resolvable:$true] %s1792_s17 }
  0x71   : > { %v2156_v10 = vld [vmem:[#allocation6 + $0xa4] ss:$16 sps:$4 sm:$0xff]   ;;  %v2158_v11 = vld [vmem:[#allocation6 + $0xa0] ss:$16 sps:$4 sm:$0xff]   ;;  %737 = vmatprep.mubr.bf16.mxu1 %v2783_v15  ;;  %v282_v47 = vld [vmem:[%s2771_s14 + $0x38] sm:$0xff]  ;;  %s1778_s22 = scalar_lea.sflag [#allocation5], %s2765_s27 }
  0x72   : > { %708 = vmatpush1.bf16.msra.mxu1 %v2146_v3  ;;  %v2159_v12 = vld [vmem:[#allocation6 + $0xc4] ss:$16 sps:$4 sm:$0xff]   ;;  %v2161_v16 = vld [vmem:[#allocation6 + $0xc0] ss:$16 sps:$4 sm:$0xff]   ;;  %v2189_v49 = vld [vmem:[#allocation6 + $0x8] ss:$16 sps:$4 sm:$0xff]   ;;  %v2792_v53 = vpack.c.bf16 %v282_v47, %v280_v46 }
  0x73   : > { %709 = vmatprep.subr.bf16.mxu1 %v2147_v4  ;;  %v2162_v17 = vld [vmem:[#allocation6 + $0xe4] ss:$16 sps:$4 sm:$0xff]   ;;  %v2164_v18 = vld [vmem:[#allocation6 + $0xe0] ss:$16 sps:$4 sm:$0xff]   ;;  %v2194_v51 = vld [vmem:[#allocation6 + $0x2c] ss:$16 sps:$4 sm:$0xff]  }
  0x74   : > { %v2165_v19 = vld [vmem:[#allocation6 + $0x104] ss:$16 sps:$4 sm:$0xff]   ;;  %v2167_v20 = vld [vmem:[#allocation6 + $0x100] ss:$16 sps:$4 sm:$0xff]   ;;  %v2192_v55 = vld [vmem:[#allocation6 + $0x28] ss:$16 sps:$4 sm:$0xff]  }
  0x75   : > { %v2168_v21 = vld [vmem:[#allocation6 + $0x124] ss:$16 sps:$4 sm:$0xff]   ;;  %v2170_v22 = vld [vmem:[#allocation6 + $0x120] ss:$16 sps:$4 sm:$0xff]   ;;  %v2197_v58 = vld [vmem:[#allocation6 + $0x4c] ss:$16 sps:$4 sm:$0xff]  }
  0x76   : > { %710 = vmatpush1.bf16.msra.mxu1 %v2149_v5  ;;  %v2171_v23 = vld [vmem:[#allocation6 + $0x144] ss:$16 sps:$4 sm:$0xff]   ;;  %v2173_v24 = vld [vmem:[#allocation6 + $0x140] ss:$16 sps:$4 sm:$0xff]   ;;  %v284_v59 = vld [vmem:[%s2771_s14 + $0x48] sm:$0xff]  ;;  %s2483_s30 = scalar_lea.vmem %s3134_s17, 2048 }
  0x77   : > { %711 = vmatprep.subr.bf16.mxu1 %v2150_v6  ;;  %v2174_v25 = vld [vmem:[#allocation6 + $0x164] ss:$16 sps:$4 sm:$0xff]   ;;  %v2176_v26 = vld [vmem:[#allocation6 + $0x160] ss:$16 sps:$4 sm:$0xff]   ;;  %v286_v60 = vld [vmem:[%s2771_s14 + $0x58] sm:$0xff]  ;;  %p2484_p2 = scmp.ne.s32.totalorder %s3134_s17, %s2483_s30  ;;  %s2562_s9 = smov [#allocation9]  }
  0x78   : > { %v2177_v27 = vld [vmem:[#allocation6 + $0x184] ss:$16 sps:$4 sm:$0xff]   ;;  %v2179_v28 = vld [vmem:[#allocation6 + $0x180] ss:$16 sps:$4 sm:$0xff]   ;;  %v2195_v63 = vld [vmem:[#allocation6 + $0x48] ss:$16 sps:$4 sm:$0xff]   ;;  %v2802_v3 = vpack.c.bf16 %v286_v60, %v284_v59 }
  0x79   : > { %v2180_v29 = vld [vmem:[#allocation6 + $0x1a4] ss:$16 sps:$4 sm:$0xff]   ;;  %v2239_v31 = vld [vmem:[#allocation8] ss:$8 sps:$4 sm:$0xff]   ;;  %v2242_v35 = vld [vmem:[#allocation8 + $0x10] ss:$8 sps:$4 sm:$0xff]   ;;  %p2485_p4 = pnand %p2484_p2, %p2713_p8 }
  0x7a   : > { %712 = vmatpush1.bf16.msra.mxu1 %v2152_v7  ;;  %v2237_v30 = vld [vmem:[#allocation8 + $0x4] ss:$8 sps:$4 sm:$0xff]   ;;  %v2182_v32 = vld [vmem:[#allocation6 + $0x1a0] ss:$16 sps:$4 sm:$0xff]   ;;  %v2240_v33 = vld [vmem:[#allocation8 + $0x14] ss:$8 sps:$4 sm:$0xff]  }
  0x7b   : > { %713 = vmatprep.subr.bf16.mxu1 %v2153_v8  ;;  %1615 = vmatprep.subr.bf16.mxu0 %v2237_v30  ;;  %v2183_v34 = vld [vmem:[#allocation6 + $0x1c4] ss:$16 sps:$4 sm:$0xff]   ;;  %v2185_v37 = vld [vmem:[#allocation6 + $0x1c0] ss:$16 sps:$4 sm:$0xff]   ;;  %v2200_v1 = vld [vmem:[#allocation6 + $0x6c] ss:$16 sps:$4 sm:$0xff]   ;;  %p2486_p6 = pneg %p2485_p4 }
  0x7c   : > { %1616 = vmatpush1.bf16.msra.mxu0 %v2239_v31  ;;  %v2243_v36 = vld [vmem:[#allocation8 + $0x24] ss:$8 sps:$4 sm:$0xff]   ;;  %v2245_v39 = vld [vmem:[#allocation8 + $0x20] ss:$8 sps:$4 sm:$0xff]   ;;  %v2246_v40 = vld [vmem:[#allocation8 + $0x34] ss:$8 sps:$4 sm:$0xff]  }
  0x7d   : > { %1617 = vmatprep.subr.bf16.mxu0 %v2240_v33  ;;  %v2186_v38 = vld [vmem:[#allocation6 + $0x1e4] ss:$16 sps:$4 sm:$0xff]   ;;  %v2188_v41 = vld [vmem:[#allocation6 + $0x1e0] ss:$16 sps:$4 sm:$0xff]   ;;  %v2198_v4 = vld [vmem:[#allocation6 + $0x68] ss:$16 sps:$4 sm:$0xff]  }
  0x7e   : > { %714 = vmatpush1.bf16.msra.mxu1 %v2155_v9  ;;  %v275_v42 = vld [vmem:[%s2771_s14] sm:$0xff]  ;;  %v277_v43 = vld [vmem:[%s2771_s14 + $0x10] sm:$0xff]  ;;  %v2203_v7 = vld [vmem:[#allocation6 + $0x8c] ss:$16 sps:$4 sm:$0xff]   ;;  %s2487_s6 = sshll.u32 %s2562_s9, 4  ;;  %s2488_s6 = int_to_ptr.vmem [resolvable:$false] %s2487_s6 }
  0x7f   : > { %715 = vmatprep.subr.bf16.mxu1 %v2156_v10  ;;  %v2248_v44 = vld [vmem:[#allocation8 + $0x30] ss:$8 sps:$4 sm:$0xff]   ;;  %v2249_v48 = vld [vmem:[#allocation8 + $0x44] ss:$8 sps:$4 sm:$0xff]   ;;  %v2790_v50 = vpack.c.bf16 %v277_v43, %v275_v42  ;;  %v2251_v52 = vld [vmem:[#allocation8 + $0x40] ss:$8 sps:$4 sm:$0xff]   ;;  %p2490_p11 = scmp.lt.s32.totalorder %s3134_s17, %s2488_s6 }
  0x80   : > { %1618 = vmatpush1.bf16.msra.mxu0 %v2242_v35  ;;  %v2252_v54 = vld [vmem:[#allocation8 + $0x54] ss:$8 sps:$4 sm:$0xff]   ;;  %v279_v56 = vld [vmem:[%s2771_s14 + $0x20] sm:$0xff]  ;;  %v2254_v61 = vld [vmem:[#allocation8 + $0x50] ss:$8 sps:$4 sm:$0xff]   ;;  %s2489_s10 = scalar_lea.vmem %s2488_s6, 4096 }
  0x81   : > { %1619 = vmatprep.subr.bf16.mxu0 %v2243_v36  ;;  %v281_v57 = vld [vmem:[%s2771_s14 + $0x30] sm:$0xff]  ;;  %v2255_v62 = vld [vmem:[#allocation8 + $0x64] ss:$8 sps:$4 sm:$0xff]   ;;  %v2257_v2 = vld [vmem:[#allocation8 + $0x60] ss:$8 sps:$4 sm:$0xff]   ;;  %p2491_p13 = scmp.lt.s32.totalorder %s2489_s10, %s2483_s30 }
  0x82   : > { %716 = vmatpush1.bf16.msra.mxu1 %v2158_v11  ;;  %v2800_v0 = vpack.c.bf16 %v281_v57, %v279_v56  ;;  %v283_v5 = vld [vmem:[%s2771_s14 + $0x40] sm:$0xff]  ;;  %v285_v6 = vld [vmem:[%s2771_s14 + $0x50] sm:$0xff]  ;;  %v288_v8 = vld [vmem:[%s2771_s14 + $0x68] sm:$0xff]  ;;  %v365_v57 = vlaneseq }
  0x83   : > { %717 = vmatprep.subr.bf16.mxu1 %v2159_v12  ;;  %v290_v9 = vld [vmem:[%s2771_s14 + $0x78] sm:$0xff]  ;;  %v295_v10 = vpack.c.bf16 %v285_v6, %v283_v5  ;;  %v2287_v56 = vld [vmem:[#allocation8 + $0x104] ss:$8 sps:$4 sm:$0xff]   ;;  %v2823_v60 = vld [vmem:[%s3182_s2] sm:$0xf]  ;;  %p2492_p3 = por %p2491_p13, %p2490_p11 }
  0x84   : > { %1620 = vmatpush1.bf16.msra.mxu0 %v2245_v39  ;;  %v2201_v11 = vld [vmem:[#allocation6 + $0x88] ss:$16 sps:$4 sm:$0xff]   ;;  %v298_v12 = vpack.c.bf16 %v290_v9, %v288_v8  ;;  %v2206_v13 = vld [vmem:[#allocation6 + $0xac] ss:$16 sps:$4 sm:$0xff]  }
  0x85   : > { %1621 = vmatprep.subr.bf16.mxu0 %v2246_v40  ;;  %v2204_v14 = vld [vmem:[#allocation6 + $0xa8] ss:$16 sps:$4 sm:$0xff]   ;;  %v2227_v31 = vld [vmem:[#allocation6 + $0x18c] ss:$16 sps:$4 sm:$0xff]   ;;  %p2493_p7 = pnand %p2492_p3, %p2486_p6 }
  0x86   : > { %718 = vmatpush1.bf16.msra.mxu1 %v2161_v16  ;;  %v287_v16 = vld [vmem:[%s2771_s14 + $0x60] sm:$0xff]  ;;  %v2222_v30 = vld [vmem:[#allocation6 + $0x168] ss:$16 sps:$4 sm:$0xff]   ;;  %v2236_v36 = vld [vmem:[#allocation6 + $0x1ec] ss:$16 sps:$4 sm:$0xff]  }
  0x87   : > { %719 = vmatprep.subr.bf16.mxu1 %v2162_v17  ;;  %v289_v17 = vld [vmem:[%s2771_s14 + $0x70] sm:$0xff]  ;;  %v2228_v33 = vld [vmem:[#allocation6 + $0x1a8] ss:$16 sps:$4 sm:$0xff]   ;;  %v2261_v40 = vld [vmem:[#allocation8 + $0x84] ss:$8 sps:$4 sm:$0xff]  }
  0x88   : > { %1622 = vmatpush1.bf16.msra.mxu0 %v2248_v44  ;;  %v2231_v35 = vld [vmem:[#allocation6 + $0x1c8] ss:$16 sps:$4 sm:$0xff]   ;;  %v2264_v42 = vld [vmem:[#allocation8 + $0x94] ss:$8 sps:$4 sm:$0xff]   ;;  %v2267_v44 = vld [vmem:[#allocation8 + $0xa4] ss:$8 sps:$4 sm:$0xff]  }
  0x89   : > { %1623 = vmatprep.subr.bf16.mxu0 %v2249_v48  ;;  %v2260_v39 = vld [vmem:[#allocation8 + $0x70] ss:$8 sps:$4 sm:$0xff]   ;;  %v2270_v46 = vld [vmem:[#allocation8 + $0xb4] ss:$8 sps:$4 sm:$0xff]   ;;  %v2273_v48 = vld [vmem:[#allocation8 + $0xc4] ss:$8 sps:$4 sm:$0xff]  }
  0x8a   : > { %720 = vmatpush1.bf16.msra.mxu1 %v2164_v18  ;;  %v2209_v18 = vld [vmem:[#allocation6 + $0xcc] ss:$16 sps:$4 sm:$0xff]   ;;  %v2266_v43 = vld [vmem:[#allocation8 + $0x90] ss:$8 sps:$4 sm:$0xff]  }
  0x8b   : > { %721 = vmatprep.subr.bf16.mxu1 %v2165_v19  ;;  %v297_v19 = vpack.c.bf16 %v289_v17, %v287_v16  ;;  %v2272_v47 = vld [vmem:[#allocation8 + $0xb0] ss:$8 sps:$4 sm:$0xff]  }
  0x8c   : > { %1624 = vmatpush1.bf16.msra.mxu0 %v2251_v52  ;;  %v2279_v52 = vld [vmem:[#allocation8 + $0xe4] ss:$8 sps:$4 sm:$0xff]  }
  0x8d   : > { %1625 = vmatprep.subr.bf16.mxu0 %v2252_v54  ;;  %v2282_v54 = vld [vmem:[#allocation8 + $0xf4] ss:$8 sps:$4 sm:$0xff]  }
  0x8e   : > { %722 = vmatpush1.bf16.msra.mxu1 %v2167_v20  ;;  %v2207_v20 = vld [vmem:[#allocation6 + $0xc8] ss:$16 sps:$4 sm:$0xff]  }
  0x8f   : > { %723 = vmatprep.subr.bf16.mxu1 %v2168_v21  ;;  %v2212_v21 = vld [vmem:[#allocation6 + $0xec] ss:$16 sps:$4 sm:$0xff]  }
  0x90   : > { %1626 = vmatpush1.bf16.msra.mxu0 %v2254_v61 }
  0x91   : > { %1627 = vmatprep.subr.bf16.mxu0 %v2255_v62 }
  0x92   : > { %724 = vmatpush1.bf16.msra.mxu1 %v2170_v22  ;;  %v2210_v22 = vld [vmem:[#allocation6 + $0xe8] ss:$16 sps:$4 sm:$0xff]  }
  0x93   : > { %725 = vmatprep.subr.bf16.mxu1 %v2171_v23  ;;  %v2215_v23 = vld [vmem:[#allocation6 + $0x10c] ss:$16 sps:$4 sm:$0xff]  }
  0x94   : > { %1628 = vmatpush1.bf16.msra.mxu0 %v2257_v2 }
  0x96   : > { %726 = vmatpush1.bf16.msra.mxu1 %v2173_v24  ;;  %v2213_v24 = vld [vmem:[#allocation6 + $0x108] ss:$16 sps:$4 sm:$0xff]  }
  0x97   : > { %727 = vmatprep.subr.bf16.mxu1 %v2174_v25  ;;  %v2218_v25 = vld [vmem:[#allocation6 + $0x12c] ss:$16 sps:$4 sm:$0xff]  }
  0x9a   : > { %728 = vmatpush1.bf16.msra.mxu1 %v2176_v26  ;;  %v2216_v26 = vld [vmem:[#allocation6 + $0x128] ss:$16 sps:$4 sm:$0xff]  }
  0x9b   : > { %729 = vmatprep.subr.bf16.mxu1 %v2177_v27  ;;  %v2221_v27 = vld [vmem:[#allocation6 + $0x14c] ss:$16 sps:$4 sm:$0xff]  }
  0x9e   : > { %730 = vmatpush1.bf16.msra.mxu1 %v2179_v28  ;;  %v2219_v28 = vld [vmem:[#allocation6 + $0x148] ss:$16 sps:$4 sm:$0xff]  }
  0x9f   : > { %731 = vmatprep.subr.bf16.mxu1 %v2180_v29  ;;  %v2224_v29 = vld [vmem:[#allocation6 + $0x16c] ss:$16 sps:$4 sm:$0xff]  }
  0xa2   : > { %732 = vmatpush1.bf16.msra.mxu1 %v2182_v32  ;;  %v2230_v32 = vld [vmem:[#allocation6 + $0x1ac] ss:$16 sps:$4 sm:$0xff]  }
  0xa3   : > { %733 = vmatprep.subr.bf16.mxu1 %v2183_v34  ;;  %v2233_v34 = vld [vmem:[#allocation6 + $0x1cc] ss:$16 sps:$4 sm:$0xff]  }
  0xa6   : > { %734 = vmatpush1.bf16.msra.mxu1 %v2185_v37  ;;  %v2234_v37 = vld [vmem:[#allocation6 + $0x1e8] ss:$16 sps:$4 sm:$0xff]  }
  0xa7   : > { %735 = vmatprep.subr.bf16.mxu1 %v2186_v38  ;;  %v2258_v38 = vld [vmem:[#allocation8 + $0x74] ss:$8 sps:$4 sm:$0xff]  }
  0xa8   : > { %1629 = vmatprep.subr.bf16.mxu0 %v2258_v38 }
  0xa9   : > { %1630 = vmatpush1.bf16.msra.mxu0 %v2260_v39 }
  0xaa   : > { %736 = vmatpush1.bf16.msra.mxu1 %v2188_v41  ;;  %v2263_v41 = vld [vmem:[#allocation8 + $0x80] ss:$8 sps:$4 sm:$0xff]   ;;  %1631 = vmatprep.subr.bf16.mxu0 %v2261_v40 }
  0xab   : > { %778 = vmatprep.subr.bf16.mxu1 %v2191_v45  ;;  %v2269_v45 = vld [vmem:[#allocation8 + $0xa0] ss:$8 sps:$4 sm:$0xff]  }
  0xad   : > { %738 = vmatmul.mubr.bf16.vlgmr.msra.gmra.mrb[0].mxu1 %v2790_v50  ;;  %1632 = vmatpush1.bf16.msra.mxu0 %v2263_v41 }
  0xae   : > { %779 = vmatpush1.bf16.msra.mxu1 %v2189_v49  ;;  %747 = vmatprep.mubr.bf16.mxu1 %v2792_v53  ;;  %v2275_v49 = vld [vmem:[#allocation8 + $0xc0] ss:$8 sps:$4 sm:$0xff]  }
  0xaf   : > { %780 = vmatprep.subr.bf16.mxu1 %v2194_v51  ;;  %1633 = vmatprep.subr.bf16.mxu0 %v2264_v42  ;;  %v2278_v51 = vld [vmem:[#allocation8 + $0xd0] ss:$8 sps:$4 sm:$0xff]  }
  0xb1   : > { %1634 = vmatpush1.bf16.msra.mxu0 %v2266_v43 }
  0xb2   : > { %781 = vmatpush1.bf16.msra.mxu1 %v2192_v55  ;;  %1635 = vmatprep.subr.bf16.mxu0 %v2267_v44  ;;  %v2284_v55 = vld [vmem:[#allocation8 + $0xf0] ss:$8 sps:$4 sm:$0xff]  }
  0xb3   : > { %782 = vmatprep.subr.bf16.mxu1 %v2197_v58  ;;  %v2817_v58 = vshrl.u32 %v365_v57, 7 }
  0xb5   : > { %748 = vmatmul.mubr.bf16.gmra.mrb[4].mxu1 %v2800_v0  ;;  %1636 = vmatpush1.bf16.msra.mxu0 %v2269_v45  ;;  %v367_v59 = vsub.s32 0, %v2817_v58  ;;  %v371_v61 = vsub.s32 1, %v2817_v58 }
  0xb6   : > { %783 = vmatpush1.bf16.msra.mxu1 %v2195_v63  ;;  %757 = vmatprep.mubr.bf16.mxu1 %v2802_v3 }
  0xb7   : > { %784 = vmatprep.subr.bf16.mxu1 %v2200_v1  ;;  %1637 = vmatprep.subr.bf16.mxu0 %v2270_v46  ;;  %v2829_v62 = vrot.slane %v2823_v60, %v367_v59  ;;  %v2834_v63 = vrot.slane %v2823_v60, %v371_v61 }
  0xb9   : > { %1638 = vmatpush1.bf16.msra.mxu0 %v2272_v47 }
  0xba   : > { %785 = vmatpush1.bf16.msra.mxu1 %v2198_v4  ;;  %1639 = vmatprep.subr.bf16.mxu0 %v2273_v48 }
  0xbb   : > { %786 = vmatprep.subr.bf16.mxu1 %v2203_v7 }
  0xbd   : > { %758 = vmatmul.mubr.bf16.gmra.mrb[8].mxu1 %v295_v10  ;;  %1640 = vmatpush1.bf16.msra.mxu0 %v2275_v49 }
  0xbe   : > { %787 = vmatpush1.bf16.msra.mxu1 %v2201_v11  ;;  %767 = vmatprep.mubr.bf16.mxu1 %v298_v12 }
  0xbf   : > { %788 = vmatprep.subr.bf16.mxu1 %v2206_v13 }
  0xc2   : > { %789 = vmatpush1.bf16.msra.mxu1 %v2204_v14 }
  0xc3   : > { %790 = vmatprep.subr.bf16.mxu1 %v2209_v18 }
  0xc5   : > { %768 = vmatmul.mubr.bf16.gmra.mrb[12].mxu1 %v297_v19 }
  0xc6   : > { %791 = vmatpush1.bf16.msra.mxu1 %v2207_v20  ;;  %810 = vmatprep.mubr.bf16.mxu1 %v2783_v15  ;;  %v2225_v15 = vld [vmem:[#allocation6 + $0x188] ss:$16 sps:$4 sm:$0xff]  }
  0xc7   : > { %792 = vmatprep.subr.bf16.mxu1 %v2212_v21 }
  0xca   : > { %793 = vmatpush1.bf16.msra.mxu1 %v2210_v22 }
  0xcb   : > { %794 = vmatprep.subr.bf16.mxu1 %v2215_v23 }
  0xce   : > { %795 = vmatpush1.bf16.msra.mxu1 %v2213_v24 }
  0xcf   : > { %796 = vmatprep.subr.bf16.mxu1 %v2218_v25 }
  0xd2   : > { %797 = vmatpush1.bf16.msra.mxu1 %v2216_v26 }
  0xd3   : > { %798 = vmatprep.subr.bf16.mxu1 %v2221_v27 }
  0xd6   : > { %799 = vmatpush1.bf16.msra.mxu1 %v2219_v28 }
  0xd7   : > { %800 = vmatprep.subr.bf16.mxu1 %v2224_v29 }
  0xda   : > { %801 = vmatpush1.bf16.msra.mxu1 %v2222_v30 }
  0xdb   : > { %802 = vmatprep.subr.bf16.mxu1 %v2227_v31 }
  0xde   : > { %803 = vmatpush1.bf16.msra.mxu1 %v2225_v15 }
  0xdf   : > { %804 = vmatprep.subr.bf16.mxu1 %v2230_v32 }
  0xe2   : > { %805 = vmatpush1.bf16.msra.mxu1 %v2228_v33 }
  0xe3   : > { %806 = vmatprep.subr.bf16.mxu1 %v2233_v34 }
  0xe6   : > { %807 = vmatpush1.bf16.msra.mxu1 %v2231_v35 }
  0xe7   : > { %808 = vmatprep.subr.bf16.mxu1 %v2236_v36 }
  0xea   : > { %809 = vmatpush1.bf16.msra.mxu1 %v2234_v37 }
  0xed   : > { %811 = vmatmul.mubr.bf16.vlgmr.msra.gmra.mrb[16].mxu1 %v2790_v50  ;;  %v2276_v50 = vld [vmem:[#allocation8 + $0xd4] ss:$8 sps:$4 sm:$0xff]  }
  0xee   : > { %820 = vmatprep.mubr.bf16.mxu1 %v2792_v53  ;;  %1641 = vmatprep.subr.bf16.mxu0 %v2276_v50  ;;  %v2281_v53 = vld [vmem:[#allocation8 + $0xe0] ss:$8 sps:$4 sm:$0xff]  }
  0xef   : > { %1642 = vmatpush1.bf16.msra.mxu0 %v2278_v51 }
  0xf0   : > { %1643 = vmatprep.subr.bf16.mxu0 %v2279_v52 }
  0xf3   : > { %1644 = vmatpush1.bf16.msra.mxu0 %v2281_v53 }
  0xf4   : > { %1645 = vmatprep.subr.bf16.mxu0 %v2282_v54 }
  0xf5   : > { %821 = vmatmul.mubr.bf16.gmra.mrb[20].mxu1 %v2800_v0 }
  0xf6   : > { %830 = vmatprep.mubr.bf16.mxu1 %v2802_v3 }
  0xf7   : > { %1646 = vmatpush1.bf16.msra.mxu0 %v2284_v55 }
  0xf8   : > { %1688 = vmatprep.subr.bf16.mxu0 %v2287_v56 }
  0xfd   : > { %831 = vmatmul.mubr.bf16.gmra.mrb[24].mxu1 %v295_v10 }
  0xfe   : > { %840 = vmatprep.mubr.bf16.mxu1 %v298_v12 }
 0x105   : > { %841 = vmatmul.mubr.bf16.gmra.mrb[28].mxu1 %v297_v19 }
 0x180   : > { %v739_v0 = vpop.f32.mrb[0].mxu1 }
 0x181   : > { %v2837_v1 = vadd.f32 %v739_v0, %v2829_v62  ;;  %v741_v2 = vpop.f32.mrb[1].mxu1 }
 0x182   : > { %v2840_v3 = vadd.f32 %v741_v2, %v2834_v63  ;;  %v743_v4 = vpop.f32.mrb[2].mxu1 }
 0x183   : > { %v851_v5 = vmul.f32 %v2837_v1, %v2837_v1  ;;  %v2845_v6 = vadd.f32 %v743_v4, %v2829_v62  ;;  %v745_v7 = vpop.f32.mrb[3].mxu1 }
 0x184   : > { %v852_v8 = vmul.f32 %v2840_v3, %v2840_v3  ;;  %v2850_v9 = vadd.f32 %v745_v7, %v2834_v63 }
 0x185   : > { %v883_v10 = vmul.f32 %v851_v5, %v2837_v1  ;;  %v855_v11 = vmul.f32 %v2845_v6, %v2845_v6 }
 0x186   : > { %v884_v12 = vmul.f32 %v852_v8, %v2840_v3  ;;  %v856_v13 = vmul.f32 %v2850_v9, %v2850_v9 }
 0x187   : > { %v915_v14 = vmul.f32 0.044715, %v883_v10  ;;  %v887_v16 = vmul.f32 %v855_v11, %v2845_v6 }
 0x188   : > { %v916_v17 = vmul.f32 0.044715, %v884_v12  ;;  %v888_v18 = vmul.f32 %v856_v13, %v2850_v9  ;;  %v749_v19 = vpop.f32.mrb[4].mxu1 }
 0x189   : > { %v947_v20 = vadd.f32 %v915_v14, %v2837_v1  ;;  %v919_v21 = vmul.f32 0.044715, %v887_v16  ;;  %v2862_v22 = vadd.f32 %v749_v19, %v2829_v62  ;;  %v751_v23 = vpop.f32.mrb[5].mxu1 }
 0x18a   : > { %v920_v24 = vmul.f32 0.044715, %v888_v18  ;;  %v2865_v25 = vadd.f32 %v751_v23, %v2834_v63  ;;  %v753_v26 = vpop.f32.mrb[6].mxu1  ;;  %v948_v27 = vadd.f32 %v916_v17, %v2840_v3 }
 0x18b   : > { %v979_v28 = vmul.f32 0.7978846, %v947_v20  ;;  %v951_v29 = vadd.f32 %v919_v21, %v2845_v6  ;;  %v859_v30 = vmul.f32 %v2862_v22, %v2862_v22  ;;  %v2872_v31 = vadd.f32 %v753_v26, %v2829_v62  ;;  %v755_v15 = vpop.f32.mrb[7].mxu1 }
 0x18c   : > { %v860_v32 = vmul.f32 %v2865_v25, %v2865_v25  ;;  %v2877_v33 = vadd.f32 %v755_v15, %v2834_v63  ;;  %v952_v34 = vadd.f32 %v920_v24, %v2850_v9  ;;  %v980_v35 = vmul.f32 0.7978846, %v948_v27 }
 0x18d   : > { %2333 = vtanh.f32 %v979_v28  ;;  %v983_v36 = vmul.f32 0.7978846, %v951_v29  ;;  %v891_v37 = vmul.f32 %v859_v30, %v2862_v22  ;;  %v863_v38 = vmul.f32 %v2872_v31, %v2872_v31 }
 0x18e   : > { %v892_v39 = vmul.f32 %v860_v32, %v2865_v25  ;;  %v864_v40 = vmul.f32 %v2877_v33, %v2877_v33  ;;  %v984_v41 = vmul.f32 0.7978846, %v952_v34  ;;  %2335 = vtanh.f32 %v980_v35 }
 0x18f   : > { %2337 = vtanh.f32 %v983_v36  ;;  %v923_v42 = vmul.f32 0.044715, %v891_v37  ;;  %v895_v43 = vmul.f32 %v863_v38, %v2872_v31 }
 0x190   : > { %v924_v44 = vmul.f32 0.044715, %v892_v39  ;;  %v896_v45 = vmul.f32 %v864_v40, %v2877_v33  ;;  %v759_v46 = vpop.f32.mrb[8].mxu1  ;;  %2339 = vtanh.f32 %v984_v41 }
 0x191   : > { %v955_v47 = vadd.f32 %v923_v42, %v2862_v22  ;;  %v927_v48 = vmul.f32 0.044715, %v895_v43  ;;  %v2890_v49 = vadd.f32 %v759_v46, %v2829_v62  ;;  %v761_v50 = vpop.f32.mrb[9].mxu1 }
 0x192   : > { %v956_v51 = vadd.f32 %v924_v44, %v2865_v25  ;;  %v928_v52 = vmul.f32 0.044715, %v896_v45  ;;  %v2894_v53 = vadd.f32 %v761_v50, %v2834_v63  ;;  %v763_v54 = vpop.f32.mrb[10].mxu1 }
 0x193   : > { %v987_v55 = vmul.f32 0.7978846, %v955_v47  ;;  %v959_v56 = vadd.f32 %v927_v48, %v2872_v31  ;;  %v867_v57 = vmul.f32 %v2890_v49, %v2890_v49  ;;  %v2900_v0 = vadd.f32 %v763_v54, %v2829_v62  ;;  %v765_v2 = vpop.f32.mrb[11].mxu1 }
 0x194   : > { %v988_v4 = vmul.f32 0.7978846, %v956_v51  ;;  %v960_v5 = vadd.f32 %v928_v52, %v2877_v33  ;;  %v868_v7 = vmul.f32 %v2894_v53, %v2894_v53  ;;  %v2906_v8 = vadd.f32 %v765_v2, %v2834_v63 }
 0x195   : > { %2341 = vtanh.f32 %v987_v55  ;;  %v991_v10 = vmul.f32 0.7978846, %v959_v56  ;;  %v899_v11 = vmul.f32 %v867_v57, %v2890_v49  ;;  %v871_v12 = vmul.f32 %v2900_v0, %v2900_v0 }
 0x196   : > { %2343 = vtanh.f32 %v988_v4  ;;  %v992_v13 = vmul.f32 0.7978846, %v960_v5  ;;  %v900_v14 = vmul.f32 %v868_v7, %v2894_v53  ;;  %v872_v16 = vmul.f32 %v2906_v8, %v2906_v8 }
 0x197   : > { %v2334_v17 = vpop.eup %2333  ;;  %2345 = vtanh.f32 %v991_v10  ;;  %v931_v18 = vmul.f32 0.044715, %v899_v11  ;;  %v903_v19 = vmul.f32 %v871_v12, %v2900_v0 }
 0x198   : > { %v2336_v20 = vpop.eup %2335  ;;  %2347 = vtanh.f32 %v992_v13  ;;  %v932_v21 = vmul.f32 0.044715, %v900_v14  ;;  %v904_v23 = vmul.f32 %v872_v16, %v2906_v8  ;;  %v769_v24 = vpop.f32.mrb[12].mxu1  ;;  %v1043_v26 = vadd.f32 1.0, %v2334_v17 }
 0x199   : > { %v2338_v27 = vpop.eup %2337  ;;  %v963_v28 = vadd.f32 %v931_v18, %v2890_v49  ;;  %v935_v29 = vmul.f32 0.044715, %v903_v19  ;;  %v2918_v30 = vadd.f32 %v769_v24, %v2829_v62  ;;  %v771_v15 = vpop.f32.mrb[13].mxu1  ;;  %v1044_v32 = vadd.f32 1.0, %v2336_v20 }
 0x19a   : > { %v964_v34 = vadd.f32 %v932_v21, %v2894_v53  ;;  %v936_v35 = vmul.f32 0.044715, %v904_v23  ;;  %v2922_v36 = vadd.f32 %v771_v15, %v2834_v63  ;;  %v773_v37 = vpop.f32.mrb[14].mxu1  ;;  %v1047_v38 = vadd.f32 1.0, %v2338_v27  ;;  %v2340_v44 = vpop.eup %2339 }
 0x19b   : > { %v995_v39 = vmul.f32 0.7978846, %v963_v28  ;;  %v967_v40 = vadd.f32 %v935_v29, %v2900_v0  ;;  %v875_v41 = vmul.f32 %v2918_v30, %v2918_v30  ;;  %v2928_v42 = vadd.f32 %v773_v37, %v2829_v62  ;;  %v775_v43 = vpop.f32.mrb[15].mxu1  ;;  %v2285_v37 = vld [vmem:[#allocation8 + $0x100] ss:$8 sps:$4 sm:$0xff]  }
 0x19c   : > { %v996_v45 = vmul.f32 0.7978846, %v964_v34  ;;  %v968_v46 = vadd.f32 %v936_v35, %v2906_v8  ;;  %v876_v47 = vmul.f32 %v2922_v36, %v2922_v36  ;;  %v2934_v48 = vadd.f32 %v775_v43, %v2834_v63 }
 0x19d   : > { %2349 = vtanh.f32 %v995_v39  ;;  %v999_v50 = vmul.f32 0.7978846, %v967_v40  ;;  %v907_v51 = vmul.f32 %v875_v41, %v2918_v30  ;;  %v879_v52 = vmul.f32 %v2928_v42, %v2928_v42  ;;  %v2290_v40 = vld [vmem:[#allocation8 + $0x114] ss:$8 sps:$4 sm:$0xff]  }
 0x19e   : > { %2351 = vtanh.f32 %v996_v45  ;;  %v1000_v62 = vmul.f32 0.7978846, %v968_v46  ;;  %v908_v54 = vmul.f32 %v876_v47, %v2922_v36  ;;  %v880_v55 = vmul.f32 %v2934_v48, %v2934_v48 }
 0x19f   : > { %v2342_v56 = vpop.eup %2341  ;;  %2353 = vtanh.f32 %v999_v50  ;;  %v939_v57 = vmul.f32 0.044715, %v907_v51  ;;  %v911_v63 = vmul.f32 %v879_v52, %v2928_v42  ;;  %v1048_v2 = vadd.f32 1.0, %v2340_v44  ;;  %v2288_v50 = vld [vmem:[#allocation8 + $0x110] ss:$8 sps:$4 sm:$0xff]  }
 0x1a0   : > { %v2344_v4 = vpop.eup %2343  ;;  %2355 = vtanh.f32 %v1000_v62  ;;  %v940_v5 = vmul.f32 0.044715, %v908_v54  ;;  %v912_v7 = vmul.f32 %v880_v55, %v2934_v48  ;;  %v1076_v10 = vmul.f32 0.5, %v1044_v32 }
 0x1a1   : > { %v2346_v11 = vpop.eup %2345  ;;  %v971_v12 = vadd.f32 %v939_v57, %v2918_v30  ;;  %v943_v13 = vmul.f32 0.044715, %v911_v63  ;;  %v1080_v14 = vmul.f32 0.5, %v1048_v2  ;;  %v1075_v16 = vmul.f32 0.5, %v1043_v26  ;;  %v2293_v57 = vld [vmem:[#allocation8 + $0x124] ss:$8 sps:$4 sm:$0xff]  }
 0x1a2   : > { %v2348_v17 = vpop.eup %2347  ;;  %v972_v18 = vadd.f32 %v940_v5, %v2922_v36  ;;  %v944_v19 = vmul.f32 0.044715, %v912_v7  ;;  %v1108_v20 = vmul.f32 %v1076_v10, %v2840_v3  ;;  %v1079_v21 = vmul.f32 0.5, %v1047_v38 }
 0x1a3   : > { %v1003_v23 = vmul.f32 0.7978846, %v971_v12  ;;  %v975_v24 = vadd.f32 %v943_v13, %v2928_v42  ;;  %v1112_v27 = vmul.f32 %v1080_v14, %v2850_v9  ;;  %v1107_v28 = vmul.f32 %v1075_v16, %v2837_v1  ;;  %v2296_v14 = vld [vmem:[#allocation8 + $0x134] ss:$8 sps:$4 sm:$0xff]  }
 0x1a4   : > { %v1004_v29 = vmul.f32 0.7978846, %v972_v18  ;;  %v976_v15 = vadd.f32 %v944_v19, %v2934_v48  ;;  %v1111_v32 = vmul.f32 %v1079_v21, %v2845_v6  ;;  %v1052_v26 = vadd.f32 1.0, %v2344_v4 }
 0x1a5   : > { %2357 = vtanh.f32 %v1003_v23  ;;  %v1007_v34 = vmul.f32 0.7978846, %v975_v24  ;;  %v1204_v35 = vpack.c.bf16 %v1112_v27, %v1108_v20  ;;  %v1056_v39 = vadd.f32 1.0, %v2348_v17 }
 0x1a6   : > { %2359 = vtanh.f32 %v1004_v29  ;;  %v1008_v3 = vmul.f32 0.7978846, %v976_v15  ;;  %v1203_v38 = vpack.c.bf16 %v1111_v32, %v1107_v28  ;;  %v1084_v41 = vmul.f32 0.5, %v1052_v26  ;;  %v2299_v28 = vld [vmem:[#allocation8 + $0x144] ss:$8 sps:$4 sm:$0xff]  }
 0x1a7   : > { %v2350_v43 = vpop.eup %2349  ;;  %2361 = vtanh.f32 %v1007_v34  ;;  %1647 = vmatprep.mubr.bf16.mxu0 %v1204_v35  ;;  %v1088_v1 = vmul.f32 0.5, %v1056_v39  ;;  %v1051_v9 = vadd.f32 1.0, %v2342_v56  ;;  %v1055_v44 = vadd.f32 1.0, %v2346_v11  ;;  %v2297_v26 = vld [vmem:[#allocation8 + $0x140] ss:$8 sps:$4 sm:$0xff]  }
 0x1a8   : > { %v2352_v45 = vpop.eup %2351  ;;  %2363 = vtanh.f32 %v1008_v3  ;;  %1648 = vmatmul.mubr.bf16.vlgmr.msra.gmra.mrb[0].mxu0 %v1203_v38  ;;  %v1116_v6 = vmul.f32 %v1084_v41, %v2865_v25  ;;  %v1059_v46 = vadd.f32 1.0, %v2350_v43  ;;  %v375_v43 = vsub.s32 2, %v2817_v58 }
 0x1a9   : > { %v2354_v47 = vpop.eup %2353  ;;  %1689 = vmatpush1.bf16.msra.mxu0 %v2285_v37  ;;  %v1120_v51 = vmul.f32 %v1088_v1, %v2877_v33  ;;  %v1083_v52 = vmul.f32 0.5, %v1051_v9  ;;  %v1087_v62 = vmul.f32 0.5, %v1055_v44  ;;  %v1060_v54 = vadd.f32 1.0, %v2352_v45  ;;  %v2291_v33 = vld [vmem:[#allocation8 + $0x120] ss:$8 sps:$4 sm:$0xff]  }
 0x1aa   : > { %v2356_v55 = vpop.eup %2355  ;;  %1690 = vmatprep.subr.bf16.mxu0 %v2290_v40  ;;  %v1063_v63 = vadd.f32 1.0, %v2354_v47  ;;  %v1091_v56 = vmul.f32 0.5, %v1059_v46  ;;  %v2302_v37 = vld [vmem:[#allocation8 + $0x154] ss:$8 sps:$4 sm:$0xff]   ;;  %v2300_v40 = vld [vmem:[#allocation8 + $0x150] ss:$8 sps:$4 sm:$0xff]   ;;  %v2967_v9 = vrot.slane %v2823_v60, %v375_v43 }
 0x1ab   : > { %v1208_v2 = vpack.c.bf16 %v1120_v51, %v1116_v6  ;;  %v1115_v4 = vmul.f32 %v1083_v52, %v2862_v22  ;;  %v1119_v5 = vmul.f32 %v1087_v62, %v2872_v31  ;;  %v1064_v25 = vadd.f32 1.0, %v2356_v55  ;;  %v2306_v6 = vld [vmem:[#allocation8 + $0x170] ss:$8 sps:$4 sm:$0xff]   ;;  %v2311_v51 = vld [vmem:[#allocation8 + $0x184] ss:$8 sps:$4 sm:$0xff]  }
 0x1ac   : > { %v1092_v7 = vmul.f32 0.5, %v1060_v54  ;;  %v1095_v10 = vmul.f32 0.5, %v1063_v63  ;;  %v1123_v11 = vmul.f32 %v1091_v56, %v2890_v49  ;;  %v2294_v49 = vld [vmem:[#allocation8 + $0x130] ss:$8 sps:$4 sm:$0xff]   ;;  %v379_v1 = vsub.s32 3, %v2817_v58 }
 0x1ad   : > { %1691 = vmatpush1.bf16.msra.mxu0 %v2288_v50  ;;  %1657 = vmatprep.mubr.bf16.mxu0 %v1208_v2  ;;  %v1207_v12 = vpack.c.bf16 %v1119_v5, %v1115_v4  ;;  %v1096_v13 = vmul.f32 0.5, %v1064_v25  ;;  %v2309_v56 = vld [vmem:[#allocation8 + $0x180] ss:$8 sps:$4 sm:$0xff]   ;;  %v2314_v5 = vld [vmem:[#allocation8 + $0x194] ss:$8 sps:$4 sm:$0xff]  }
 0x1ae   : > { %1692 = vmatprep.subr.bf16.mxu0 %v2293_v57  ;;  %v1124_v16 = vmul.f32 %v1092_v7, %v2894_v53  ;;  %v1127_v17 = vmul.f32 %v1095_v10, %v2900_v0 }
 0x1af   : > { %v2358_v18 = vpop.eup %2357  ;;  %v1128_v22 = vmul.f32 %v1096_v13, %v2906_v8 }
 0x1b0   : > { %v2360_v31 = vpop.eup %2359  ;;  %1658 = vmatmul.mubr.bf16.gmra.mrb[4].mxu0 %v1207_v12  ;;  %v1211_v19 = vpack.c.bf16 %v1127_v17, %v1123_v11  ;;  %v1067_v20 = vadd.f32 1.0, %v2358_v18 }
 0x1b1   : > { %v2362_v21 = vpop.eup %2361  ;;  %1693 = vmatpush1.bf16.msra.mxu0 %v2291_v33  ;;  %v1212_v23 = vpack.c.bf16 %v1128_v22, %v1124_v16  ;;  %v1068_v24 = vadd.f32 1.0, %v2360_v31  ;;  %v2312_v16 = vld [vmem:[#allocation8 + $0x190] ss:$8 sps:$4 sm:$0xff]  }
 0x1b2   : > { %v2364_v27 = vpop.eup %2363  ;;  %1694 = vmatprep.subr.bf16.mxu0 %v2296_v14  ;;  %v1071_v29 = vadd.f32 1.0, %v2362_v21  ;;  %v1099_v15 = vmul.f32 0.5, %v1067_v20  ;;  %v2317_v20 = vld [vmem:[#allocation8 + $0x1a4] ss:$8 sps:$4 sm:$0xff]  }
 0x1b3   : > { %1667 = vmatprep.mubr.bf16.mxu0 %v1212_v23  ;;  %v1072_v53 = vadd.f32 1.0, %v2364_v27  ;;  %v1100_v0 = vmul.f32 0.5, %v1068_v24 }
 0x1b4   : > { %v1103_v32 = vmul.f32 0.5, %v1071_v29  ;;  %v1131_v8 = vmul.f32 %v1099_v15, %v2918_v30  ;;  %v2305_v30 = vld [vmem:[#allocation8 + $0x164] ss:$8 sps:$4 sm:$0xff]  }
 0x1b5   : > { %1695 = vmatpush1.bf16.msra.mxu0 %v2294_v49  ;;  %v1104_v34 = vmul.f32 0.5, %v1072_v53  ;;  %v1132_v35 = vmul.f32 %v1100_v0, %v2922_v36  ;;  %v2303_v36 = vld [vmem:[#allocation8 + $0x160] ss:$8 sps:$4 sm:$0xff]  }
 0x1b6   : > { %1696 = vmatprep.subr.bf16.mxu0 %v2299_v28  ;;  %v1135_v39 = vmul.f32 %v1103_v32, %v2928_v42  ;;  %v2308_v42 = vld [vmem:[#allocation8 + $0x174] ss:$8 sps:$4 sm:$0xff]  }
 0x1b7   : > { %v1136_v3 = vmul.f32 %v1104_v34, %v2934_v48  ;;  %v2970_v48 = vrot.slane %v2823_v60, %v379_v1 }
 0x1b8   : > { %1668 = vmatmul.mubr.bf16.gmra.mrb[8].mxu0 %v1211_v19  ;;  %v1215_v38 = vpack.c.bf16 %v1135_v39, %v1131_v8  ;;  %v2320_v39 = vld [vmem:[#allocation8 + $0x1b4] ss:$8 sps:$4 sm:$0xff]  }
 0x1b9   : > { %1697 = vmatpush1.bf16.msra.mxu0 %v2297_v26  ;;  %v1216_v41 = vpack.c.bf16 %v1136_v3, %v1132_v35  ;;  %v2315_v26 = vld [vmem:[#allocation8 + $0x1a0] ss:$8 sps:$4 sm:$0xff]  }
 0x1ba   : > { %1698 = vmatprep.subr.bf16.mxu0 %v2302_v37 }
 0x1bb   : > { %1677 = vmatprep.mubr.bf16.mxu0 %v1216_v41 }
 0x1bd   : > { %1699 = vmatpush1.bf16.msra.mxu0 %v2300_v40 }
 0x1be   : > { %1700 = vmatprep.subr.bf16.mxu0 %v2305_v30 }
 0x1c0   : > { %1678 = vmatmul.mubr.bf16.gmra.mrb[12].mxu0 %v1215_v38  ;;  %v812_v44 = vpop.f32.mrb[16].mxu1 }
 0x1c1   : > { %1701 = vmatpush1.bf16.msra.mxu0 %v2303_v36  ;;  %v2973_v45 = vadd.f32 %v812_v44, %v2967_v9  ;;  %v814_v46 = vpop.f32.mrb[17].mxu1 }
 0x1c2   : > { %1702 = vmatprep.subr.bf16.mxu0 %v2308_v42  ;;  %v2976_v47 = vadd.f32 %v814_v46, %v2970_v48  ;;  %v816_v50 = vpop.f32.mrb[18].mxu1  ;;  %v2318_v42 = vld [vmem:[#allocation8 + $0x1b0] ss:$8 sps:$4 sm:$0xff]  }
 0x1c3   : > { %v853_v52 = vmul.f32 %v2973_v45, %v2973_v45  ;;  %v2981_v60 = vadd.f32 %v816_v50, %v2967_v9  ;;  %v818_v62 = vpop.f32.mrb[19].mxu1 }
 0x1c4   : > { %v854_v54 = vmul.f32 %v2976_v47, %v2976_v47  ;;  %v2986_v55 = vadd.f32 %v818_v62, %v2970_v48 }
 0x1c5   : > { %v885_v57 = vmul.f32 %v853_v52, %v2973_v45  ;;  %1703 = vmatpush1.bf16.msra.mxu0 %v2306_v6  ;;  %v857_v63 = vmul.f32 %v2981_v60, %v2981_v60  ;;  %v2323_v52 = vld [vmem:[#allocation8 + $0x1c4] ss:$8 sps:$4 sm:$0xff]  }
 0x1c6   : > { %v886_v2 = vmul.f32 %v854_v54, %v2976_v47  ;;  %v858_v4 = vmul.f32 %v2986_v55, %v2986_v55  ;;  %1704 = vmatprep.subr.bf16.mxu0 %v2311_v51 }
 0x1c7   : > { %v917_v25 = vmul.f32 0.044715, %v885_v57  ;;  %v889_v7 = vmul.f32 %v857_v63, %v2981_v60 }
 0x1c8   : > { %v918_v10 = vmul.f32 0.044715, %v886_v2  ;;  %v890_v11 = vmul.f32 %v858_v4, %v2986_v55  ;;  %v822_v33 = vpop.f32.mrb[20].mxu1 }
 0x1c9   : > { %v949_v12 = vadd.f32 %v917_v25, %v2973_v45  ;;  %v921_v13 = vmul.f32 0.044715, %v889_v7  ;;  %1705 = vmatpush1.bf16.msra.mxu0 %v2309_v56  ;;  %v2998_v14 = vadd.f32 %v822_v33, %v2967_v9  ;;  %v824_v17 = vpop.f32.mrb[21].mxu1  ;;  %v2321_v33 = vld [vmem:[#allocation8 + $0x1c0] ss:$8 sps:$4 sm:$0xff]  }
 0x1ca   : > { %v950_v18 = vadd.f32 %v918_v10, %v2976_v47  ;;  %v922_v22 = vmul.f32 0.044715, %v890_v11  ;;  %1706 = vmatprep.subr.bf16.mxu0 %v2314_v5  ;;  %v3002_v31 = vadd.f32 %v824_v17, %v2970_v48  ;;  %v826_v19 = vpop.f32.mrb[22].mxu1  ;;  %v2326_v17 = vld [vmem:[#allocation8 + $0x1d4] ss:$8 sps:$4 sm:$0xff]  }
 0x1cb   : > { %v981_v21 = vmul.f32 0.7978846, %v949_v12  ;;  %v953_v49 = vadd.f32 %v921_v13, %v2981_v60  ;;  %v861_v23 = vmul.f32 %v2998_v14, %v2998_v14  ;;  %v3008_v24 = vadd.f32 %v826_v19, %v2967_v9  ;;  %v828_v27 = vpop.f32.mrb[23].mxu1 }
 0x1cc   : > { %v982_v28 = vmul.f32 0.7978846, %v950_v18  ;;  %v954_v29 = vadd.f32 %v922_v22, %v2986_v55  ;;  %v862_v15 = vmul.f32 %v3002_v31, %v3002_v31  ;;  %v3014_v53 = vadd.f32 %v828_v27, %v2970_v48 }
 0x1cd   : > { %2365 = vtanh.f32 %v981_v21  ;;  %v985_v0 = vmul.f32 0.7978846, %v953_v49  ;;  %v893_v32 = vmul.f32 %v861_v23, %v2998_v14  ;;  %1707 = vmatpush1.bf16.msra.mxu0 %v2312_v16  ;;  %v865_v8 = vmul.f32 %v3008_v24, %v3008_v24 }
 0x1ce   : > { %2367 = vtanh.f32 %v982_v28  ;;  %v986_v34 = vmul.f32 0.7978846, %v954_v29  ;;  %v894_v35 = vmul.f32 %v862_v15, %v3002_v31  ;;  %v866_v37 = vmul.f32 %v3014_v53, %v3014_v53  ;;  %1708 = vmatprep.subr.bf16.mxu0 %v2317_v20  ;;  %v2324_v28 = vld [vmem:[#allocation8 + $0x1d0] ss:$8 sps:$4 sm:$0xff]  }
 0x1cf   : > { %2369 = vtanh.f32 %v985_v0  ;;  %v925_v3 = vmul.f32 0.044715, %v893_v32  ;;  %v897_v38 = vmul.f32 %v865_v8, %v3008_v24 }
 0x1d0   : > { %v926_v40 = vmul.f32 0.044715, %v894_v35  ;;  %v898_v41 = vmul.f32 %v866_v37, %v3014_v53  ;;  %v832_v43 = vpop.f32.mrb[24].mxu1  ;;  %2371 = vtanh.f32 %v986_v34 }
 0x1d1   : > { %v957_v30 = vadd.f32 %v925_v3, %v2998_v14  ;;  %v929_v1 = vmul.f32 0.044715, %v897_v38  ;;  %1709 = vmatpush1.bf16.msra.mxu0 %v2315_v26  ;;  %v3026_v36 = vadd.f32 %v832_v43, %v2967_v9  ;;  %v834_v44 = vpop.f32.mrb[25].mxu1  ;;  %v2329_v26 = vld [vmem:[#allocation8 + $0x1e4] ss:$8 sps:$4 sm:$0xff]  }
 0x1d2   : > { %v958_v6 = vadd.f32 %v926_v40, %v3002_v31  ;;  %v930_v46 = vmul.f32 0.044715, %v898_v41  ;;  %1710 = vmatprep.subr.bf16.mxu0 %v2320_v39  ;;  %v3030_v50 = vadd.f32 %v834_v44, %v2970_v48  ;;  %v836_v51 = vpop.f32.mrb[26].mxu1 }
 0x1d3   : > { %v989_v62 = vmul.f32 0.7978846, %v957_v30  ;;  %v961_v54 = vadd.f32 %v929_v1, %v3008_v24  ;;  %v869_v57 = vmul.f32 %v3026_v36, %v3026_v36  ;;  %v3036_v63 = vadd.f32 %v836_v51, %v2967_v9  ;;  %v838_v56 = vpop.f32.mrb[27].mxu1 }
 0x1d4   : > { %v990_v2 = vmul.f32 0.7978846, %v958_v6  ;;  %v962_v4 = vadd.f32 %v930_v46, %v3014_v53  ;;  %v870_v5 = vmul.f32 %v3030_v50, %v3030_v50  ;;  %v3042_v25 = vadd.f32 %v838_v56, %v2970_v48 }
 0x1d5   : > { %2373 = vtanh.f32 %v989_v62  ;;  %v993_v7 = vmul.f32 0.7978846, %v961_v54  ;;  %v901_v10 = vmul.f32 %v869_v57, %v3026_v36  ;;  %1711 = vmatpush1.bf16.msra.mxu0 %v2318_v42  ;;  %v873_v11 = vmul.f32 %v3036_v63, %v3036_v63  ;;  %v2327_v57 = vld [vmem:[#allocation8 + $0x1e0] ss:$8 sps:$4 sm:$0xff]  }
 0x1d6   : > { %2375 = vtanh.f32 %v990_v2  ;;  %v994_v12 = vmul.f32 0.7978846, %v962_v4  ;;  %v902_v13 = vmul.f32 %v870_v5, %v3030_v50  ;;  %v874_v16 = vmul.f32 %v3042_v25, %v3042_v25  ;;  %1712 = vmatprep.subr.bf16.mxu0 %v2323_v52  ;;  %v2332_v4 = vld [vmem:[#allocation8 + $0x1f4] ss:$8 sps:$4 sm:$0xff]  }
 0x1d7   : > { %v2366_v18 = vpop.eup %2365  ;;  %2377 = vtanh.f32 %v993_v7  ;;  %v933_v22 = vmul.f32 0.044715, %v901_v10  ;;  %v905_v19 = vmul.f32 %v873_v11, %v3036_v63 }
 0x1d8   : > { %v2368_v20 = vpop.eup %2367  ;;  %v1045_v21 = vadd.f32 1.0, %v2366_v18  ;;  %2379 = vtanh.f32 %v994_v12  ;;  %v934_v49 = vmul.f32 0.044715, %v902_v13  ;;  %v906_v23 = vmul.f32 %v874_v16, %v3042_v25  ;;  %v842_v27 = vpop.f32.mrb[28].mxu1 }
 0x1d9   : > { %v2370_v29 = vpop.eup %2369  ;;  %v965_v15 = vadd.f32 %v933_v22, %v3026_v36  ;;  %v937_v0 = vmul.f32 0.044715, %v905_v19  ;;  %1713 = vmatpush1.bf16.msra.mxu0 %v2321_v33  ;;  %v3054_v32 = vadd.f32 %v842_v27, %v2967_v9  ;;  %v844_v8 = vpop.f32.mrb[29].mxu1  ;;  %v1046_v34 = vadd.f32 1.0, %v2368_v20  ;;  %v2330_v22 = vld [vmem:[#allocation8 + $0x1f0] ss:$8 sps:$4 sm:$0xff]  }
 0x1da   : > { %v1077_v35 = vmul.f32 0.5, %v1045_v21  ;;  %v1049_v37 = vadd.f32 1.0, %v2370_v29  ;;  %v966_v39 = vadd.f32 %v934_v49, %v3030_v50  ;;  %v938_v3 = vmul.f32 0.044715, %v906_v23  ;;  %1714 = vmatprep.subr.bf16.mxu0 %v2326_v17  ;;  %v846_v38 = vpop.f32.mrb[30].mxu1  ;;  %v2372_v42 = vpop.eup %2371 }
 0x1db   : > { %v997_v40 = vmul.f32 0.7978846, %v965_v15  ;;  %v969_v41 = vadd.f32 %v937_v0, %v3036_v63  ;;  %v877_v43 = vmul.f32 %v3054_v32, %v3054_v32  ;;  %v3061_v30 = vadd.f32 %v844_v8, %v2970_v48  ;;  %v848_v1 = vpop.f32.mrb[31].mxu1 }
 0x1dc   : > { %v3064_v44 = vmul.f32 %v1077_v35, %v2973_v45  ;;  %v1081_v6 = vmul.f32 0.5, %v1049_v37  ;;  %v998_v46 = vmul.f32 0.7978846, %v966_v39  ;;  %v970_v51 = vadd.f32 %v938_v3, %v3042_v25 }
 0x1dd   : > { %2381 = vtanh.f32 %v997_v40  ;;  %v1001_v52 = vmul.f32 0.7978846, %v969_v41  ;;  %v909_v62 = vmul.f32 %v877_v43, %v3054_v32  ;;  %v878_v54 = vmul.f32 %v3061_v30, %v3061_v30  ;;  %1715 = vmatpush1.bf16.msra.mxu0 %v2324_v28 }
 0x1de   : > { %v1113_v56 = vmul.f32 %v1081_v6, %v2981_v60  ;;  %2383 = vtanh.f32 %v998_v46  ;;  %v1002_v2 = vmul.f32 0.7978846, %v970_v51  ;;  %v3072_v45 = vadd.f32 %v846_v38, %v2967_v9  ;;  %1716 = vmatprep.subr.bf16.mxu0 %v2329_v26 }
 0x1df   : > { %v2374_v5 = vpop.eup %2373  ;;  %2385 = vtanh.f32 %v1001_v52  ;;  %v941_v7 = vmul.f32 0.044715, %v909_v62  ;;  %v910_v10 = vmul.f32 %v878_v54, %v3061_v30  ;;  %v3076_v11 = vadd.f32 %v848_v1, %v2970_v48 }
 0x1e0   : > { %v2376_v33 = vpop.eup %2375  ;;  %v1205_v12 = vpack.c.bf16 %v1113_v56, %v3064_v44  ;;  %2387 = vtanh.f32 %v1002_v2  ;;  %v881_v60 = vmul.f32 %v3072_v45, %v3072_v45  ;;  %v1050_v13 = vadd.f32 1.0, %v2372_v42 }
 0x1e1   : > { %v2378_v9 = vpop.eup %2377  ;;  %v973_v16 = vadd.f32 %v941_v7, %v3054_v32  ;;  %v942_v17 = vmul.f32 0.044715, %v910_v10  ;;  %v882_v18 = vmul.f32 %v3076_v11, %v3076_v11  ;;  %1717 = vmatpush1.bf16.msra.mxu0 %v2327_v57  ;;  %v1078_v19 = vmul.f32 0.5, %v1046_v34 }
 0x1e2   : > { %v2380_v48 = vpop.eup %2379  ;;  %v913_v20 = vmul.f32 %v881_v60, %v3072_v45  ;;  %1718 = vmatprep.subr.bf16.mxu0 %v2332_v4  ;;  %v1082_v21 = vmul.f32 0.5, %v1050_v13  ;;  %v1054_v49 = vadd.f32 1.0, %v2376_v33  ;;  %v1053_v23 = vadd.f32 1.0, %v2374_v5 }
 0x1e3   : > { %v1005_v27 = vmul.f32 0.7978846, %v973_v16  ;;  %v974_v28 = vadd.f32 %v942_v17, %v3061_v30  ;;  %v914_v29 = vmul.f32 %v882_v18, %v3076_v11  ;;  %v1110_v15 = vmul.f32 %v1078_v19, %v2976_v47 }
 0x1e4   : > { %v945_v0 = vmul.f32 0.044715, %v913_v20  ;;  %v1114_v8 = vmul.f32 %v1082_v21, %v2986_v55  ;;  %v1058_v26 = vadd.f32 1.0, %v2380_v48  ;;  %v1086_v35 = vmul.f32 0.5, %v1054_v49 }
 0x1e5   : > { %2389 = vtanh.f32 %v1005_v27  ;;  %v1006_v34 = vmul.f32 0.7978846, %v974_v28  ;;  %v946_v37 = vmul.f32 0.044715, %v914_v29  ;;  %1719 = vmatpush1.bf16.msra.mxu0 %v2330_v22  ;;  %v1057_v39 = vadd.f32 1.0, %v2378_v9 }
 0x1e6   : > { %v977_v3 = vadd.f32 %v945_v0, %v3072_v45  ;;  %v1206_v38 = vpack.c.bf16 %v1114_v8, %v1110_v15  ;;  %v1090_v40 = vmul.f32 0.5, %v1058_v26  ;;  %v1085_v1 = vmul.f32 0.5, %v1053_v23  ;;  %v1283_v0 = vld [vmem:[%s3184_s4] sm:$0x3] }
 0x1e7   : > { %v2382_v41 = vpop.eup %2381  ;;  %2391 = vtanh.f32 %v1006_v34  ;;  %v978_v43 = vadd.f32 %v946_v37, %v3076_v11  ;;  %v1089_v47 = vmul.f32 0.5, %v1057_v39  ;;  %v1118_v55 = vmul.f32 %v1086_v35, %v3002_v31 }
 0x1e8   : > { %v2384_v42 = vpop.eup %2383  ;;  %v1009_v44 = vmul.f32 0.7978846, %v977_v3  ;;  %1720 = vmatprep.mubr.bf16.mxu0 %v1206_v38  ;;  %v1122_v6 = vmul.f32 %v1090_v40, %v3014_v53  ;;  %v1061_v46 = vadd.f32 1.0, %v2382_v41  ;;  %v1117_v62 = vmul.f32 %v1085_v1, %v2998_v14 }
 0x1e9   : > { %v2386_v51 = vpop.eup %2385  ;;  %v1010_v52 = vmul.f32 0.7978846, %v978_v43  ;;  %1721 = vmatmul.mubr.bf16.vlgmr.msra.gmra.mrb[0].mxu0 %v1205_v12  ;;  %v1121_v54 = vmul.f32 %v1089_v47, %v3008_v24  ;;  %v1062_v57 = vadd.f32 1.0, %v2384_v42  ;;  %v1288_v8 = vrot.slane %v1283_v0, %v367_v59 }
 0x1ea   : > { %v2388_v56 = vpop.eup %2387  ;;  %2393 = vtanh.f32 %v1009_v44  ;;  %v1210_v2 = vpack.c.bf16 %v1122_v6, %v1118_v55  ;;  %v1065_v4 = vadd.f32 1.0, %v2386_v51  ;;  %v1093_v5 = vmul.f32 0.5, %v1061_v46 }
 0x1eb   : > { %2395 = vtanh.f32 %v1010_v52  ;;  %v1209_v7 = vpack.c.bf16 %v1121_v54, %v1117_v62  ;;  %v1066_v10 = vadd.f32 1.0, %v2388_v56  ;;  %v1094_v31 = vmul.f32 0.5, %v1062_v57 }
 0x1ec   : > { %1730 = vmatprep.mubr.bf16.mxu0 %v1210_v2  ;;  %v1097_v53 = vmul.f32 0.5, %v1065_v4  ;;  %v1125_v60 = vmul.f32 %v1093_v5, %v3026_v36 }
 0x1ed   : > { %v1098_v33 = vmul.f32 0.5, %v1066_v10  ;;  %v1126_v24 = vmul.f32 %v1094_v31, %v3030_v50 }
 0x1ee   : > { %v1129_v12 = vmul.f32 %v1097_v53, %v3036_v63 }
 0x1ef   : > { %v2390_v14 = vpop.eup %2389  ;;  %v1130_v13 = vmul.f32 %v1098_v33, %v3042_v25 }
 0x1f0   : > { %v1213_v9 = vpack.c.bf16 %v1129_v12, %v1125_v60  ;;  %v1069_v18 = vadd.f32 1.0, %v2390_v14 }
 0x1f1   : > { %v2392_v16 = vpop.eup %2391  ;;  %1731 = vmatmul.mubr.bf16.gmra.mrb[4].mxu0 %v1209_v7  ;;  %v1214_v17 = vpack.c.bf16 %v1130_v13, %v1126_v24 }
 0x1f2   : > { %v1070_v22 = vadd.f32 1.0, %v2392_v16  ;;  %v1101_v21 = vmul.f32 0.5, %v1069_v18 }
 0x1f3   : > { %1740 = vmatprep.mubr.bf16.mxu0 %v1214_v17 }
 0x1f4   : > { %v2394_v19 = vpop.eup %2393  ;;  %v1102_v36 = vmul.f32 0.5, %v1070_v22  ;;  %v1133_v50 = vmul.f32 %v1101_v21, %v3054_v32  ;;  %v1292_v32 = vrot.slane %v1283_v0, %v371_v61 }
 0x1f5   : > { %v2396_v48 = vpop.eup %2395  ;;  %v1073_v20 = vadd.f32 1.0, %v2394_v19 }
 0x1f6   : > { %v1074_v49 = vadd.f32 1.0, %v2396_v48  ;;  %v1134_v27 = vmul.f32 %v1102_v36, %v3061_v30 }
 0x1f7   : > { %v1105_v23 = vmul.f32 0.5, %v1073_v20 }
 0x1f8   : > { %v1106_v63 = vmul.f32 0.5, %v1074_v49 }
 0x1f9   : > { %1741 = vmatmul.mubr.bf16.gmra.mrb[8].mxu0 %v1213_v9  ;;  %v1137_v25 = vmul.f32 %v1105_v23, %v3072_v45 }
 0x1fa   : > { %v1138_v28 = vmul.f32 %v1106_v63, %v3076_v11 }
 0x1fb   : > { %v1217_v29 = vpack.c.bf16 %v1137_v25, %v1133_v50 }
 0x1fc   : > { %v1218_v15 = vpack.c.bf16 %v1138_v28, %v1134_v27 }
 0x1fe   : > { %1750 = vmatprep.mubr.bf16.mxu0 %v1218_v15 }
 0x201   : > { %1751 = vmatmul.mubr.bf16.gmra.mrb[12].mxu0 %v1217_v29 }
 0x2bc   : > { %v1722_v26 = vpop.f32.mrb[0].mxu0 }
 0x2bd   : > { %v2036_v45 = vadd.f32 %v1722_v26, %v1288_v8  ;;  %v1724_v35 = vpop.f32.mrb[1].mxu0 }
 0x2be   : > { %v2037_v30 = vadd.f32 %v1724_v35, %v1292_v32  ;;  %v1726_v34 = vpop.f32.mrb[2].mxu0 }
 0x2bf   : > { %1761 = vst [vmem:[%s3112_s28] sm:$0xff] %v2036_v45  ;;  %v2038_v11 = vadd.f32 %v1726_v34, %v1288_v8  ;;  %v1728_v59 = vpop.f32.mrb[3].mxu0 }
 0x2c0   : > { %1762 = vst [vmem:[%s3112_s28 + $0x8] sm:$0xff] %v2037_v30  ;;  %v2039_v58 = vadd.f32 %v1728_v59, %v1292_v32 }
 0x2c1   : > { %1763 = vst [vmem:[%s3112_s28 + $0x10] sm:$0xff] %v2038_v11 }
 0x2c2   : > { %1764 = vst [vmem:[%s3112_s28 + $0x18] sm:$0xff] %v2039_v58 }
 0x2c4   : > { %v1732_v61 = vpop.f32.mrb[4].mxu0 }
 0x2c5   : > { %v2040_v37 = vadd.f32 %v1732_v61, %v1288_v8  ;;  %v1734_v39 = vpop.f32.mrb[5].mxu0 }
 0x2c6   : > { %v2041_v3 = vadd.f32 %v1734_v39, %v1292_v32  ;;  %v1736_v38 = vpop.f32.mrb[6].mxu0 }
 0x2c7   : > { %1765 = vst [vmem:[%s3112_s28 + $0x20] sm:$0xff] %v2040_v37  ;;  %v2042_v40 = vadd.f32 %v1736_v38, %v1288_v8  ;;  %v1738_v41 = vpop.f32.mrb[7].mxu0 }
 0x2c8   : > { %1766 = vst [vmem:[%s3112_s28 + $0x28] sm:$0xff] %v2041_v3  ;;  %v2043_v43 = vadd.f32 %v1738_v41, %v1292_v32 }
 0x2c9   : > { %1767 = vst [vmem:[%s3112_s28 + $0x30] sm:$0xff] %v2042_v40 }
 0x2ca   : > { %1768 = vst [vmem:[%s3112_s28 + $0x38] sm:$0xff] %v2043_v43 }
 0x2cc   : > { %v1742_v1 = vpop.f32.mrb[8].mxu0 }
 0x2cd   : > { %v2044_v47 = vadd.f32 %v1742_v1, %v1288_v8  ;;  %v1744_v42 = vpop.f32.mrb[9].mxu0 }
 0x2ce   : > { %v2045_v44 = vadd.f32 %v1744_v42, %v1292_v32  ;;  %v1746_v55 = vpop.f32.mrb[10].mxu0 }
 0x2cf   : > { %1769 = vst [vmem:[%s3112_s28 + $0x40] sm:$0xff] %v2044_v47  ;;  %v2046_v6 = vadd.f32 %v1746_v55, %v1288_v8  ;;  %v1748_v46 = vpop.f32.mrb[11].mxu0 }
 0x2d0   : > { %1770 = vst [vmem:[%s3112_s28 + $0x48] sm:$0xff] %v2045_v44  ;;  %v2047_v51 = vadd.f32 %v1748_v46, %v1292_v32 }
 0x2d1   : > { %1771 = vst [vmem:[%s3112_s28 + $0x50] sm:$0xff] %v2046_v6 }
 0x2d2   : > { %1772 = vst [vmem:[%s3112_s28 + $0x58] sm:$0xff] %v2047_v51 }
 0x2d4   : > { %v1752_v52 = vpop.f32.mrb[12].mxu0 }
 0x2d5   : > { %v2048_v62 = vadd.f32 %v1752_v52, %v1288_v8  ;;  %v1754_v54 = vpop.f32.mrb[13].mxu0 }
 0x2d6   : > { %v2049_v57 = vadd.f32 %v1754_v54, %v1292_v32  ;;  %v1756_v56 = vpop.f32.mrb[14].mxu0 }
 0x2d7   : > { %1773 = vst [vmem:[%s3112_s28 + $0x60] sm:$0xff] %v2048_v62  ;;  %v2050_v2 = vadd.f32 %v1756_v56, %v1288_v8  ;;  %v1758_v4 = vpop.f32.mrb[15].mxu0 }
 0x2d8   : > { %1774 = vst [vmem:[%s3112_s28 + $0x68] sm:$0xff] %v2049_v57  ;;  %v2051_v5 = vadd.f32 %v1758_v4, %v1292_v32 }
 0x2d9   : > { %1775 = vst [vmem:[%s3112_s28 + $0x70] sm:$0xff] %v2050_v2 }
 0x2da   : > { %1776 = vst [vmem:[%s3112_s28 + $0x78] sm:$0xff] %v2051_v5 }
 0x2db   : > { %2496 = shalt.err (!%p2493_p7)
}
 0x2dc   : > { %s2497_s14 = scalar_lea.hbm %s3132_s12, 2048  ;;  %s2501_s15 = scalar_lea.hbm %s3185_s5, 8192 }
 0x2dd   : > { %p2498_p9 = scmp.ne.s32.totalorder %s3132_s12, %s2497_s14  ;;  %p2502_p5 = scmp.lt.u32.totalorder %s3132_s12, %s3185_s5 }
 0x2de   : > { %p2503_p10 = scmp.lt.u32.totalorder %s2501_s15, %s2497_s14  ;;  %p2505_p2 = scmp.lt.u32.totalorder %s2497_s14, %s3132_s12 }
 0x2df   : > { %p2499_p12 = pnand %p2498_p9, %p2713_p8 }
 0x2e0   : > { %p2504_p1 = por %p2503_p10, %p2502_p5 }
 0x2e1   : > { %p2500_p0 = pneg %p2499_p12 }
 0x2e2   : > { %p2506_p4 = por %p2505_p2, %p2504_p1 }
 0x2e4   : > { %p2507_p6 = pnand %p2506_p4, %p2500_p0 }
 0x2e6   : > { %2510 = shalt.err (!%p2507_p6)
}
 0x2e7   : > { %s2563_s13 = smov 256   ;;  %s2564_s11 = smov 16  }
 0x2e8   : > { %2078 = dma.vmem_to_hbm [thread:$0]  (%p2713_p8), %s3134_s17, 2048, %s3132_s12, %s1778_s22, %s2563_s13, %s2563_s13, %s2564_s11  }
 0x2e9 PF: > { %p2100_p11 = scmp.ge.s32.totalorder %s2553_s21, 2  ;;  %s1807_s29 = sand.u32 1, %s2541_s18  }
 0x2ea   : > { %p3200_p13 = scmp.ne.s32.totalorder %s3190_s25, 0  ;;  %s1808_s30 = scalar_lea.sflag [#allocation5], %s1807_s29 }
 0x2ec   : > { %p2092_p3 = pnand %p2100_p11, %p3200_p13 }
 0x2ee   : > { %2536 = dma.done.wait (!%p2092_p3), %s1808_s30, 2048  }
 0x2ef   : > { %2538 = vsyncadd (!%p2092_p3), %s1808_s30, 4294965248  ;;  %p19_p7 = scmp.ge.s32.totalorder %s2700_s23, 6   ;;  %s3201_s18 = smov %s2545_s19 }
 0x2f0   : > { %s3202_s19 = smov %s2549_s20  ;;  %s3203_s20 = smov %s2709_s7 }
 0x2f1   : > { %s3204_s21 = smov %s2700_s23  ;;  %21 = sbr.rel (!%p19_p7) target bundleno = 6 (0x6), region = 93 }
 0x2f8   :  { %1813 = vsyncpa [#allocation4], 1 }
 0x2f9   :  { %1815 = vsyncpa [#allocation4 + $0x1], 1 }
 0x2fa   :  { %1816 = vsyncpa [#allocation7], 1 }
 0x2fb   :  { %1817 = vsyncpa [#allocation5], 1 }
 0x2fc   :  { %1819 = vsyncpa [#allocation5 + $0x1], 1 }

// kernel: tpu_custom_call.1
= control target key start
LH: loop header
LB: loop body
LE: loop exit
PB: predicated region body
PF: predicated region fallthrough
CT: control target
= control target key end

     0   :  { %10 = vsyncpa [#allocation4], 0  ;;  %s3180_s0 = inlined_call_operand.hbm [shape: f32[256,256], index: 0, kind: input, shape index: {}]   ;;  %s3181_s1 = inlined_call_operand.hbm [shape: bf16[256,512], index: 1, kind: input, shape index: {}]   ;;  %s3182_s2 = inlined_call_operand.vmem [shape: f32[1,512], index: 2, kind: input, shape index: {}]   ;;  %s3183_s3 = inlined_call_operand.hbm [shape: bf16[512,256], index: 3, kind: input, shape index: {}]   ;;  %s3184_s4 = inlined_call_operand.vmem [shape: f32[1,256], index: 4, kind: input, shape index: {}]   ;;  %s3185_s5 = inlined_call_operand.hbm [shape: f32[256,256], index: 5, kind: output, shape index: {}]  }
   0x1   :  { %12 = vsyncpa [#allocation4 + $0x1], 0 }
   0x2   :  { %13 = vsyncpa [#allocation7], 0 }
   0x3   :  { %14 = vsyncpa [#allocation5], 0 }
   0x4   :  { %16 = vsyncpa [#allocation5 + $0x1], 0  ;;  %s2595_s18 = smov 0   ;;  %s2597_s19 = smov 0  }
   0x5   :  { %s2599_s20 = smov 0   ;;  %s2601_s21 = smov 0  }
   0x6 LB: > { %s2616_s22 = sadd.s32 4294967295, %s2553_s21   ;;  %s1884_s23 = sadd.s32 4294967294, %s2553_s21   ;;  %s2553_s21 = sphi %s2601_s21, %s3204_s21   ;;  %s2549_s20 = sphi %s2599_s20, %s3203_s20   ;;  %s2545_s19 = sphi %s2597_s19, %s3202_s19   ;;  %s2541_s18 = sphi %s2595_s18, %s3201_s18  }
   0x7   : > { %p42_p0 = scmp.ne.s32.totalorder %s2545_s19, %s2541_s18  ;;  %p3186_p1 = scmp.eq.s32.totalorder %s2616_s22, 0 }
   0x8   : > { %p156_p3 = scmp.eq.s32.totalorder %s1884_s23, 3  ;;  %p1885_p5 = scmp.ge.s32.totalorder %s2553_s21, 1 }
   0x9   : > { %p2625_p4 = por %p3186_p1, %p42_p0  ;;  %p163_p7 = scmp.lt.s32.totalorder %s2553_s21, 5 }
   0xa   : > { %p2630_p6 = por %p156_p3, %p42_p0  ;;  %s2555_s27 = smov [#allocation6]  }
   0xb   : > { %s3189_s24 = scalar_select %p2625_p4, 1, 0 }
   0xc   : > { %s3190_s25 = scalar_select %p2630_p6, 1, 0 }
   0xd   : > { %p2635_p8 = pnand %p1885_p5, %p163_p7  ;;  %s175_s28 = sshll.u32 %s2555_s27, 4  ;;  %s176_s28 = int_to_ptr.vmem [resolvable:$true] %s175_s28 }
   0xe   : > { %s2556_s30 = smov [#allocation8]   ;;  %s2397_s9 = scalar_lea.hbm %s3181_s1, 8192 }
   0xf   : > { %s3191_s26 = scalar_select %p2635_p8, 1, 0 }
  0x10   : > { %p2080_p9 = pneg %p2635_p8  ;;  %s191_s6 = sshll.u32 %s2556_s30, 4  ;;  %s2647_s6 = int_to_ptr.vmem [resolvable:$true] %s191_s6 }
  0x11   : > { %p2398_p11 = scmp.ne.s32.totalorder %s3181_s1, %s2397_s9  ;;  %p2404_p3 = scmp.lt.u32.totalorder %s2397_s9, %s3181_s1 }
  0x12   : > { %p2643_p10 = pnand %p2080_p9, %p3186_p1 }
  0x14   : > { %p2399_p12 = pneg %p2643_p10 }
  0x16   : > { %p2400_p13 = pnand %p2399_p12, %p2398_p11 }
  0x18   : > { %p2401_p0 = pneg %p2400_p13 }
  0x1a   : > { %p2406_p5 = pnand %p2404_p3, %p2401_p0 }
  0x1c   : > { %2409 = shalt.err (!%p2406_p5)
}
  0x1d   : > { %s2410_s14 = scalar_lea.vmem %s176_s28, 8192  ;;  %p2418_p2 = scmp.lt.s32.totalorder %s176_s28, %s176_s28 }
  0x1e   : > { %p2411_p7 = scmp.ne.s32.totalorder %s176_s28, %s2410_s14  ;;  %p2419_p6 = scmp.lt.s32.totalorder %s2410_s14, %s2410_s14 }
  0x20   : > { %p2413_p9 = pnand %p2411_p7, %p2399_p12  ;;  %p2420_p4 = por %p2419_p6, %p2418_p2 }
  0x22   : > { %p2414_p1 = pneg %p2413_p9 }
  0x24   : > { %p2421_p8 = pnand %p2420_p4, %p2414_p1 }
  0x26   : > { %2424 = shalt.err (!%p2421_p8)
}
  0x27   : > { %s2557_s15 = smov 256   ;;  %s2558_s16 = smov 16  }
  0x28   : > { %2083 = dma.hbm_to_vmem [thread:$0]  (!%p2643_p10), %s3181_s1, 8192, %s176_s28, [#allocation7], %s2557_s15, %s2557_s15, %s2558_s16  }
  0x29   : > { %s2425_s7 = scalar_lea.hbm %s3183_s3, 8192 }
  0x2a   : > { %p2426_p1 = scmp.ne.s32.totalorder %s3183_s3, %s2425_s7  ;;  %p2432_p6 = scmp.lt.u32.totalorder %s2425_s7, %s3183_s3 }
  0x2c   : > { %p2428_p2 = pnand %p2426_p1, %p2399_p12 }
  0x2e   : > { %p2429_p4 = pneg %p2428_p2 }
  0x30   : > { %p2434_p8 = pnand %p2432_p6, %p2429_p4 }
  0x32   : > { %2437 = shalt.err (!%p2434_p8)
}
  0x33   : > { %s2438_s28 = scalar_lea.vmem %s2647_s6, 8192  ;;  %p2446_p3 = scmp.lt.s32.totalorder %s2647_s6, %s2647_s6 }
  0x34   : > { %p2439_p11 = scmp.ne.s32.totalorder %s2647_s6, %s2438_s28  ;;  %p2447_p5 = scmp.lt.s32.totalorder %s2438_s28, %s2438_s28 }
  0x36   : > { %p2441_p13 = pnand %p2439_p11, %p2399_p12  ;;  %p2448_p7 = por %p2447_p5, %p2446_p3 }
  0x38   : > { %p2442_p0 = pneg %p2441_p13 }
  0x3a   : > { %p2449_p9 = pnand %p2448_p7, %p2442_p0 }
  0x3c   : > { %2452 = shalt.err (!%p2449_p9)
}
  0x3d   : > { %s2559_s12 = smov 128   ;;  %s2560_s13 = smov 8  }
  0x3e   : > { %2086 = dma.hbm_to_vmem [thread:$0]  (!%p2643_p10), %s3183_s3, 8192, %s2647_s6, [#allocation7], %s2559_s12, %s2559_s12, %s2560_s13  }
  0x3f   : > { %s2700_s23 = sadd.s32 1, %s2553_s21   ;;  %s29_s30 = sadd.s32 1, %s2549_s20 }
  0x40   : > { %s26_s27 = ssub.s32 %s2553_s21, %s2700_s23  ;;  %p36_p1 = scmp.ne.s32.totalorder %s2549_s20, %s2545_s19 }
  0x41   : > { %p27_p12 = scmp.eq.s32.totalorder %s26_s27, 0  ;;  %p37_p2 = scmp.eq.s32.totalorder %s2553_s21, 0 }
  0x42   : > { %p3193_p6 = scmp.eq.s32.totalorder %s2616_s22, 3  ;;  %p2097_p11 = scmp.lt.s32.totalorder %s2553_s21, 4 }
  0x43   : > { %s2709_s7 = scalar_select %p27_p12, %s2549_s20, %s29_s30  }
  0x44   : > { %p38_p4 = por %p37_p2, %p36_p1  ;;  %p2713_p8 = por %p3193_p6, %p36_p1 }
  0x45   : > { %s208_s29 = sand.u32 1, %s2549_s20   ;;  %s2033_s6 = sshll.u32 %s2553_s21, 11 }
  0x46   : > { %s1889_s9 = sshll.u32 %s208_s29, 7  ;;  %s2723_s28 = scalar_lea.hbm %s3180_s0, %s2033_s6 }
  0x47   : > { %s212_s12 = scalar_lea.vmem [#allocation3], %s1889_s9  ;;  %p2727_p10 = pnand %p2097_p11, %p38_p4 }
  0x48   : > { %s220_s13 = sshll.u32 %s212_s12, 4  ;;  %s2731_s17 = scalar_lea.sflag [#allocation4], %s208_s29  ;;  %s2725_s13 = int_to_ptr.vmem [resolvable:$true] %s220_s13 }
  0x49   : > { %s2453_s27 = scalar_lea.hbm %s2723_s28, 2048  ;;  %p2455_p0 = pneg %p2727_p10 }
  0x4a   : > { %p2454_p13 = scmp.ne.s32.totalorder %s2723_s28, %s2453_s27  ;;  %s2458_s6 = scalar_lea.hbm %s3180_s0, 8192 }
  0x4b   : > { %p2459_p7 = scmp.lt.u32.totalorder %s2723_s28, %s3180_s0  ;;  %p2460_p9 = scmp.lt.u32.totalorder %s2458_s6, %s2453_s27 }
  0x4c   : > { %p2456_p3 = pnand %p2455_p0, %p2454_p13  ;;  %p2462_p1 = scmp.lt.u32.totalorder %s2453_s27, %s2723_s28 }
  0x4d   : > { %p2461_p12 = por %p2460_p9, %p2459_p7 }
  0x4e   : > { %p2457_p5 = pneg %p2456_p3 }
  0x4f   : > { %p2463_p2 = por %p2462_p1, %p2461_p12 }
  0x51   : > { %p2464_p4 = pnand %p2463_p2, %p2457_p5 }
  0x53   : > { %2467 = shalt.err (!%p2464_p4)
}
  0x54   : > { %s2468_s29 = scalar_lea.vmem %s2725_s13, 2048  ;;  %s2561_s12 = smov [#allocation3]  }
  0x55   : > { %p2469_p6 = scmp.ne.s32.totalorder %s2725_s13, %s2468_s29  ;;  %s2473_s30 = sshll.u32 %s2561_s12, 4  ;;  %s2474_s30 = int_to_ptr.vmem [resolvable:$false] %s2473_s30 }
  0x56   : > { %s2475_s9 = scalar_lea.vmem %s2474_s30, 4096  ;;  %p2476_p3 = scmp.lt.s32.totalorder %s2725_s13, %s2474_s30 }
  0x57   : > { %p2471_p11 = pnand %p2469_p6, %p2455_p0  ;;  %p2477_p7 = scmp.lt.s32.totalorder %s2475_s9, %s2468_s29 }
  0x59   : > { %p2472_p13 = pneg %p2471_p11  ;;  %p2478_p9 = por %p2477_p7, %p2476_p3 }
  0x5b   : > { %p2479_p12 = pnand %p2478_p9, %p2472_p13 }
  0x5d   : > { %2482 = shalt.err (!%p2479_p12)
}
  0x5e   : > { %2090 = dma.hbm_to_vmem [thread:$0]  (!%p2727_p10), %s2723_s28, 2048, %s2725_s13, %s2731_s17, %s2557_s15, %s2557_s15, %s2558_s16  }
  0x5f   : > { %p3196_p0 = scmp.ne.s32.totalorder %s3191_s26, 0 }
  0x60   : > { %s2765_s27 = sand.u32 (!%p3196_p0), 1, %s2545_s19   ;;  %p3197_p5 = scmp.ne.s32.totalorder (!%p3196_p0), %s3189_s24, 0 }
  0x61   : > { %232 = sbr.rel (%p3196_p0) target bundleno = 745 (0x2e9), region = 40  ;;  %s1894_s6 = sshll.u32 (!%p3196_p0), %s2765_s27, 7 }
  0x62   : > { %s235_s10 = scalar_lea.sflag (!%p3196_p0), [#allocation4], %s2765_s27  ;;  %s2771_s14 = scalar_lea.vmem (!%p3196_p0), [#allocation3], %s1894_s6 }
  0x68   : > { %2528 = dma.done.wait (%p3197_p5), %s235_s10, 2048  }
  0x69   : > { %2530 = vsyncadd (%p3197_p5), %s235_s10, 4294965248  ;;  %p3198_p10 = scmp.eq.s32.totalorder %s2616_s22, 0 }
  0x6b   : > { %2532 = dma.done.wait (%p3198_p10), [#allocation7], 16384   ;;  %p3199_p1 = pmov %p3198_p10 }
  0x6c   : > { %v2141_v0 = vld [vmem:[#allocation6 + $0x4] ss:$16 sps:$4 sm:$0xff]   ;;  %v2143_v1 = vld [vmem:[#allocation6] ss:$16 sps:$4 sm:$0xff]   ;;  %v276_v13 = vld [vmem:[%s2771_s14 + $0x8] sm:$0xff]  ;;  %s3112_s28 = scalar_lea.vmem [#allocation9], %s1894_s6 }
  0x6d   : > { %2534 = vsyncadd (%p3199_p1), [#allocation7], 4294950912  ;;  %705 = vmatprep.subr.bf16.mxu1 %v2141_v0  ;;  %v2144_v2 = vld [vmem:[#allocation6 + $0x24] ss:$16 sps:$4 sm:$0xff]   ;;  %v2146_v3 = vld [vmem:[#allocation6 + $0x20] ss:$16 sps:$4 sm:$0xff]  }
  0x6e   : > { %706 = vmatpush1.bf16.msra.mxu1 %v2143_v1  ;;  %v2147_v4 = vld [vmem:[#allocation6 + $0x44] ss:$16 sps:$4 sm:$0xff]   ;;  %v2149_v5 = vld [vmem:[#allocation6 + $0x40] ss:$16 sps:$4 sm:$0xff]   ;;  %v278_v14 = vld [vmem:[%s2771_s14 + $0x18] sm:$0xff]  ;;  %s2035_s13 = sshll.u32 %s2616_s22, 11 }
  0x6f   : > { %707 = vmatprep.subr.bf16.mxu1 %v2144_v2  ;;  %v2150_v6 = vld [vmem:[#allocation6 + $0x64] ss:$16 sps:$4 sm:$0xff]   ;;  %v2152_v7 = vld [vmem:[#allocation6 + $0x60] ss:$16 sps:$4 sm:$0xff]   ;;  %v2783_v15 = vpack.c.bf16 %v278_v14, %v276_v13  ;;  %v2191_v45 = vld [vmem:[#allocation6 + $0xc] ss:$16 sps:$4 sm:$0xff]   ;;  %s3132_s12 = scalar_lea.hbm %s3185_s5, %s2035_s13 }
  0x70   : > { %v2153_v8 = vld [vmem:[#allocation6 + $0x84] ss:$16 sps:$4 sm:$0xff]   ;;  %v2155_v9 = vld [vmem:[#allocation6 + $0x80] ss:$16 sps:$4 sm:$0xff]   ;;  %v280_v46 = vld [vmem:[%s2771_s14 + $0x28] sm:$0xff]  ;;  %s1792_s17 = sshll.u32 %s3112_s28, 4  ;;  %s3134_s17 = int_to_ptr.vmem [resolvable:$true] %s1792_s17 }
  0x71   : > { %v2156_v10 = vld [vmem:[#allocation6 + $0xa4] ss:$16 sps:$4 sm:$0xff]   ;;  %v2158_v11 = vld [vmem:[#allocation6 + $0xa0] ss:$16 sps:$4 sm:$0xff]   ;;  %737 = vmatprep.mubr.bf16.mxu1 %v2783_v15  ;;  %v282_v47 = vld [vmem:[%s2771_s14 + $0x38] sm:$0xff]  ;;  %s1778_s22 = scalar_lea.sflag [#allocation5], %s2765_s27 }
  0x72   : > { %708 = vmatpush1.bf16.msra.mxu1 %v2146_v3  ;;  %v2159_v12 = vld [vmem:[#allocation6 + $0xc4] ss:$16 sps:$4 sm:$0xff]   ;;  %v2161_v16 = vld [vmem:[#allocation6 + $0xc0] ss:$16 sps:$4 sm:$0xff]   ;;  %v2189_v49 = vld [vmem:[#allocation6 + $0x8] ss:$16 sps:$4 sm:$0xff]   ;;  %v2792_v53 = vpack.c.bf16 %v282_v47, %v280_v46 }
  0x73   : > { %709 = vmatprep.subr.bf16.mxu1 %v2147_v4  ;;  %v2162_v17 = vld [vmem:[#allocation6 + $0xe4] ss:$16 sps:$4 sm:$0xff]   ;;  %v2164_v18 = vld [vmem:[#allocation6 + $0xe0] ss:$16 sps:$4 sm:$0xff]   ;;  %v2194_v51 = vld [vmem:[#allocation6 + $0x2c] ss:$16 sps:$4 sm:$0xff]  }
  0x74   : > { %v2165_v19 = vld [vmem:[#allocation6 + $0x104] ss:$16 sps:$4 sm:$0xff]   ;;  %v2167_v20 = vld [vmem:[#allocation6 + $0x100] ss:$16 sps:$4 sm:$0xff]   ;;  %v2192_v55 = vld [vmem:[#allocation6 + $0x28] ss:$16 sps:$4 sm:$0xff]  }
  0x75   : > { %v2168_v21 = vld [vmem:[#allocation6 + $0x124] ss:$16 sps:$4 sm:$0xff]   ;;  %v2170_v22 = vld [vmem:[#allocation6 + $0x120] ss:$16 sps:$4 sm:$0xff]   ;;  %v2197_v58 = vld [vmem:[#allocation6 + $0x4c] ss:$16 sps:$4 sm:$0xff]  }
  0x76   : > { %710 = vmatpush1.bf16.msra.mxu1 %v2149_v5  ;;  %v2171_v23 = vld [vmem:[#allocation6 + $0x144] ss:$16 sps:$4 sm:$0xff]   ;;  %v2173_v24 = vld [vmem:[#allocation6 + $0x140] ss:$16 sps:$4 sm:$0xff]   ;;  %v284_v59 = vld [vmem:[%s2771_s14 + $0x48] sm:$0xff]  ;;  %s2483_s30 = scalar_lea.vmem %s3134_s17, 2048 }
  0x77   : > { %711 = vmatprep.subr.bf16.mxu1 %v2150_v6  ;;  %v2174_v25 = vld [vmem:[#allocation6 + $0x164] ss:$16 sps:$4 sm:$0xff]   ;;  %v2176_v26 = vld [vmem:[#allocation6 + $0x160] ss:$16 sps:$4 sm:$0xff]   ;;  %v286_v60 = vld [vmem:[%s2771_s14 + $0x58] sm:$0xff]  ;;  %p2484_p2 = scmp.ne.s32.totalorder %s3134_s17, %s2483_s30  ;;  %s2562_s9 = smov [#allocation9]  }
  0x78   : > { %v2177_v27 = vld [vmem:[#allocation6 + $0x184] ss:$16 sps:$4 sm:$0xff]   ;;  %v2179_v28 = vld [vmem:[#allocation6 + $0x180] ss:$16 sps:$4 sm:$0xff]   ;;  %v2195_v63 = vld [vmem:[#allocation6 + $0x48] ss:$16 sps:$4 sm:$0xff]   ;;  %v2802_v3 = vpack.c.bf16 %v286_v60, %v284_v59 }
  0x79   : > { %v2180_v29 = vld [vmem:[#allocation6 + $0x1a4] ss:$16 sps:$4 sm:$0xff]   ;;  %v2239_v31 = vld [vmem:[#allocation8] ss:$8 sps:$4 sm:$0xff]   ;;  %v2242_v35 = vld [vmem:[#allocation8 + $0x10] ss:$8 sps:$4 sm:$0xff]   ;;  %p2485_p4 = pnand %p2484_p2, %p2713_p8 }
  0x7a   : > { %712 = vmatpush1.bf16.msra.mxu1 %v2152_v7  ;;  %v2237_v30 = vld [vmem:[#allocation8 + $0x4] ss:$8 sps:$4 sm:$0xff]   ;;  %v2182_v32 = vld [vmem:[#allocation6 + $0x1a0] ss:$16 sps:$4 sm:$0xff]   ;;  %v2240_v33 = vld [vmem:[#allocation8 + $0x14] ss:$8 sps:$4 sm:$0xff]  }
  0x7b   : > { %713 = vmatprep.subr.bf16.mxu1 %v2153_v8  ;;  %1615 = vmatprep.subr.bf16.mxu0 %v2237_v30  ;;  %v2183_v34 = vld [vmem:[#allocation6 + $0x1c4] ss:$16 sps:$4 sm:$0xff]   ;;  %v2185_v37 = vld [vmem:[#allocation6 + $0x1c0] ss:$16 sps:$4 sm:$0xff]   ;;  %v2200_v1 = vld [vmem:[#allocation6 + $0x6c] ss:$16 sps:$4 sm:$0xff]   ;;  %p2486_p6 = pneg %p2485_p4 }
  0x7c   : > { %1616 = vmatpush1.bf16.msra.mxu0 %v2239_v31  ;;  %v2243_v36 = vld [vmem:[#allocation8 + $0x24] ss:$8 sps:$4 sm:$0xff]   ;;  %v2245_v39 = vld [vmem:[#allocation8 + $0x20] ss:$8 sps:$4 sm:$0xff]   ;;  %v2246_v40 = vld [vmem:[#allocation8 + $0x34] ss:$8 sps:$4 sm:$0xff]  }
  0x7d   : > { %1617 = vmatprep.subr.bf16.mxu0 %v2240_v33  ;;  %v2186_v38 = vld [vmem:[#allocation6 + $0x1e4] ss:$16 sps:$4 sm:$0xff]   ;;  %v2188_v41 = vld [vmem:[#allocation6 + $0x1e0] ss:$16 sps:$4 sm:$0xff]   ;;  %v2198_v4 = vld [vmem:[#allocation6 + $0x68] ss:$16 sps:$4 sm:$0xff]  }
  0x7e   : > { %714 = vmatpush1.bf16.msra.mxu1 %v2155_v9  ;;  %v275_v42 = vld [vmem:[%s2771_s14] sm:$0xff]  ;;  %v277_v43 = vld [vmem:[%s2771_s14 + $0x10] sm:$0xff]  ;;  %v2203_v7 = vld [vmem:[#allocation6 + $0x8c] ss:$16 sps:$4 sm:$0xff]   ;;  %s2487_s6 = sshll.u32 %s2562_s9, 4  ;;  %s2488_s6 = int_to_ptr.vmem [resolvable:$false] %s2487_s6 }
  0x7f   : > { %715 = vmatprep.subr.bf16.mxu1 %v2156_v10  ;;  %v2248_v44 = vld [vmem:[#allocation8 + $0x30] ss:$8 sps:$4 sm:$0xff]   ;;  %v2249_v48 = vld [vmem:[#allocation8 + $0x44] ss:$8 sps:$4 sm:$0xff]   ;;  %v2790_v50 = vpack.c.bf16 %v277_v43, %v275_v42  ;;  %v2251_v52 = vld [vmem:[#allocation8 + $0x40] ss:$8 sps:$4 sm:$0xff]   ;;  %p2490_p11 = scmp.lt.s32.totalorder %s3134_s17, %s2488_s6 }
  0x80   : > { %1618 = vmatpush1.bf16.msra.mxu0 %v2242_v35  ;;  %v2252_v54 = vld [vmem:[#allocation8 + $0x54] ss:$8 sps:$4 sm:$0xff]   ;;  %v279_v56 = vld [vmem:[%s2771_s14 + $0x20] sm:$0xff]  ;;  %v2254_v61 = vld [vmem:[#allocation8 + $0x50] ss:$8 sps:$4 sm:$0xff]   ;;  %s2489_s10 = scalar_lea.vmem %s2488_s6, 4096 }
  0x81   : > { %1619 = vmatprep.subr.bf16.mxu0 %v2243_v36  ;;  %v281_v57 = vld [vmem:[%s2771_s14 + $0x30] sm:$0xff]  ;;  %v2255_v62 = vld [vmem:[#allocation8 + $0x64] ss:$8 sps:$4 sm:$0xff]   ;;  %v2257_v2 = vld [vmem:[#allocation8 + $0x60] ss:$8 sps:$4 sm:$0xff]   ;;  %p2491_p13 = scmp.lt.s32.totalorder %s2489_s10, %s2483_s30 }
  0x82   : > { %716 = vmatpush1.bf16.msra.mxu1 %v2158_v11  ;;  %v2800_v0 = vpack.c.bf16 %v281_v57, %v279_v56  ;;  %v283_v5 = vld [vmem:[%s2771_s14 + $0x40] sm:$0xff]  ;;  %v285_v6 = vld [vmem:[%s2771_s14 + $0x50] sm:$0xff]  ;;  %v288_v8 = vld [vmem:[%s2771_s14 + $0x68] sm:$0xff]  ;;  %v365_v57 = vlaneseq }
  0x83   : > { %717 = vmatprep.subr.bf16.mxu1 %v2159_v12  ;;  %v290_v9 = vld [vmem:[%s2771_s14 + $0x78] sm:$0xff]  ;;  %v295_v10 = vpack.c.bf16 %v285_v6, %v283_v5  ;;  %v2287_v56 = vld [vmem:[#allocation8 + $0x104] ss:$8 sps:$4 sm:$0xff]   ;;  %v2823_v60 = vld [vmem:[%s3182_s2] sm:$0xf]  ;;  %p2492_p3 = por %p2491_p13, %p2490_p11 }
  0x84   : > { %1620 = vmatpush1.bf16.msra.mxu0 %v2245_v39  ;;  %v2201_v11 = vld [vmem:[#allocation6 + $0x88] ss:$16 sps:$4 sm:$0xff]   ;;  %v298_v12 = vpack.c.bf16 %v290_v9, %v288_v8  ;;  %v2206_v13 = vld [vmem:[#allocation6 + $0xac] ss:$16 sps:$4 sm:$0xff]  }
  0x85   : > { %1621 = vmatprep.subr.bf16.mxu0 %v2246_v40  ;;  %v2204_v14 = vld [vmem:[#allocation6 + $0xa8] ss:$16 sps:$4 sm:$0xff]   ;;  %v2227_v31 = vld [vmem:[#allocation6 + $0x18c] ss:$16 sps:$4 sm:$0xff]   ;;  %p2493_p7 = pnand %p2492_p3, %p2486_p6 }
  0x86   : > { %718 = vmatpush1.bf16.msra.mxu1 %v2161_v16  ;;  %v287_v16 = vld [vmem:[%s2771_s14 + $0x60] sm:$0xff]  ;;  %v2222_v30 = vld [vmem:[#allocation6 + $0x168] ss:$16 sps:$4 sm:$0xff]   ;;  %v2236_v36 = vld [vmem:[#allocation6 + $0x1ec] ss:$16 sps:$4 sm:$0xff]  }
  0x87   : > { %719 = vmatprep.subr.bf16.mxu1 %v2162_v17  ;;  %v289_v17 = vld [vmem:[%s2771_s14 + $0x70] sm:$0xff]  ;;  %v2228_v33 = vld [vmem:[#allocation6 + $0x1a8] ss:$16 sps:$4 sm:$0xff]   ;;  %v2261_v40 = vld [vmem:[#allocation8 + $0x84] ss:$8 sps:$4 sm:$0xff]  }
  0x88   : > { %1622 = vmatpush1.bf16.msra.mxu0 %v2248_v44  ;;  %v2231_v35 = vld [vmem:[#allocation6 + $0x1c8] ss:$16 sps:$4 sm:$0xff]   ;;  %v2264_v42 = vld [vmem:[#allocation8 + $0x94] ss:$8 sps:$4 sm:$0xff]   ;;  %v2267_v44 = vld [vmem:[#allocation8 + $0xa4] ss:$8 sps:$4 sm:$0xff]  }
  0x89   : > { %1623 = vmatprep.subr.bf16.mxu0 %v2249_v48  ;;  %v2260_v39 = vld [vmem:[#allocation8 + $0x70] ss:$8 sps:$4 sm:$0xff]   ;;  %v2270_v46 = vld [vmem:[#allocation8 + $0xb4] ss:$8 sps:$4 sm:$0xff]   ;;  %v2273_v48 = vld [vmem:[#allocation8 + $0xc4] ss:$8 sps:$4 sm:$0xff]  }
  0x8a   : > { %720 = vmatpush1.bf16.msra.mxu1 %v2164_v18  ;;  %v2209_v18 = vld [vmem:[#allocation6 + $0xcc] ss:$16 sps:$4 sm:$0xff]   ;;  %v2266_v43 = vld [vmem:[#allocation8 + $0x90] ss:$8 sps:$4 sm:$0xff]  }
  0x8b   : > { %721 = vmatprep.subr.bf16.mxu1 %v2165_v19  ;;  %v297_v19 = vpack.c.bf16 %v289_v17, %v287_v16  ;;  %v2272_v47 = vld [vmem:[#allocation8 + $0xb0] ss:$8 sps:$4 sm:$0xff]  }
  0x8c   : > { %1624 = vmatpush1.bf16.msra.mxu0 %v2251_v52  ;;  %v2279_v52 = vld [vmem:[#allocation8 + $0xe4] ss:$8 sps:$4 sm:$0xff]  }
  0x8d   : > { %1625 = vmatprep.subr.bf16.mxu0 %v2252_v54  ;;  %v2282_v54 = vld [vmem:[#allocation8 + $0xf4] ss:$8 sps:$4 sm:$0xff]  }
  0x8e   : > { %722 = vmatpush1.bf16.msra.mxu1 %v2167_v20  ;;  %v2207_v20 = vld [vmem:[#allocation6 + $0xc8] ss:$16 sps:$4 sm:$0xff]  }
  0x8f   : > { %723 = vmatprep.subr.bf16.mxu1 %v2168_v21  ;;  %v2212_v21 = vld [vmem:[#allocation6 + $0xec] ss:$16 sps:$4 sm:$0xff]  }
  0x90   : > { %1626 = vmatpush1.bf16.msra.mxu0 %v2254_v61 }
  0x91   : > { %1627 = vmatprep.subr.bf16.mxu0 %v2255_v62 }
  0x92   : > { %724 = vmatpush1.bf16.msra.mxu1 %v2170_v22  ;;  %v2210_v22 = vld [vmem:[#allocation6 + $0xe8] ss:$16 sps:$4 sm:$0xff]  }
  0x93   : > { %725 = vmatprep.subr.bf16.mxu1 %v2171_v23  ;;  %v2215_v23 = vld [vmem:[#allocation6 + $0x10c] ss:$16 sps:$4 sm:$0xff]  }
  0x94   : > { %1628 = vmatpush1.bf16.msra.mxu0 %v2257_v2 }
  0x96   : > { %726 = vmatpush1.bf16.msra.mxu1 %v2173_v24  ;;  %v2213_v24 = vld [vmem:[#allocation6 + $0x108] ss:$16 sps:$4 sm:$0xff]  }
  0x97   : > { %727 = vmatprep.subr.bf16.mxu1 %v2174_v25  ;;  %v2218_v25 = vld [vmem:[#allocation6 + $0x12c] ss:$16 sps:$4 sm:$0xff]  }
  0x9a   : > { %728 = vmatpush1.bf16.msra.mxu1 %v2176_v26  ;;  %v2216_v26 = vld [vmem:[#allocation6 + $0x128] ss:$16 sps:$4 sm:$0xff]  }
  0x9b   : > { %729 = vmatprep.subr.bf16.mxu1 %v2177_v27  ;;  %v2221_v27 = vld [vmem:[#allocation6 + $0x14c] ss:$16 sps:$4 sm:$0xff]  }
  0x9e   : > { %730 = vmatpush1.bf16.msra.mxu1 %v2179_v28  ;;  %v2219_v28 = vld [vmem:[#allocation6 + $0x148] ss:$16 sps:$4 sm:$0xff]  }
  0x9f   : > { %731 = vmatprep.subr.bf16.mxu1 %v2180_v29  ;;  %v2224_v29 = vld [vmem:[#allocation6 + $0x16c] ss:$16 sps:$4 sm:$0xff]  }
  0xa2   : > { %732 = vmatpush1.bf16.msra.mxu1 %v2182_v32  ;;  %v2230_v32 = vld [vmem:[#allocation6 + $0x1ac] ss:$16 sps:$4 sm:$0xff]  }
  0xa3   : > { %733 = vmatprep.subr.bf16.mxu1 %v2183_v34  ;;  %v2233_v34 = vld [vmem:[#allocation6 + $0x1cc] ss:$16 sps:$4 sm:$0xff]  }
  0xa6   : > { %734 = vmatpush1.bf16.msra.mxu1 %v2185_v37  ;;  %v2234_v37 = vld [vmem:[#allocation6 + $0x1e8] ss:$16 sps:$4 sm:$0xff]  }
  0xa7   : > { %735 = vmatprep.subr.bf16.mxu1 %v2186_v38  ;;  %v2258_v38 = vld [vmem:[#allocation8 + $0x74] ss:$8 sps:$4 sm:$0xff]  }
  0xa8   : > { %1629 = vmatprep.subr.bf16.mxu0 %v2258_v38 }
  0xa9   : > { %1630 = vmatpush1.bf16.msra.mxu0 %v2260_v39 }
  0xaa   : > { %736 = vmatpush1.bf16.msra.mxu1 %v2188_v41  ;;  %v2263_v41 = vld [vmem:[#allocation8 + $0x80] ss:$8 sps:$4 sm:$0xff]   ;;  %1631 = vmatprep.subr.bf16.mxu0 %v2261_v40 }
  0xab   : > { %778 = vmatprep.subr.bf16.mxu1 %v2191_v45  ;;  %v2269_v45 = vld [vmem:[#allocation8 + $0xa0] ss:$8 sps:$4 sm:$0xff]  }
  0xad   : > { %738 = vmatmul.mubr.bf16.vlgmr.msra.gmra.mrb[0].mxu1 %v2790_v50  ;;  %1632 = vmatpush1.bf16.msra.mxu0 %v2263_v41 }
  0xae   : > { %779 = vmatpush1.bf16.msra.mxu1 %v2189_v49  ;;  %747 = vmatprep.mubr.bf16.mxu1 %v2792_v53  ;;  %v2275_v49 = vld [vmem:[#allocation8 + $0xc0] ss:$8 sps:$4 sm:$0xff]  }
  0xaf   : > { %780 = vmatprep.subr.bf16.mxu1 %v2194_v51  ;;  %1633 = vmatprep.subr.bf16.mxu0 %v2264_v42  ;;  %v2278_v51 = vld [vmem:[#allocation8 + $0xd0] ss:$8 sps:$4 sm:$0xff]  }
  0xb1   : > { %1634 = vmatpush1.bf16.msra.mxu0 %v2266_v43 }
  0xb2   : > { %781 = vmatpush1.bf16.msra.mxu1 %v2192_v55  ;;  %1635 = vmatprep.subr.bf16.mxu0 %v2267_v44  ;;  %v2284_v55 = vld [vmem:[#allocation8 + $0xf0] ss:$8 sps:$4 sm:$0xff]  }
  0xb3   : > { %782 = vmatprep.subr.bf16.mxu1 %v2197_v58  ;;  %v2817_v58 = vshrl.u32 %v365_v57, 7 }
  0xb5   : > { %748 = vmatmul.mubr.bf16.gmra.mrb[4].mxu1 %v2800_v0  ;;  %1636 = vmatpush1.bf16.msra.mxu0 %v2269_v45  ;;  %v367_v59 = vsub.s32 0, %v2817_v58  ;;  %v371_v61 = vsub.s32 1, %v2817_v58 }
  0xb6   : > { %783 = vmatpush1.bf16.msra.mxu1 %v2195_v63  ;;  %757 = vmatprep.mubr.bf16.mxu1 %v2802_v3 }
  0xb7   : > { %784 = vmatprep.subr.bf16.mxu1 %v2200_v1  ;;  %1637 = vmatprep.subr.bf16.mxu0 %v2270_v46  ;;  %v2829_v62 = vrot.slane %v2823_v60, %v367_v59  ;;  %v2834_v63 = vrot.slane %v2823_v60, %v371_v61 }
  0xb9   : > { %1638 = vmatpush1.bf16.msra.mxu0 %v2272_v47 }
  0xba   : > { %785 = vmatpush1.bf16.msra.mxu1 %v2198_v4  ;;  %1639 = vmatprep.subr.bf16.mxu0 %v2273_v48 }
  0xbb   : > { %786 = vmatprep.subr.bf16.mxu1 %v2203_v7 }
  0xbd   : > { %758 = vmatmul.mubr.bf16.gmra.mrb[8].mxu1 %v295_v10  ;;  %1640 = vmatpush1.bf16.msra.mxu0 %v2275_v49 }
  0xbe   : > { %787 = vmatpush1.bf16.msra.mxu1 %v2201_v11  ;;  %767 = vmatprep.mubr.bf16.mxu1 %v298_v12 }
  0xbf   : > { %788 = vmatprep.subr.bf16.mxu1 %v2206_v13 }
  0xc2   : > { %789 = vmatpush1.bf16.msra.mxu1 %v2204_v14 }
  0xc3   : > { %790 = vmatprep.subr.bf16.mxu1 %v2209_v18 }
  0xc5   : > { %768 = vmatmul.mubr.bf16.gmra.mrb[12].mxu1 %v297_v19 }
  0xc6   : > { %791 = vmatpush1.bf16.msra.mxu1 %v2207_v20  ;;  %810 = vmatprep.mubr.bf16.mxu1 %v2783_v15  ;;  %v2225_v15 = vld [vmem:[#allocation6 + $0x188] ss:$16 sps:$4 sm:$0xff]  }
  0xc7   : > { %792 = vmatprep.subr.bf16.mxu1 %v2212_v21 }
  0xca   : > { %793 = vmatpush1.bf16.msra.mxu1 %v2210_v22 }
  0xcb   : > { %794 = vmatprep.subr.bf16.mxu1 %v2215_v23 }
  0xce   : > { %795 = vmatpush1.bf16.msra.mxu1 %v2213_v24 }
  0xcf   : > { %796 = vmatprep.subr.bf16.mxu1 %v2218_v25 }
  0xd2   : > { %797 = vmatpush1.bf16.msra.mxu1 %v2216_v26 }
  0xd3   : > { %798 = vmatprep.subr.bf16.mxu1 %v2221_v27 }
  0xd6   : > { %799 = vmatpush1.bf16.msra.mxu1 %v2219_v28 }
  0xd7   : > { %800 = vmatprep.subr.bf16.mxu1 %v2224_v29 }
  0xda   : > { %801 = vmatpush1.bf16.msra.mxu1 %v2222_v30 }
  0xdb   : > { %802 = vmatprep.subr.bf16.mxu1 %v2227_v31 }
  0xde   : > { %803 = vmatpush1.bf16.msra.mxu1 %v2225_v15 }
  0xdf   : > { %804 = vmatprep.subr.bf16.mxu1 %v2230_v32 }
  0xe2   : > { %805 = vmatpush1.bf16.msra.mxu1 %v2228_v33 }
  0xe3   : > { %806 = vmatprep.subr.bf16.mxu1 %v2233_v34 }
  0xe6   : > { %807 = vmatpush1.bf16.msra.mxu1 %v2231_v35 }
  0xe7   : > { %808 = vmatprep.subr.bf16.mxu1 %v2236_v36 }
  0xea   : > { %809 = vmatpush1.bf16.msra.mxu1 %v2234_v37 }
  0xed   : > { %811 = vmatmul.mubr.bf16.vlgmr.msra.gmra.mrb[16].mxu1 %v2790_v50  ;;  %v2276_v50 = vld [vmem:[#allocation8 + $0xd4] ss:$8 sps:$4 sm:$0xff]  }
  0xee   : > { %820 = vmatprep.mubr.bf16.mxu1 %v2792_v53  ;;  %1641 = vmatprep.subr.bf16.mxu0 %v2276_v50  ;;  %v2281_v53 = vld [vmem:[#allocation8 + $0xe0] ss:$8 sps:$4 sm:$0xff]  }
  0xef   : > { %1642 = vmatpush1.bf16.msra.mxu0 %v2278_v51 }
  0xf0   : > { %1643 = vmatprep.subr.bf16.mxu0 %v2279_v52 }
  0xf3   : > { %1644 = vmatpush1.bf16.msra.mxu0 %v2281_v53 }
  0xf4   : > { %1645 = vmatprep.subr.bf16.mxu0 %v2282_v54 }
  0xf5   : > { %821 = vmatmul.mubr.bf16.gmra.mrb[20].mxu1 %v2800_v0 }
  0xf6   : > { %830 = vmatprep.mubr.bf16.mxu1 %v2802_v3 }
  0xf7   : > { %1646 = vmatpush1.bf16.msra.mxu0 %v2284_v55 }
  0xf8   : > { %1688 = vmatprep.subr.bf16.mxu0 %v2287_v56 }
  0xfd   : > { %831 = vmatmul.mubr.bf16.gmra.mrb[24].mxu1 %v295_v10 }
  0xfe   : > { %840 = vmatprep.mubr.bf16.mxu1 %v298_v12 }
 0x105   : > { %841 = vmatmul.mubr.bf16.gmra.mrb[28].mxu1 %v297_v19 }
 0x180   : > { %v739_v0 = vpop.f32.mrb[0].mxu1 }
 0x181   : > { %v2837_v1 = vadd.f32 %v739_v0, %v2829_v62  ;;  %v741_v2 = vpop.f32.mrb[1].mxu1 }
 0x182   : > { %v2840_v3 = vadd.f32 %v741_v2, %v2834_v63  ;;  %v743_v4 = vpop.f32.mrb[2].mxu1 }
 0x183   : > { %v851_v5 = vmul.f32 %v2837_v1, %v2837_v1  ;;  %v2845_v6 = vadd.f32 %v743_v4, %v2829_v62  ;;  %v745_v7 = vpop.f32.mrb[3].mxu1 }
 0x184   : > { %v852_v8 = vmul.f32 %v2840_v3, %v2840_v3  ;;  %v2850_v9 = vadd.f32 %v745_v7, %v2834_v63 }
 0x185   : > { %v883_v10 = vmul.f32 %v851_v5, %v2837_v1  ;;  %v855_v11 = vmul.f32 %v2845_v6, %v2845_v6 }
 0x186   : > { %v884_v12 = vmul.f32 %v852_v8, %v2840_v3  ;;  %v856_v13 = vmul.f32 %v2850_v9, %v2850_v9 }
 0x187   : > { %v915_v14 = vmul.f32 0.044715, %v883_v10  ;;  %v887_v16 = vmul.f32 %v855_v11, %v2845_v6 }
 0x188   : > { %v916_v17 = vmul.f32 0.044715, %v884_v12  ;;  %v888_v18 = vmul.f32 %v856_v13, %v2850_v9  ;;  %v749_v19 = vpop.f32.mrb[4].mxu1 }
 0x189   : > { %v947_v20 = vadd.f32 %v915_v14, %v2837_v1  ;;  %v919_v21 = vmul.f32 0.044715, %v887_v16  ;;  %v2862_v22 = vadd.f32 %v749_v19, %v2829_v62  ;;  %v751_v23 = vpop.f32.mrb[5].mxu1 }
 0x18a   : > { %v920_v24 = vmul.f32 0.044715, %v888_v18  ;;  %v2865_v25 = vadd.f32 %v751_v23, %v2834_v63  ;;  %v753_v26 = vpop.f32.mrb[6].mxu1  ;;  %v948_v27 = vadd.f32 %v916_v17, %v2840_v3 }
 0x18b   : > { %v979_v28 = vmul.f32 0.7978846, %v947_v20  ;;  %v951_v29 = vadd.f32 %v919_v21, %v2845_v6  ;;  %v859_v30 = vmul.f32 %v2862_v22, %v2862_v22  ;;  %v2872_v31 = vadd.f32 %v753_v26, %v2829_v62  ;;  %v755_v15 = vpop.f32.mrb[7].mxu1 }
 0x18c   : > { %v860_v32 = vmul.f32 %v2865_v25, %v2865_v25  ;;  %v2877_v33 = vadd.f32 %v755_v15, %v2834_v63  ;;  %v952_v34 = vadd.f32 %v920_v24, %v2850_v9  ;;  %v980_v35 = vmul.f32 0.7978846, %v948_v27 }
 0x18d   : > { %2333 = vtanh.f32 %v979_v28  ;;  %v983_v36 = vmul.f32 0.7978846, %v951_v29  ;;  %v891_v37 = vmul.f32 %v859_v30, %v2862_v22  ;;  %v863_v38 = vmul.f32 %v2872_v31, %v2872_v31 }
 0x18e   : > { %v892_v39 = vmul.f32 %v860_v32, %v2865_v25  ;;  %v864_v40 = vmul.f32 %v2877_v33, %v2877_v33  ;;  %v984_v41 = vmul.f32 0.7978846, %v952_v34  ;;  %2335 = vtanh.f32 %v980_v35 }
 0x18f   : > { %2337 = vtanh.f32 %v983_v36  ;;  %v923_v42 = vmul.f32 0.044715, %v891_v37  ;;  %v895_v43 = vmul.f32 %v863_v38, %v2872_v31 }
 0x190   : > { %v924_v44 = vmul.f32 0.044715, %v892_v39  ;;  %v896_v45 = vmul.f32 %v864_v40, %v2877_v33  ;;  %v759_v46 = vpop.f32.mrb[8].mxu1  ;;  %2339 = vtanh.f32 %v984_v41 }
 0x191   : > { %v955_v47 = vadd.f32 %v923_v42, %v2862_v22  ;;  %v927_v48 = vmul.f32 0.044715, %v895_v43  ;;  %v2890_v49 = vadd.f32 %v759_v46, %v2829_v62  ;;  %v761_v50 = vpop.f32.mrb[9].mxu1 }
 0x192   : > { %v956_v51 = vadd.f32 %v924_v44, %v2865_v25  ;;  %v928_v52 = vmul.f32 0.044715, %v896_v45  ;;  %v2894_v53 = vadd.f32 %v761_v50, %v2834_v63  ;;  %v763_v54 = vpop.f32.mrb[10].mxu1 }
 0x193   : > { %v987_v55 = vmul.f32 0.7978846, %v955_v47  ;;  %v959_v56 = vadd.f32 %v927_v48, %v2872_v31  ;;  %v867_v57 = vmul.f32 %v2890_v49, %v2890_v49  ;;  %v2900_v0 = vadd.f32 %v763_v54, %v2829_v62  ;;  %v765_v2 = vpop.f32.mrb[11].mxu1 }
 0x194   : > { %v988_v4 = vmul.f32 0.7978846, %v956_v51  ;;  %v960_v5 = vadd.f32 %v928_v52, %v2877_v33  ;;  %v868_v7 = vmul.f32 %v2894_v53, %v2894_v53  ;;  %v2906_v8 = vadd.f32 %v765_v2, %v2834_v63 }
 0x195   : > { %2341 = vtanh.f32 %v987_v55  ;;  %v991_v10 = vmul.f32 0.7978846, %v959_v56  ;;  %v899_v11 = vmul.f32 %v867_v57, %v2890_v49  ;;  %v871_v12 = vmul.f32 %v2900_v0, %v2900_v0 }
 0x196   : > { %2343 = vtanh.f32 %v988_v4  ;;  %v992_v13 = vmul.f32 0.7978846, %v960_v5  ;;  %v900_v14 = vmul.f32 %v868_v7, %v2894_v53  ;;  %v872_v16 = vmul.f32 %v2906_v8, %v2906_v8 }
 0x197   : > { %v2334_v17 = vpop.eup %2333  ;;  %2345 = vtanh.f32 %v991_v10  ;;  %v931_v18 = vmul.f32 0.044715, %v899_v11  ;;  %v903_v19 = vmul.f32 %v871_v12, %v2900_v0 }
 0x198   : > { %v2336_v20 = vpop.eup %2335  ;;  %2347 = vtanh.f32 %v992_v13  ;;  %v932_v21 = vmul.f32 0.044715, %v900_v14  ;;  %v904_v23 = vmul.f32 %v872_v16, %v2906_v8  ;;  %v769_v24 = vpop.f32.mrb[12].mxu1  ;;  %v1043_v26 = vadd.f32 1.0, %v2334_v17 }
 0x199   : > { %v2338_v27 = vpop.eup %2337  ;;  %v963_v28 = vadd.f32 %v931_v18, %v2890_v49  ;;  %v935_v29 = vmul.f32 0.044715, %v903_v19  ;;  %v2918_v30 = vadd.f32 %v769_v24, %v2829_v62  ;;  %v771_v15 = vpop.f32.mrb[13].mxu1  ;;  %v1044_v32 = vadd.f32 1.0, %v2336_v20 }
 0x19a   : > { %v964_v34 = vadd.f32 %v932_v21, %v2894_v53  ;;  %v936_v35 = vmul.f32 0.044715, %v904_v23  ;;  %v2922_v36 = vadd.f32 %v771_v15, %v2834_v63  ;;  %v773_v37 = vpop.f32.mrb[14].mxu1  ;;  %v1047_v38 = vadd.f32 1.0, %v2338_v27  ;;  %v2340_v44 = vpop.eup %2339 }
 0x19b   : > { %v995_v39 = vmul.f32 0.7978846, %v963_v28  ;;  %v967_v40 = vadd.f32 %v935_v29, %v2900_v0  ;;  %v875_v41 = vmul.f32 %v2918_v30, %v2918_v30  ;;  %v2928_v42 = vadd.f32 %v773_v37, %v2829_v62  ;;  %v775_v43 = vpop.f32.mrb[15].mxu1  ;;  %v2285_v37 = vld [vmem:[#allocation8 + $0x100] ss:$8 sps:$4 sm:$0xff]  }
 0x19c   : > { %v996_v45 = vmul.f32 0.7978846, %v964_v34  ;;  %v968_v46 = vadd.f32 %v936_v35, %v2906_v8  ;;  %v876_v47 = vmul.f32 %v2922_v36, %v2922_v36  ;;  %v2934_v48 = vadd.f32 %v775_v43, %v2834_v63 }
 0x19d   : > { %2349 = vtanh.f32 %v995_v39  ;;  %v999_v50 = vmul.f32 0.7978846, %v967_v40  ;;  %v907_v51 = vmul.f32 %v875_v41, %v2918_v30  ;;  %v879_v52 = vmul.f32 %v2928_v42, %v2928_v42  ;;  %v2290_v40 = vld [vmem:[#allocation8 + $0x114] ss:$8 sps:$4 sm:$0xff]  }
 0x19e   : > { %2351 = vtanh.f32 %v996_v45  ;;  %v1000_v62 = vmul.f32 0.7978846, %v968_v46  ;;  %v908_v54 = vmul.f32 %v876_v47, %v2922_v36  ;;  %v880_v55 = vmul.f32 %v2934_v48, %v2934_v48 }
 0x19f   : > { %v2342_v56 = vpop.eup %2341  ;;  %2353 = vtanh.f32 %v999_v50  ;;  %v939_v57 = vmul.f32 0.044715, %v907_v51  ;;  %v911_v63 = vmul.f32 %v879_v52, %v2928_v42  ;;  %v1048_v2 = vadd.f32 1.0, %v2340_v44  ;;  %v2288_v50 = vld [vmem:[#allocation8 + $0x110] ss:$8 sps:$4 sm:$0xff]  }
 0x1a0   : > { %v2344_v4 = vpop.eup %2343  ;;  %2355 = vtanh.f32 %v1000_v62  ;;  %v940_v5 = vmul.f32 0.044715, %v908_v54  ;;  %v912_v7 = vmul.f32 %v880_v55, %v2934_v48  ;;  %v1076_v10 = vmul.f32 0.5, %v1044_v32 }
 0x1a1   : > { %v2346_v11 = vpop.eup %2345  ;;  %v971_v12 = vadd.f32 %v939_v57, %v2918_v30  ;;  %v943_v13 = vmul.f32 0.044715, %v911_v63  ;;  %v1080_v14 = vmul.f32 0.5, %v1048_v2  ;;  %v1075_v16 = vmul.f32 0.5, %v1043_v26  ;;  %v2293_v57 = vld [vmem:[#allocation8 + $0x124] ss:$8 sps:$4 sm:$0xff]  }
 0x1a2   : > { %v2348_v17 = vpop.eup %2347  ;;  %v972_v18 = vadd.f32 %v940_v5, %v2922_v36  ;;  %v944_v19 = vmul.f32 0.044715, %v912_v7  ;;  %v1108_v20 = vmul.f32 %v1076_v10, %v2840_v3  ;;  %v1079_v21 = vmul.f32 0.5, %v1047_v38 }
 0x1a3   : > { %v1003_v23 = vmul.f32 0.7978846, %v971_v12  ;;  %v975_v24 = vadd.f32 %v943_v13, %v2928_v42  ;;  %v1112_v27 = vmul.f32 %v1080_v14, %v2850_v9  ;;  %v1107_v28 = vmul.f32 %v1075_v16, %v2837_v1  ;;  %v2296_v14 = vld [vmem:[#allocation8 + $0x134] ss:$8 sps:$4 sm:$0xff]  }
 0x1a4   : > { %v1004_v29 = vmul.f32 0.7978846, %v972_v18  ;;  %v976_v15 = vadd.f32 %v944_v19, %v2934_v48  ;;  %v1111_v32 = vmul.f32 %v1079_v21, %v2845_v6  ;;  %v1052_v26 = vadd.f32 1.0, %v2344_v4 }
 0x1a5   : > { %2357 = vtanh.f32 %v1003_v23  ;;  %v1007_v34 = vmul.f32 0.7978846, %v975_v24  ;;  %v1204_v35 = vpack.c.bf16 %v1112_v27, %v1108_v20  ;;  %v1056_v39 = vadd.f32 1.0, %v2348_v17 }
 0x1a6   : > { %2359 = vtanh.f32 %v1004_v29  ;;  %v1008_v3 = vmul.f32 0.7978846, %v976_v15  ;;  %v1203_v38 = vpack.c.bf16 %v1111_v32, %v1107_v28  ;;  %v1084_v41 = vmul.f32 0.5, %v1052_v26  ;;  %v2299_v28 = vld [vmem:[#allocation8 + $0x144] ss:$8 sps:$4 sm:$0xff]  }
 0x1a7   : > { %v2350_v43 = vpop.eup %2349  ;;  %2361 = vtanh.f32 %v1007_v34  ;;  %1647 = vmatprep.mubr.bf16.mxu0 %v1204_v35  ;;  %v1088_v1 = vmul.f32 0.5, %v1056_v39  ;;  %v1051_v9 = vadd.f32 1.0, %v2342_v56  ;;  %v1055_v44 = vadd.f32 1.0, %v2346_v11  ;;  %v2297_v26 = vld [vmem:[#allocation8 + $0x140] ss:$8 sps:$4 sm:$0xff]  }
 0x1a8   : > { %v2352_v45 = vpop.eup %2351  ;;  %2363 = vtanh.f32 %v1008_v3  ;;  %1648 = vmatmul.mubr.bf16.vlgmr.msra.gmra.mrb[0].mxu0 %v1203_v38  ;;  %v1116_v6 = vmul.f32 %v1084_v41, %v2865_v25  ;;  %v1059_v46 = vadd.f32 1.0, %v2350_v43  ;;  %v375_v43 = vsub.s32 2, %v2817_v58 }
 0x1a9   : > { %v2354_v47 = vpop.eup %2353  ;;  %1689 = vmatpush1.bf16.msra.mxu0 %v2285_v37  ;;  %v1120_v51 = vmul.f32 %v1088_v1, %v2877_v33  ;;  %v1083_v52 = vmul.f32 0.5, %v1051_v9  ;;  %v1087_v62 = vmul.f32 0.5, %v1055_v44  ;;  %v1060_v54 = vadd.f32 1.0, %v2352_v45  ;;  %v2291_v33 = vld [vmem:[#allocation8 + $0x120] ss:$8 sps:$4 sm:$0xff]  }
 0x1aa   : > { %v2356_v55 = vpop.eup %2355  ;;  %1690 = vmatprep.subr.bf16.mxu0 %v2290_v40  ;;  %v1063_v63 = vadd.f32 1.0, %v2354_v47  ;;  %v1091_v56 = vmul.f32 0.5, %v1059_v46  ;;  %v2302_v37 = vld [vmem:[#allocation8 + $0x154] ss:$8 sps:$4 sm:$0xff]   ;;  %v2300_v40 = vld [vmem:[#allocation8 + $0x150] ss:$8 sps:$4 sm:$0xff]   ;;  %v2967_v9 = vrot.slane %v2823_v60, %v375_v43 }
 0x1ab   : > { %v1208_v2 = vpack.c.bf16 %v1120_v51, %v1116_v6  ;;  %v1115_v4 = vmul.f32 %v1083_v52, %v2862_v22  ;;  %v1119_v5 = vmul.f32 %v1087_v62, %v2872_v31  ;;  %v1064_v25 = vadd.f32 1.0, %v2356_v55  ;;  %v2306_v6 = vld [vmem:[#allocation8 + $0x170] ss:$8 sps:$4 sm:$0xff]   ;;  %v2311_v51 = vld [vmem:[#allocation8 + $0x184] ss:$8 sps:$4 sm:$0xff]  }
 0x1ac   : > { %v1092_v7 = vmul.f32 0.5, %v1060_v54  ;;  %v1095_v10 = vmul.f32 0.5, %v1063_v63  ;;  %v1123_v11 = vmul.f32 %v1091_v56, %v2890_v49  ;;  %v2294_v49 = vld [vmem:[#allocation8 + $0x130] ss:$8 sps:$4 sm:$0xff]   ;;  %v379_v1 = vsub.s32 3, %v2817_v58 }
 0x1ad   : > { %1691 = vmatpush1.bf16.msra.mxu0 %v2288_v50  ;;  %1657 = vmatprep.mubr.bf16.mxu0 %v1208_v2  ;;  %v1207_v12 = vpack.c.bf16 %v1119_v5, %v1115_v4  ;;  %v1096_v13 = vmul.f32 0.5, %v1064_v25  ;;  %v2309_v56 = vld [vmem:[#allocation8 + $0x180] ss:$8 sps:$4 sm:$0xff]   ;;  %v2314_v5 = vld [vmem:[#allocation8 + $0x194] ss:$8 sps:$4 sm:$0xff]  }
 0x1ae   : > { %1692 = vmatprep.subr.bf16.mxu0 %v2293_v57  ;;  %v1124_v16 = vmul.f32 %v1092_v7, %v2894_v53  ;;  %v1127_v17 = vmul.f32 %v1095_v10, %v2900_v0 }
 0x1af   : > { %v2358_v18 = vpop.eup %2357  ;;  %v1128_v22 = vmul.f32 %v1096_v13, %v2906_v8 }
 0x1b0   : > { %v2360_v31 = vpop.eup %2359  ;;  %1658 = vmatmul.mubr.bf16.gmra.mrb[4].mxu0 %v1207_v12  ;;  %v1211_v19 = vpack.c.bf16 %v1127_v17, %v1123_v11  ;;  %v1067_v20 = vadd.f32 1.0, %v2358_v18 }
 0x1b1   : > { %v2362_v21 = vpop.eup %2361  ;;  %1693 = vmatpush1.bf16.msra.mxu0 %v2291_v33  ;;  %v1212_v23 = vpack.c.bf16 %v1128_v22, %v1124_v16  ;;  %v1068_v24 = vadd.f32 1.0, %v2360_v31  ;;  %v2312_v16 = vld [vmem:[#allocation8 + $0x190] ss:$8 sps:$4 sm:$0xff]  }
 0x1b2   : > { %v2364_v27 = vpop.eup %2363  ;;  %1694 = vmatprep.subr.bf16.mxu0 %v2296_v14  ;;  %v1071_v29 = vadd.f32 1.0, %v2362_v21  ;;  %v1099_v15 = vmul.f32 0.5, %v1067_v20  ;;  %v2317_v20 = vld [vmem:[#allocation8 + $0x1a4] ss:$8 sps:$4 sm:$0xff]  }
 0x1b3   : > { %1667 = vmatprep.mubr.bf16.mxu0 %v1212_v23  ;;  %v1072_v53 = vadd.f32 1.0, %v2364_v27  ;;  %v1100_v0 = vmul.f32 0.5, %v1068_v24 }
 0x1b4   : > { %v1103_v32 = vmul.f32 0.5, %v1071_v29  ;;  %v1131_v8 = vmul.f32 %v1099_v15, %v2918_v30  ;;  %v2305_v30 = vld [vmem:[#allocation8 + $0x164] ss:$8 sps:$4 sm:$0xff]  }
 0x1b5   : > { %1695 = vmatpush1.bf16.msra.mxu0 %v2294_v49  ;;  %v1104_v34 = vmul.f32 0.5, %v1072_v53  ;;  %v1132_v35 = vmul.f32 %v1100_v0, %v2922_v36  ;;  %v2303_v36 = vld [vmem:[#allocation8 + $0x160] ss:$8 sps:$4 sm:$0xff]  }
 0x1b6   : > { %1696 = vmatprep.subr.bf16.mxu0 %v2299_v28  ;;  %v1135_v39 = vmul.f32 %v1103_v32, %v2928_v42  ;;  %v2308_v42 = vld [vmem:[#allocation8 + $0x174] ss:$8 sps:$4 sm:$0xff]  }
 0x1b7   : > { %v1136_v3 = vmul.f32 %v1104_v34, %v2934_v48  ;;  %v2970_v48 = vrot.slane %v2823_v60, %v379_v1 }
 0x1b8   : > { %1668 = vmatmul.mubr.bf16.gmra.mrb[8].mxu0 %v1211_v19  ;;  %v1215_v38 = vpack.c.bf16 %v1135_v39, %v1131_v8  ;;  %v2320_v39 = vld [vmem:[#allocation8 + $0x1b4] ss:$8 sps:$4 sm:$0xff]  }
 0x1b9   : > { %1697 = vmatpush1.bf16.msra.mxu0 %v2297_v26  ;;  %v1216_v41 = vpack.c.bf16 %v1136_v3, %v1132_v35  ;;  %v2315_v26 = vld [vmem:[#allocation8 + $0x1a0] ss:$8 sps:$4 sm:$0xff]  }
 0x1ba   : > { %1698 = vmatprep.subr.bf16.mxu0 %v2302_v37 }
 0x1bb   : > { %1677 = vmatprep.mubr.bf16.mxu0 %v1216_v41 }
 0x1bd   : > { %1699 = vmatpush1.bf16.msra.mxu0 %v2300_v40 }
 0x1be   : > { %1700 = vmatprep.subr.bf16.mxu0 %v2305_v30 }
 0x1c0   : > { %1678 = vmatmul.mubr.bf16.gmra.mrb[12].mxu0 %v1215_v38  ;;  %v812_v44 = vpop.f32.mrb[16].mxu1 }
 0x1c1   : > { %1701 = vmatpush1.bf16.msra.mxu0 %v2303_v36  ;;  %v2973_v45 = vadd.f32 %v812_v44, %v2967_v9  ;;  %v814_v46 = vpop.f32.mrb[17].mxu1 }
 0x1c2   : > { %1702 = vmatprep.subr.bf16.mxu0 %v2308_v42  ;;  %v2976_v47 = vadd.f32 %v814_v46, %v2970_v48  ;;  %v816_v50 = vpop.f32.mrb[18].mxu1  ;;  %v2318_v42 = vld [vmem:[#allocation8 + $0x1b0] ss:$8 sps:$4 sm:$0xff]  }
 0x1c3   : > { %v853_v52 = vmul.f32 %v2973_v45, %v2973_v45  ;;  %v2981_v60 = vadd.f32 %v816_v50, %v2967_v9  ;;  %v818_v62 = vpop.f32.mrb[19].mxu1 }
 0x1c4   : > { %v854_v54 = vmul.f32 %v2976_v47, %v2976_v47  ;;  %v2986_v55 = vadd.f32 %v818_v62, %v2970_v48 }
 0x1c5   : > { %v885_v57 = vmul.f32 %v853_v52, %v2973_v45  ;;  %1703 = vmatpush1.bf16.msra.mxu0 %v2306_v6  ;;  %v857_v63 = vmul.f32 %v2981_v60, %v2981_v60  ;;  %v2323_v52 = vld [vmem:[#allocation8 + $0x1c4] ss:$8 sps:$4 sm:$0xff]  }
 0x1c6   : > { %v886_v2 = vmul.f32 %v854_v54, %v2976_v47  ;;  %v858_v4 = vmul.f32 %v2986_v55, %v2986_v55  ;;  %1704 = vmatprep.subr.bf16.mxu0 %v2311_v51 }
 0x1c7   : > { %v917_v25 = vmul.f32 0.044715, %v885_v57  ;;  %v889_v7 = vmul.f32 %v857_v63, %v2981_v60 }
 0x1c8   : > { %v918_v10 = vmul.f32 0.044715, %v886_v2  ;;  %v890_v11 = vmul.f32 %v858_v4, %v2986_v55  ;;  %v822_v33 = vpop.f32.mrb[20].mxu1 }
 0x1c9   : > { %v949_v12 = vadd.f32 %v917_v25, %v2973_v45  ;;  %v921_v13 = vmul.f32 0.044715, %v889_v7  ;;  %1705 = vmatpush1.bf16.msra.mxu0 %v2309_v56  ;;  %v2998_v14 = vadd.f32 %v822_v33, %v2967_v9  ;;  %v824_v17 = vpop.f32.mrb[21].mxu1  ;;  %v2321_v33 = vld [vmem:[#allocation8 + $0x1c0] ss:$8 sps:$4 sm:$0xff]  }
 0x1ca   : > { %v950_v18 = vadd.f32 %v918_v10, %v2976_v47  ;;  %v922_v22 = vmul.f32 0.044715, %v890_v11  ;;  %1706 = vmatprep.subr.bf16.mxu0 %v2314_v5  ;;  %v3002_v31 = vadd.f32 %v824_v17, %v2970_v48  ;;  %v826_v19 = vpop.f32.mrb[22].mxu1  ;;  %v2326_v17 = vld [vmem:[#allocation8 + $0x1d4] ss:$8 sps:$4 sm:$0xff]  }
 0x1cb   : > { %v981_v21 = vmul.f32 0.7978846, %v949_v12  ;;  %v953_v49 = vadd.f32 %v921_v13, %v2981_v60  ;;  %v861_v23 = vmul.f32 %v2998_v14, %v2998_v14  ;;  %v3008_v24 = vadd.f32 %v826_v19, %v2967_v9  ;;  %v828_v27 = vpop.f32.mrb[23].mxu1 }
 0x1cc   : > { %v982_v28 = vmul.f32 0.7978846, %v950_v18  ;;  %v954_v29 = vadd.f32 %v922_v22, %v2986_v55  ;;  %v862_v15 = vmul.f32 %v3002_v31, %v3002_v31  ;;  %v3014_v53 = vadd.f32 %v828_v27, %v2970_v48 }
 0x1cd   : > { %2365 = vtanh.f32 %v981_v21  ;;  %v985_v0 = vmul.f32 0.7978846, %v953_v49  ;;  %v893_v32 = vmul.f32 %v861_v23, %v2998_v14  ;;  %1707 = vmatpush1.bf16.msra.mxu0 %v2312_v16  ;;  %v865_v8 = vmul.f32 %v3008_v24, %v3008_v24 }
 0x1ce   : > { %2367 = vtanh.f32 %v982_v28  ;;  %v986_v34 = vmul.f32 0.7978846, %v954_v29  ;;  %v894_v35 = vmul.f32 %v862_v15, %v3002_v31  ;;  %v866_v37 = vmul.f32 %v3014_v53, %v3014_v53  ;;  %1708 = vmatprep.subr.bf16.mxu0 %v2317_v20  ;;  %v2324_v28 = vld [vmem:[#allocation8 + $0x1d0] ss:$8 sps:$4 sm:$0xff]  }
 0x1cf   : > { %2369 = vtanh.f32 %v985_v0  ;;  %v925_v3 = vmul.f32 0.044715, %v893_v32  ;;  %v897_v38 = vmul.f32 %v865_v8, %v3008_v24 }
 0x1d0   : > { %v926_v40 = vmul.f32 0.044715, %v894_v35  ;;  %v898_v41 = vmul.f32 %v866_v37, %v3014_v53  ;;  %v832_v43 = vpop.f32.mrb[24].mxu1  ;;  %2371 = vtanh.f32 %v986_v34 }
 0x1d1   : > { %v957_v30 = vadd.f32 %v925_v3, %v2998_v14  ;;  %v929_v1 = vmul.f32 0.044715, %v897_v38  ;;  %1709 = vmatpush1.bf16.msra.mxu0 %v2315_v26  ;;  %v3026_v36 = vadd.f32 %v832_v43, %v2967_v9  ;;  %v834_v44 = vpop.f32.mrb[25].mxu1  ;;  %v2329_v26 = vld [vmem:[#allocation8 + $0x1e4] ss:$8 sps:$4 sm:$0xff]  }
 0x1d2   : > { %v958_v6 = vadd.f32 %v926_v40, %v3002_v31  ;;  %v930_v46 = vmul.f32 0.044715, %v898_v41  ;;  %1710 = vmatprep.subr.bf16.mxu0 %v2320_v39  ;;  %v3030_v50 = vadd.f32 %v834_v44, %v2970_v48  ;;  %v836_v51 = vpop.f32.mrb[26].mxu1 }
 0x1d3   : > { %v989_v62 = vmul.f32 0.7978846, %v957_v30  ;;  %v961_v54 = vadd.f32 %v929_v1, %v3008_v24  ;;  %v869_v57 = vmul.f32 %v3026_v36, %v3026_v36  ;;  %v3036_v63 = vadd.f32 %v836_v51, %v2967_v9  ;;  %v838_v56 = vpop.f32.mrb[27].mxu1 }
 0x1d4   : > { %v990_v2 = vmul.f32 0.7978846, %v958_v6  ;;  %v962_v4 = vadd.f32 %v930_v46, %v3014_v53  ;;  %v870_v5 = vmul.f32 %v3030_v50, %v3030_v50  ;;  %v3042_v25 = vadd.f32 %v838_v56, %v2970_v48 }
 0x1d5   : > { %2373 = vtanh.f32 %v989_v62  ;;  %v993_v7 = vmul.f32 0.7978846, %v961_v54  ;;  %v901_v10 = vmul.f32 %v869_v57, %v3026_v36  ;;  %1711 = vmatpush1.bf16.msra.mxu0 %v2318_v42  ;;  %v873_v11 = vmul.f32 %v3036_v63, %v3036_v63  ;;  %v2327_v57 = vld [vmem:[#allocation8 + $0x1e0] ss:$8 sps:$4 sm:$0xff]  }
 0x1d6   : > { %2375 = vtanh.f32 %v990_v2  ;;  %v994_v12 = vmul.f32 0.7978846, %v962_v4  ;;  %v902_v13 = vmul.f32 %v870_v5, %v3030_v50  ;;  %v874_v16 = vmul.f32 %v3042_v25, %v3042_v25  ;;  %1712 = vmatprep.subr.bf16.mxu0 %v2323_v52  ;;  %v2332_v4 = vld [vmem:[#allocation8 + $0x1f4] ss:$8 sps:$4 sm:$0xff]  }
 0x1d7   : > { %v2366_v18 = vpop.eup %2365  ;;  %2377 = vtanh.f32 %v993_v7  ;;  %v933_v22 = vmul.f32 0.044715, %v901_v10  ;;  %v905_v19 = vmul.f32 %v873_v11, %v3036_v63 }
 0x1d8   : > { %v2368_v20 = vpop.eup %2367  ;;  %v1045_v21 = vadd.f32 1.0, %v2366_v18  ;;  %2379 = vtanh.f32 %v994_v12  ;;  %v934_v49 = vmul.f32 0.044715, %v902_v13  ;;  %v906_v23 = vmul.f32 %v874_v16, %v3042_v25  ;;  %v842_v27 = vpop.f32.mrb[28].mxu1 }
 0x1d9   : > { %v2370_v29 = vpop.eup %2369  ;;  %v965_v15 = vadd.f32 %v933_v22, %v3026_v36  ;;  %v937_v0 = vmul.f32 0.044715, %v905_v19  ;;  %1713 = vmatpush1.bf16.msra.mxu0 %v2321_v33  ;;  %v3054_v32 = vadd.f32 %v842_v27, %v2967_v9  ;;  %v844_v8 = vpop.f32.mrb[29].mxu1  ;;  %v1046_v34 = vadd.f32 1.0, %v2368_v20  ;;  %v2330_v22 = vld [vmem:[#allocation8 + $0x1f0] ss:$8 sps:$4 sm:$0xff]  }
 0x1da   : > { %v1077_v35 = vmul.f32 0.5, %v1045_v21  ;;  %v1049_v37 = vadd.f32 1.0, %v2370_v29  ;;  %v966_v39 = vadd.f32 %v934_v49, %v3030_v50  ;;  %v938_v3 = vmul.f32 0.044715, %v906_v23  ;;  %1714 = vmatprep.subr.bf16.mxu0 %v2326_v17  ;;  %v846_v38 = vpop.f32.mrb[30].mxu1  ;;  %v2372_v42 = vpop.eup %2371 }
 0x1db   : > { %v997_v40 = vmul.f32 0.7978846, %v965_v15  ;;  %v969_v41 = vadd.f32 %v937_v0, %v3036_v63  ;;  %v877_v43 = vmul.f32 %v3054_v32, %v3054_v32  ;;  %v3061_v30 = vadd.f32 %v844_v8, %v2970_v48  ;;  %v848_v1 = vpop.f32.mrb[31].mxu1 }
 0x1dc   : > { %v3064_v44 = vmul.f32 %v1077_v35, %v2973_v45  ;;  %v1081_v6 = vmul.f32 0.5, %v1049_v37  ;;  %v998_v46 = vmul.f32 0.7978846, %v966_v39  ;;  %v970_v51 = vadd.f32 %v938_v3, %v3042_v25 }
 0x1dd   : > { %2381 = vtanh.f32 %v997_v40  ;;  %v1001_v52 = vmul.f32 0.7978846, %v969_v41  ;;  %v909_v62 = vmul.f32 %v877_v43, %v3054_v32  ;;  %v878_v54 = vmul.f32 %v3061_v30, %v3061_v30  ;;  %1715 = vmatpush1.bf16.msra.mxu0 %v2324_v28 }
 0x1de   : > { %v1113_v56 = vmul.f32 %v1081_v6, %v2981_v60  ;;  %2383 = vtanh.f32 %v998_v46  ;;  %v1002_v2 = vmul.f32 0.7978846, %v970_v51  ;;  %v3072_v45 = vadd.f32 %v846_v38, %v2967_v9  ;;  %1716 = vmatprep.subr.bf16.mxu0 %v2329_v26 }
 0x1df   : > { %v2374_v5 = vpop.eup %2373  ;;  %2385 = vtanh.f32 %v1001_v52  ;;  %v941_v7 = vmul.f32 0.044715, %v909_v62  ;;  %v910_v10 = vmul.f32 %v878_v54, %v3061_v30  ;;  %v3076_v11 = vadd.f32 %v848_v1, %v2970_v48 }
 0x1e0   : > { %v2376_v33 = vpop.eup %2375  ;;  %v1205_v12 = vpack.c.bf16 %v1113_v56, %v3064_v44  ;;  %2387 = vtanh.f32 %v1002_v2  ;;  %v881_v60 = vmul.f32 %v3072_v45, %v3072_v45  ;;  %v1050_v13 = vadd.f32 1.0, %v2372_v42 }
 0x1e1   : > { %v2378_v9 = vpop.eup %2377  ;;  %v973_v16 = vadd.f32 %v941_v7, %v3054_v32  ;;  %v942_v17 = vmul.f32 0.044715, %v910_v10  ;;  %v882_v18 = vmul.f32 %v3076_v11, %v3076_v11  ;;  %1717 = vmatpush1.bf16.msra.mxu0 %v2327_v57  ;;  %v1078_v19 = vmul.f32 0.5, %v1046_v34 }
 0x1e2   : > { %v2380_v48 = vpop.eup %2379  ;;  %v913_v20 = vmul.f32 %v881_v60, %v3072_v45  ;;  %1718 = vmatprep.subr.bf16.mxu0 %v2332_v4  ;;  %v1082_v21 = vmul.f32 0.5, %v1050_v13  ;;  %v1054_v49 = vadd.f32 1.0, %v2376_v33  ;;  %v1053_v23 = vadd.f32 1.0, %v2374_v5 }
 0x1e3   : > { %v1005_v27 = vmul.f32 0.7978846, %v973_v16  ;;  %v974_v28 = vadd.f32 %v942_v17, %v3061_v30  ;;  %v914_v29 = vmul.f32 %v882_v18, %v3076_v11  ;;  %v1110_v15 = vmul.f32 %v1078_v19, %v2976_v47 }
 0x1e4   : > { %v945_v0 = vmul.f32 0.044715, %v913_v20  ;;  %v1114_v8 = vmul.f32 %v1082_v21, %v2986_v55  ;;  %v1058_v26 = vadd.f32 1.0, %v2380_v48  ;;  %v1086_v35 = vmul.f32 0.5, %v1054_v49 }
 0x1e5   : > { %2389 = vtanh.f32 %v1005_v27  ;;  %v1006_v34 = vmul.f32 0.7978846, %v974_v28  ;;  %v946_v37 = vmul.f32 0.044715, %v914_v29  ;;  %1719 = vmatpush1.bf16.msra.mxu0 %v2330_v22  ;;  %v1057_v39 = vadd.f32 1.0, %v2378_v9 }
 0x1e6   : > { %v977_v3 = vadd.f32 %v945_v0, %v3072_v45  ;;  %v1206_v38 = vpack.c.bf16 %v1114_v8, %v1110_v15  ;;  %v1090_v40 = vmul.f32 0.5, %v1058_v26  ;;  %v1085_v1 = vmul.f32 0.5, %v1053_v23  ;;  %v1283_v0 = vld [vmem:[%s3184_s4] sm:$0x3] }
 0x1e7   : > { %v2382_v41 = vpop.eup %2381  ;;  %2391 = vtanh.f32 %v1006_v34  ;;  %v978_v43 = vadd.f32 %v946_v37, %v3076_v11  ;;  %v1089_v47 = vmul.f32 0.5, %v1057_v39  ;;  %v1118_v55 = vmul.f32 %v1086_v35, %v3002_v31 }
 0x1e8   : > { %v2384_v42 = vpop.eup %2383  ;;  %v1009_v44 = vmul.f32 0.7978846, %v977_v3  ;;  %1720 = vmatprep.mubr.bf16.mxu0 %v1206_v38  ;;  %v1122_v6 = vmul.f32 %v1090_v40, %v3014_v53  ;;  %v1061_v46 = vadd.f32 1.0, %v2382_v41  ;;  %v1117_v62 = vmul.f32 %v1085_v1, %v2998_v14 }
 0x1e9   : > { %v2386_v51 = vpop.eup %2385  ;;  %v1010_v52 = vmul.f32 0.7978846, %v978_v43  ;;  %1721 = vmatmul.mubr.bf16.vlgmr.msra.gmra.mrb[0].mxu0 %v1205_v12  ;;  %v1121_v54 = vmul.f32 %v1089_v47, %v3008_v24  ;;  %v1062_v57 = vadd.f32 1.0, %v2384_v42  ;;  %v1288_v8 = vrot.slane %v1283_v0, %v367_v59 }
 0x1ea   : > { %v2388_v56 = vpop.eup %2387  ;;  %2393 = vtanh.f32 %v1009_v44  ;;  %v1210_v2 = vpack.c.bf16 %v1122_v6, %v1118_v55  ;;  %v1065_v4 = vadd.f32 1.0, %v2386_v51  ;;  %v1093_v5 = vmul.f32 0.5, %v1061_v46 }
 0x1eb   : > { %2395 = vtanh.f32 %v1010_v52  ;;  %v1209_v7 = vpack.c.bf16 %v1121_v54, %v1117_v62  ;;  %v1066_v10 = vadd.f32 1.0, %v2388_v56  ;;  %v1094_v31 = vmul.f32 0.5, %v1062_v57 }
 0x1ec   : > { %1730 = vmatprep.mubr.bf16.mxu0 %v1210_v2  ;;  %v1097_v53 = vmul.f32 0.5, %v1065_v4  ;;  %v1125_v60 = vmul.f32 %v1093_v5, %v3026_v36 }
 0x1ed   : > { %v1098_v33 = vmul.f32 0.5, %v1066_v10  ;;  %v1126_v24 = vmul.f32 %v1094_v31, %v3030_v50 }
 0x1ee   : > { %v1129_v12 = vmul.f32 %v1097_v53, %v3036_v63 }
 0x1ef   : > { %v2390_v14 = vpop.eup %2389  ;;  %v1130_v13 = vmul.f32 %v1098_v33, %v3042_v25 }
 0x1f0   : > { %v1213_v9 = vpack.c.bf16 %v1129_v12, %v1125_v60  ;;  %v1069_v18 = vadd.f32 1.0, %v2390_v14 }
 0x1f1   : > { %v2392_v16 = vpop.eup %2391  ;;  %1731 = vmatmul.mubr.bf16.gmra.mrb[4].mxu0 %v1209_v7  ;;  %v1214_v17 = vpack.c.bf16 %v1130_v13, %v1126_v24 }
 0x1f2   : > { %v1070_v22 = vadd.f32 1.0, %v2392_v16  ;;  %v1101_v21 = vmul.f32 0.5, %v1069_v18 }
 0x1f3   : > { %1740 = vmatprep.mubr.bf16.mxu0 %v1214_v17 }
 0x1f4   : > { %v2394_v19 = vpop.eup %2393  ;;  %v1102_v36 = vmul.f32 0.5, %v1070_v22  ;;  %v1133_v50 = vmul.f32 %v1101_v21, %v3054_v32  ;;  %v1292_v32 = vrot.slane %v1283_v0, %v371_v61 }
 0x1f5   : > { %v2396_v48 = vpop.eup %2395  ;;  %v1073_v20 = vadd.f32 1.0, %v2394_v19 }
 0x1f6   : > { %v1074_v49 = vadd.f32 1.0, %v2396_v48  ;;  %v1134_v27 = vmul.f32 %v1102_v36, %v3061_v30 }
 0x1f7   : > { %v1105_v23 = vmul.f32 0.5, %v1073_v20 }
 0x1f8   : > { %v1106_v63 = vmul.f32 0.5, %v1074_v49 }
 0x1f9   : > { %1741 = vmatmul.mubr.bf16.gmra.mrb[8].mxu0 %v1213_v9  ;;  %v1137_v25 = vmul.f32 %v1105_v23, %v3072_v45 }
 0x1fa   : > { %v1138_v28 = vmul.f32 %v1106_v63, %v3076_v11 }
 0x1fb   : > { %v1217_v29 = vpack.c.bf16 %v1137_v25, %v1133_v50 }
 0x1fc   : > { %v1218_v15 = vpack.c.bf16 %v1138_v28, %v1134_v27 }
 0x1fe   : > { %1750 = vmatprep.mubr.bf16.mxu0 %v1218_v15 }
 0x201   : > { %1751 = vmatmul.mubr.bf16.gmra.mrb[12].mxu0 %v1217_v29 }
 0x2bc   : > { %v1722_v26 = vpop.f32.mrb[0].mxu0 }
 0x2bd   : > { %v2036_v45 = vadd.f32 %v1722_v26, %v1288_v8  ;;  %v1724_v35 = vpop.f32.mrb[1].mxu0 }
 0x2be   : > { %v2037_v30 = vadd.f32 %v1724_v35, %v1292_v32  ;;  %v1726_v34 = vpop.f32.mrb[2].mxu0 }
 0x2bf   : > { %1761 = vst [vmem:[%s3112_s28] sm:$0xff] %v2036_v45  ;;  %v2038_v11 = vadd.f32 %v1726_v34, %v1288_v8  ;;  %v1728_v59 = vpop.f32.mrb[3].mxu0 }
 0x2c0   : > { %1762 = vst [vmem:[%s3112_s28 + $0x8] sm:$0xff] %v2037_v30  ;;  %v2039_v58 = vadd.f32 %v1728_v59, %v1292_v32 }
 0x2c1   : > { %1763 = vst [vmem:[%s3112_s28 + $0x10] sm:$0xff] %v2038_v11 }
 0x2c2   : > { %1764 = vst [vmem:[%s3112_s28 + $0x18] sm:$0xff] %v2039_v58 }
 0x2c4   : > { %v1732_v61 = vpop.f32.mrb[4].mxu0 }
 0x2c5   : > { %v2040_v37 = vadd.f32 %v1732_v61, %v1288_v8  ;;  %v1734_v39 = vpop.f32.mrb[5].mxu0 }
 0x2c6   : > { %v2041_v3 = vadd.f32 %v1734_v39, %v1292_v32  ;;  %v1736_v38 = vpop.f32.mrb[6].mxu0 }
 0x2c7   : > { %1765 = vst [vmem:[%s3112_s28 + $0x20] sm:$0xff] %v2040_v37  ;;  %v2042_v40 = vadd.f32 %v1736_v38, %v1288_v8  ;;  %v1738_v41 = vpop.f32.mrb[7].mxu0 }
 0x2c8   : > { %1766 = vst [vmem:[%s3112_s28 + $0x28] sm:$0xff] %v2041_v3  ;;  %v2043_v43 = vadd.f32 %v1738_v41, %v1292_v32 }
 0x2c9   : > { %1767 = vst [vmem:[%s3112_s28 + $0x30] sm:$0xff] %v2042_v40 }
 0x2ca   : > { %1768 = vst [vmem:[%s3112_s28 + $0x38] sm:$0xff] %v2043_v43 }
 0x2cc   : > { %v1742_v1 = vpop.f32.mrb[8].mxu0 }
 0x2cd   : > { %v2044_v47 = vadd.f32 %v1742_v1, %v1288_v8  ;;  %v1744_v42 = vpop.f32.mrb[9].mxu0 }
 0x2ce   : > { %v2045_v44 = vadd.f32 %v1744_v42, %v1292_v32  ;;  %v1746_v55 = vpop.f32.mrb[10].mxu0 }
 0x2cf   : > { %1769 = vst [vmem:[%s3112_s28 + $0x40] sm:$0xff] %v2044_v47  ;;  %v2046_v6 = vadd.f32 %v1746_v55, %v1288_v8  ;;  %v1748_v46 = vpop.f32.mrb[11].mxu0 }
 0x2d0   : > { %1770 = vst [vmem:[%s3112_s28 + $0x48] sm:$0xff] %v2045_v44  ;;  %v2047_v51 = vadd.f32 %v1748_v46, %v1292_v32 }
 0x2d1   : > { %1771 = vst [vmem:[%s3112_s28 + $0x50] sm:$0xff] %v2046_v6 }
 0x2d2   : > { %1772 = vst [vmem:[%s3112_s28 + $0x58] sm:$0xff] %v2047_v51 }
 0x2d4   : > { %v1752_v52 = vpop.f32.mrb[12].mxu0 }
 0x2d5   : > { %v2048_v62 = vadd.f32 %v1752_v52, %v1288_v8  ;;  %v1754_v54 = vpop.f32.mrb[13].mxu0 }
 0x2d6   : > { %v2049_v57 = vadd.f32 %v1754_v54, %v1292_v32  ;;  %v1756_v56 = vpop.f32.mrb[14].mxu0 }
 0x2d7   : > { %1773 = vst [vmem:[%s3112_s28 + $0x60] sm:$0xff] %v2048_v62  ;;  %v2050_v2 = vadd.f32 %v1756_v56, %v1288_v8  ;;  %v1758_v4 = vpop.f32.mrb[15].mxu0 }
 0x2d8   : > { %1774 = vst [vmem:[%s3112_s28 + $0x68] sm:$0xff] %v2049_v57  ;;  %v2051_v5 = vadd.f32 %v1758_v4, %v1292_v32 }
 0x2d9   : > { %1775 = vst [vmem:[%s3112_s28 + $0x70] sm:$0xff] %v2050_v2 }
 0x2da   : > { %1776 = vst [vmem:[%s3112_s28 + $0x78] sm:$0xff] %v2051_v5 }
 0x2db   : > { %2496 = shalt.err (!%p2493_p7)
}
 0x2dc   : > { %s2497_s14 = scalar_lea.hbm %s3132_s12, 2048  ;;  %s2501_s15 = scalar_lea.hbm %s3185_s5, 8192 }
 0x2dd   : > { %p2498_p9 = scmp.ne.s32.totalorder %s3132_s12, %s2497_s14  ;;  %p2502_p5 = scmp.lt.u32.totalorder %s3132_s12, %s3185_s5 }
 0x2de   : > { %p2503_p10 = scmp.lt.u32.totalorder %s2501_s15, %s2497_s14  ;;  %p2505_p2 = scmp.lt.u32.totalorder %s2497_s14, %s3132_s12 }
 0x2df   : > { %p2499_p12 = pnand %p2498_p9, %p2713_p8 }
 0x2e0   : > { %p2504_p1 = por %p2503_p10, %p2502_p5 }
 0x2e1   : > { %p2500_p0 = pneg %p2499_p12 }
 0x2e2   : > { %p2506_p4 = por %p2505_p2, %p2504_p1 }
 0x2e4   : > { %p2507_p6 = pnand %p2506_p4, %p2500_p0 }
 0x2e6   : > { %2510 = shalt.err (!%p2507_p6)
}
 0x2e7   : > { %s2563_s13 = smov 256   ;;  %s2564_s11 = smov 16  }
 0x2e8   : > { %2078 = dma.vmem_to_hbm [thread:$0]  (%p2713_p8), %s3134_s17, 2048, %s3132_s12, %s1778_s22, %s2563_s13, %s2563_s13, %s2564_s11  }
 0x2e9 PF: > { %p2100_p11 = scmp.ge.s32.totalorder %s2553_s21, 2  ;;  %s1807_s29 = sand.u32 1, %s2541_s18  }
 0x2ea   : > { %p3200_p13 = scmp.ne.s32.totalorder %s3190_s25, 0  ;;  %s1808_s30 = scalar_lea.sflag [#allocation5], %s1807_s29 }
 0x2ec   : > { %p2092_p3 = pnand %p2100_p11, %p3200_p13 }
 0x2ee   : > { %2536 = dma.done.wait (!%p2092_p3), %s1808_s30, 2048  }
 0x2ef   : > { %2538 = vsyncadd (!%p2092_p3), %s1808_s30, 4294965248  ;;  %p19_p7 = scmp.ge.s32.totalorder %s2700_s23, 6   ;;  %s3201_s18 = smov %s2545_s19 }
 0x2f0   : > { %s3202_s19 = smov %s2549_s20  ;;  %s3203_s20 = smov %s2709_s7 }
 0x2f1   : > { %s3204_s21 = smov %s2700_s23  ;;  %21 = sbr.rel (!%p19_p7) target bundleno = 6 (0x6), region = 93 }
 0x2f8   :  { %1813 = vsyncpa [#allocation4], 1 }
 0x2f9   :  { %1815 = vsyncpa [#allocation4 + $0x1], 1 }
 0x2fa   :  { %1816 = vsyncpa [#allocation7], 1 }
 0x2fb   :  { %1817 = vsyncpa [#allocation5], 1 }
 0x2fc   :  { %1819 = vsyncpa [#allocation5 + $0x1], 1 }

</bundles_post_ra>
